<compile_context>
chip_gen: v7x
topology: tpu7x:2x2x1
jax: 0.10.0
libtpu: 0.0.40
codegen_flags: <defaults>
</compile_context>

<pallas_src>
import functools

import jax
import jax.numpy as jnp
from jax import lax
from jax.experimental import pallas as pl
from jax.experimental.pallas import tpu as pltpu


# ----------------------------- Pallas kernel --------------------------------


def _lstm_act(gates, c, H):
    """PyTorch-ordered (i, f, g, o) LSTM nonlinearities on pre-activations (f32)."""
    i = jax.nn.sigmoid(gates[:, 0 * H:1 * H])
    f = jax.nn.sigmoid(gates[:, 1 * H:2 * H])
    g = jnp.tanh(gates[:, 2 * H:3 * H])
    o = jax.nn.sigmoid(gates[:, 3 * H:4 * H])
    c_new = f * c + i * g
    return o * jnp.tanh(c_new), c_new


def dlds_kernel(x_ref, wih_ref, bih_ref, whh_ref, wlin_ref, blin_ref,
                geff_ref, beff_ref, out_ref, hstate_ref,
                *, hidden, batch, seq, num_subdyn, eps):
    H, Bn, Tn = hidden, batch, seq
    x2d = x_ref[...]                                      # (T*B, D) bf16, time-major
    acc = jnp.zeros(out_ref.shape, jnp.float32)

    for s in range(num_subdyn):                           # S is tiny -> static unroll
        # ---- hoisted input projection: both directions, all timesteps, 1 matmul ----
        xp = jnp.dot(x2d, wih_ref[s],
                     preferred_element_type=jnp.float32) + bih_ref[s]    # (T*B, 8H) f32
        whh = whh_ref[s]                                  # (2H, 8H) bf16, block-diagonal

        # ---- interleaved bidirectional recurrence: step t does fwd(t) & bwd(T-1-t),
        #      driven by ONE (B, 2H) @ (2H, 8H) matmul on the serial chain ----
        hc = jnp.zeros((Bn, 2 * H), jnp.float32)          # [h_fwd | h_bwd]
        cf = jnp.zeros((Bn, H), jnp.float32)
        cb = jnp.zeros((Bn, H), jnp.float32)
        for t in range(Tn):
            rt = Tn - 1 - t
            if t == 0:
                hh = jnp.zeros((Bn, 8 * H), jnp.float32)  # h == 0 at the first step
            else:
                hh = jnp.dot(hc.astype(jnp.bfloat16), whh,
                             preferred_element_type=jnp.float32)         # (B, 8H)
            g_f = xp[t * Bn:(t + 1) * Bn, 0:4 * H] + hh[:, 0:4 * H]
            g_b = xp[rt * Bn:(rt + 1) * Bn, 4 * H:8 * H] + hh[:, 4 * H:8 * H]
            h_f, cf = _lstm_act(g_f, cf, H)
            h_b, cb = _lstm_act(g_b, cb, H)
            hc = jnp.concatenate([h_f, h_b], axis=-1)
            # park hidden states in VMEM scratch at their OUTPUT time position
            hstate_ref[t * Bn:(t + 1) * Bn, 0:H] = h_f
            hstate_ref[rt * Bn:(rt + 1) * Bn, H:2 * H] = h_b

        # ---- batched Linear + LayerNorm + accumulate over all timesteps at once ----
        lin = jnp.dot(hstate_ref[...].astype(jnp.bfloat16), wlin_ref[s],
                      preferred_element_type=jnp.float32) + blin_ref[s]  # (T*B, D_out)
        mu = jnp.mean(lin, axis=-1, keepdims=True)
        var = jnp.mean((lin - mu) ** 2, axis=-1, keepdims=True)          # biased (PyTorch LN)
        norm = (lin - mu) * lax.rsqrt(var + eps)
        # coeffs folded into gamma_eff / beta_eff; control term folded into beta_eff
        acc = acc + norm * geff_ref[s] + beff_ref[s]

    out_ref[...] = acc                                    # single store for the whole kernel


# ------------------------------ wrapper --------------------------------------


def dlds_forward(x, idx, params):
    """Pallas implementation of DLDSModel.forward(x, idx). Params are raw module weights."""
    coeffs, U, W_B = params["coeffs"], params["U"], params["W_B"]
    w_ih, w_hh = params["w_ih"], params["w_hh"]            # (S,2,4H,D), (S,2,4H,H)
    b_ih, b_hh = params["b_ih"], params["b_hh"]            # (S,2,4H)
    w_lin, b_lin = params["w_lin"], params["b_lin"]        # (S,D_out,2H), (S,D_out)
    gamma, beta = params["gamma"], params["beta"]          # (S,D_out)

    S = coeffs.shape[0]
    Bn, Tn, D = x.shape
    H = w_hh.shape[-1]
    D_out = w_lin.shape[1]
    mxu = jnp.bfloat16

    # ---- layout plumbing (tiny wrapper-side XLA) ----
    # time-major, flattened -> per-step slices inside the kernel are leading-axis slices
    x2d = jnp.swapaxes(x, 0, 1).reshape(Tn * Bn, D).astype(mxu)

    # input weights of both directions concatenated -> one hoisted projection matmul
    wih_t = jnp.swapaxes(w_ih, -1, -2)                                          # (S,2,D,4H)
    wih_cat = jnp.concatenate([wih_t[:, 0], wih_t[:, 1]], -1).astype(mxu)       # (S,D,8H)
    bias = b_ih + b_hh                                                          # (S,2,4H)
    bias_cat = jnp.concatenate([bias[:, 0], bias[:, 1]], -1)[:, None, :]
    bias_cat = bias_cat.astype(jnp.float32)                                     # (S,1,8H)

    # block-diagonal recurrent weights: [h_f | h_b] @ whh_bd drives both directions
    whh_t = jnp.swapaxes(w_hh, -1, -2)                                          # (S,2,H,4H)
    z = jnp.zeros((S, H, 4 * H), w_hh.dtype)
    whh_bd = jnp.concatenate(
        [jnp.concatenate([whh_t[:, 0], z], -1),
         jnp.concatenate([z, whh_t[:, 1]], -1)], axis=1).astype(mxu)            # (S,2H,8H)

    wlin_t = jnp.swapaxes(w_lin, -1, -2).astype(mxu)                            # (S,2H,D_out)
    blin = b_lin[:, None, :].astype(jnp.float32)                                # (S,1,D_out)

    # fold coeffs into the LayerNorm affine and the control term into its bias:
    #   coeff*(norm*gamma + beta) + bterm  ==  norm*(gamma*coeff) + (beta*coeff + bterm)
    coeff_sel = coeffs[:, idx].astype(jnp.float32)                              # (S,B)
    coeff_rows = jnp.tile(coeff_sel, (1, Tn))[:, :, None]                       # (S,T*B,1)
    bterm = (jax.nn.relu(U)[:, idx].T @ W_B.T).astype(jnp.float32)              # (B,D_out)
    bterm_rows = jnp.tile(bterm, (Tn, 1))                                       # (T*B,D_out)
    gamma_eff = coeff_rows * gamma[:, None, :].astype(jnp.float32)              # (S,T*B,D_out)
    beta_eff = coeff_rows * beta[:, None, :].astype(jnp.float32) + bterm_rows[None]

    kernel = functools.partial(dlds_kernel, hidden=H, batch=Bn, seq=Tn,
                               num_subdyn=S, eps=1e-5)

    out2d = pl.pallas_call(
        kernel,
        out_shape=jax.ShapeDtypeStruct((Tn * Bn, D_out), jnp.float32),
        # whole arrays in VMEM, no grid: everything fits with huge margin (few KB total,
        # far below even v7x's 64 MiB), and the S loop lives inside the kernel.
        in_specs=[pl.BlockSpec(memory_space=pltpu.MemorySpace.VMEM)] * 8,
        out_specs=pl.BlockSpec(memory_space=pltpu.MemorySpace.VMEM),
        scratch_shapes=[pltpu.VMEM((Tn * Bn, 2 * H), jnp.float32)],
    )(x2d, wih_cat, bias_cat, whh_bd, wlin_t, blin, gamma_eff, beta_eff)

    # (T*B, D_out) time-major -> (B, T, D_out)
    return out2d.reshape(Tn, Bn, D_out).transpose(1, 0, 2)


# --------------------------- pure-JAX reference ------------------------------


def dlds_reference(x, idx, params, mxu_dtype=jnp.float32):
    """Reference in the original per-subdyn / per-timestep formulation.

    mxu_dtype controls the precision of matmul operands (f32 accumulation), so the
    same function serves as the exact-math reference (float32) and as a numerics
    twin of the kernel's bf16 MXU path (bfloat16)."""
    coeffs, U, W_B = params["coeffs"], params["U"], params["W_B"]
    w_ih, w_hh = params["w_ih"], params["w_hh"]
    b_ih, b_hh = params["b_ih"], params["b_hh"]
    w_lin, b_lin = params["w_lin"], params["b_lin"]
    gamma, beta = params["gamma"], params["beta"]
    S = coeffs.shape[0]
    Bn, Tn, _ = x.shape
    H = w_hh.shape[-1]
    D_out = w_lin.shape[1]

    def mm(a, b):
        return jnp.dot(a.astype(mxu_dtype), b.astype(mxu_dtype),
                       preferred_element_type=jnp.float32)

    bias = b_ih + b_hh
    bterm = jax.nn.relu(U)[:, idx].T @ W_B.T                       # (B, D)
    out = jnp.zeros((Bn, Tn, D_out), jnp.float32)

    def cell(xt, h, c, wih, whh, b):
        g = mm(xt, wih.T) + b + mm(h, whh.T)
        i = jax.nn.sigmoid(g[:, :H]); f = jax.nn.sigmoid(g[:, H:2 * H])
        gg = jnp.tanh(g[:, 2 * H:3 * H]); o = jax.nn.sigmoid(g[:, 3 * H:])
        c = f * c + i * gg
        return o * jnp.tanh(c), c

    for s in range(S):
        h = jnp.zeros((Bn, H), jnp.float32); c = jnp.zeros((Bn, H), jnp.float32); hf = []
        for t in range(Tn):
            h, c = cell(x[:, t, :], h, c, w_ih[s, 0], w_hh[s, 0], bias[s, 0])
            hf.append(h)
        h = jnp.zeros((Bn, H), jnp.float32); c = jnp.zeros((Bn, H), jnp.float32)
        hb = [None] * Tn
        for t in range(Tn - 1, -1, -1):
            h, c = cell(x[:, t, :], h, c, w_ih[s, 1], w_hh[s, 1], bias[s, 1])
            hb[t] = h
        hcat = jnp.concatenate([jnp.stack(hf, 1), jnp.stack(hb, 1)], -1)   # (B,T,2H)
        lin = mm(hcat, w_lin[s].T) + b_lin[s]
        mu = lin.mean(-1, keepdims=True)
        var = ((lin - mu) ** 2).mean(-1, keepdims=True)
        y = (lin - mu) / jnp.sqrt(var + 1e-5) * gamma[s] + beta[s]
        out = out + coeffs[s, idx][:, None, None] * y + bterm[:, None, :]
    return out


# ------------------------------- main -----------------------------------------


if __name__ == "__main__":
    # Small shapes consistent with the module (output_size == input_size required by the
    # broadcast `+ self.B(...).unsqueeze(1)` in the original forward).
    batch, seq = 2, 8
    input_size = output_size = 16
    hidden_size = 32
    time_points = 100
    num_subdyn = 3
    control_size = 1

    key = jax.random.PRNGKey(0)
    ks = jax.random.split(key, 12)

    k_lstm = 1.0 / jnp.sqrt(jnp.float32(hidden_size))
    k_lin = 1.0 / jnp.sqrt(jnp.float32(2 * hidden_size))

    w_ih = jax.random.uniform(ks[0], (num_subdyn, 2, 4 * hidden_size, input_size),
                              minval=-k_lstm, maxval=k_lstm)
    w_hh = jax.random.uniform(ks[1], (num_subdyn, 2, 4 * hidden_size, hidden_size),
                              minval=-k_lstm, maxval=k_lstm)
    b_ih = jax.random.uniform(ks[2], (num_subdyn, 2, 4 * hidden_size),
                              minval=-k_lstm, maxval=k_lstm)
    b_hh = jax.random.uniform(ks[3], (num_subdyn, 2, 4 * hidden_size),
                              minval=-k_lstm, maxval=k_lstm)
    w_lin = jax.random.uniform(ks[4], (num_subdyn, output_size, 2 * hidden_size),
                               minval=-k_lin, maxval=k_lin)
    b_lin = jax.random.uniform(ks[5], (num_subdyn, output_size),
                               minval=-k_lin, maxval=k_lin)

    # SpectralLinear(control_size -> input_size, bias=False, sigma in [0,1]): clip the
    # singular values of a raw weight; forward semantics are just x @ W^T.
    W_B_raw = jax.random.normal(ks[6], (input_size, control_size))
    u_, s_, vt_ = jnp.linalg.svd(W_B_raw, full_matrices=False)
    W_B = (u_ * jnp.clip(s_, 0.0, 1.0)) @ vt_

    params = {
        # coeffs ~ np.random.rand (uniform [0,1)); kept in float32.
        "coeffs": jax.random.uniform(ks[7], (num_subdyn, time_points)),
        "U": jax.random.normal(ks[8], (control_size, time_points)),
        "W_B": W_B,
        "w_ih": w_ih, "w_hh": w_hh, "b_ih": b_ih, "b_hh": b_hh,
        "w_lin": w_lin, "b_lin": b_lin,
        "gamma": jnp.ones((num_subdyn, output_size)),     # LayerNorm default init
        "beta": jnp.zeros((num_subdyn, output_size)),
    }

    x = jax.random.normal(ks[9], (batch, seq, input_size))
    idx = jnp.array([5, 17], dtype=jnp.int32)             # one time index per batch element

    out = jax.block_until_ready(jax.jit(dlds_forward)(x, idx, params))
    assert out.shape == (batch, seq, output_size), out.shape

    # Tight check against a reference that mimics the kernel's bf16 MXU numerics.
    ref_bf16 = jax.block_until_ready(dlds_reference(x, idx, params, mxu_dtype=jnp.bfloat16))
    err_bf16 = float(jnp.max(jnp.abs(out - ref_bf16)))
    if err_bf16 > 2e-3:
        raise AssertionError(f"Pallas kernel mismatch vs bf16-numerics reference: {err_bf16}")

    # Loose sanity check against the pure-f32 reference (tolerance widened per review:
    # bf16 MXU operands drift through the recurrence and the LayerNorm normalization).
    ref_f32 = jax.block_until_ready(dlds_reference(x, idx, params, mxu_dtype=jnp.float32))
    err_f32 = float(jnp.max(jnp.abs(out - ref_f32)))
    if err_f32 > 1e-1:
        raise AssertionError(f"Pallas kernel drifted too far from f32 reference: {err_f32}")

    # TODO(synk): sparsity_mask() uses torch.quantile + in-place parameter mutation
    # (training-time utility, not part of forward) and is intentionally not ported.
    print("KERNEL_OK")
</pallas_src>

<mosaic_0001>
module attributes {stable_mosaic.version = 11 : i64} {
  func.func @dlds_kernel(%arg0: memref<16x16xbf16, #tpu.memory_space<vmem>>, %arg1: memref<3x16x256xbf16, #tpu.memory_space<vmem>>, %arg2: memref<3x1x256xf32, #tpu.memory_space<vmem>>, %arg3: memref<3x64x256xbf16, #tpu.memory_space<vmem>>, %arg4: memref<3x64x16xbf16, #tpu.memory_space<vmem>>, %arg5: memref<3x1x16xf32, #tpu.memory_space<vmem>>, %arg6: memref<3x16x16xf32, #tpu.memory_space<vmem>>, %arg7: memref<3x16x16xf32, #tpu.memory_space<vmem>>, %arg8: memref<16x16xf32, #tpu.memory_space<vmem>>, %arg9: memref<16x64xf32, #tpu.memory_space<vmem>>) attributes {dimension_semantics = [], scalar_prefetch = 0 : i64, scratch_operands = 1 : i64, tpu.core_type = #tpu.core_type<tc>} {
    %c0 = arith.constant 0 : index
    %c0_0 = arith.constant 0 : index
    %0 = vector.load %arg0[%c0, %c0_0] : memref<16x16xbf16, #tpu.memory_space<vmem>>, vector<16x16xbf16>
    %cst = arith.constant 0.000000e+00 : f32
    %1 = vector.broadcast %cst : f32 to vector<16x16xf32>
    %c0_1 = arith.constant 0 : index
    %c0_2 = arith.constant 0 : index
    %c0_3 = arith.constant 0 : index
    %2 = vector.load %arg1[%c0_1, %c0_2, %c0_3] : memref<3x16x256xbf16, #tpu.memory_space<vmem>>, vector<1x16x256xbf16>
    %3 = vector.shape_cast %2 : vector<1x16x256xbf16> to vector<16x256xbf16>
    %cst_4 = arith.constant dense<0.000000e+00> : vector<16x256xf32>
    %4 = tpu.matmul %0, %3, %cst_4 {dimension_numbers = #tpu.dot_dimension_numbers<[1], [0], [0], [1], [0, 0, 1, 1], [], []>} : vector<16x16xbf16>, vector<16x256xbf16>, vector<16x256xf32> -> vector<16x256xf32>
    %c0_5 = arith.constant 0 : index
    %c0_6 = arith.constant 0 : index
    %c0_7 = arith.constant 0 : index
    %5 = vector.load %arg2[%c0_5, %c0_6, %c0_7] : memref<3x1x256xf32, #tpu.memory_space<vmem>>, vector<1x1x256xf32>
    %6 = vector.shape_cast %5 : vector<1x1x256xf32> to vector<1x256xf32>
    %7 = vector.broadcast %6 : vector<1x256xf32> to vector<16x256xf32>
    %8 = arith.addf %4, %7 : vector<16x256xf32>
    %c0_8 = arith.constant 0 : index
    %c0_9 = arith.constant 0 : index
    %c0_10 = arith.constant 0 : index
    %9 = vector.load %arg3[%c0_8, %c0_9, %c0_10] : memref<3x64x256xbf16, #tpu.memory_space<vmem>>, vector<1x64x256xbf16>
    %10 = vector.shape_cast %9 : vector<1x64x256xbf16> to vector<64x256xbf16>
    %cst_11 = arith.constant 0.000000e+00 : f32
    %11 = vector.broadcast %cst_11 : f32 to vector<2x32xf32>
    %cst_12 = arith.constant 0.000000e+00 : f32
    %12 = vector.broadcast %cst_12 : f32 to vector<2x32xf32>
    %cst_13 = arith.constant 0.000000e+00 : f32
    %13 = vector.broadcast %cst_13 : f32 to vector<2x256xf32>
    %14 = vector.extract_strided_slice %8 {offsets = [0, 0], sizes = [2, 128], strides = [1, 1]} : vector<16x256xf32> to vector<2x128xf32>
    %15 = vector.extract_strided_slice %13 {offsets = [0, 0], sizes = [2, 128], strides = [1, 1]} : vector<2x256xf32> to vector<2x128xf32>
    %16 = arith.addf %14, %15 : vector<2x128xf32>
    %17 = vector.extract_strided_slice %8 {offsets = [14, 128], sizes = [2, 128], strides = [1, 1]} : vector<16x256xf32> to vector<2x128xf32>
    %18 = vector.extract_strided_slice %13 {offsets = [0, 128], sizes = [2, 128], strides = [1, 1]} : vector<2x256xf32> to vector<2x128xf32>
    %19 = arith.addf %17, %18 : vector<2x128xf32>
    %20 = vector.extract_strided_slice %16 {offsets = [0, 0], sizes = [2, 32], strides = [1, 1]} : vector<2x128xf32> to vector<2x32xf32>
    %21 = arith.negf %20 : vector<2x32xf32>
    %22 = math.exp %21 : vector<2x32xf32>
    %cst_14 = arith.constant 1.000000e+00 : f32
    %23 = vector.broadcast %cst_14 : f32 to vector<2x32xf32>
    %24 = arith.addf %23, %22 : vector<2x32xf32>
    %25 = arith.divf %23, %24 : vector<2x32xf32>
    %26 = vector.extract_strided_slice %16 {offsets = [0, 32], sizes = [2, 32], strides = [1, 1]} : vector<2x128xf32> to vector<2x32xf32>
    %27 = arith.negf %26 : vector<2x32xf32>
    %28 = math.exp %27 : vector<2x32xf32>
    %cst_15 = arith.constant 1.000000e+00 : f32
    %29 = vector.broadcast %cst_15 : f32 to vector<2x32xf32>
    %30 = arith.addf %29, %28 : vector<2x32xf32>
    %31 = arith.divf %29, %30 : vector<2x32xf32>
    %32 = vector.extract_strided_slice %16 {offsets = [0, 64], sizes = [2, 32], strides = [1, 1]} : vector<2x128xf32> to vector<2x32xf32>
    %33 = math.tanh %32 : vector<2x32xf32>
    %34 = vector.extract_strided_slice %16 {offsets = [0, 96], sizes = [2, 32], strides = [1, 1]} : vector<2x128xf32> to vector<2x32xf32>
    %35 = arith.negf %34 : vector<2x32xf32>
    %36 = math.exp %35 : vector<2x32xf32>
    %cst_16 = arith.constant 1.000000e+00 : f32
    %37 = vector.broadcast %cst_16 : f32 to vector<2x32xf32>
    %38 = arith.addf %37, %36 : vector<2x32xf32>
    %39 = arith.divf %37, %38 : vector<2x32xf32>
    %40 = arith.mulf %31, %11 : vector<2x32xf32>
    %41 = arith.mulf %25, %33 : vector<2x32xf32>
    %42 = arith.addf %40, %41 : vector<2x32xf32>
    %43 = math.tanh %42 : vector<2x32xf32>
    %44 = arith.mulf %39, %43 : vector<2x32xf32>
    %45 = vector.extract_strided_slice %19 {offsets = [0, 0], sizes = [2, 32], strides = [1, 1]} : vector<2x128xf32> to vector<2x32xf32>
    %46 = arith.negf %45 : vector<2x32xf32>
    %47 = math.exp %46 : vector<2x32xf32>
    %cst_17 = arith.constant 1.000000e+00 : f32
    %48 = vector.broadcast %cst_17 : f32 to vector<2x32xf32>
    %49 = arith.addf %48, %47 : vector<2x32xf32>
    %50 = arith.divf %48, %49 : vector<2x32xf32>
    %51 = vector.extract_strided_slice %19 {offsets = [0, 32], sizes = [2, 32], strides = [1, 1]} : vector<2x128xf32> to vector<2x32xf32>
    %52 = arith.negf %51 : vector<2x32xf32>
    %53 = math.exp %52 : vector<2x32xf32>
    %cst_18 = arith.constant 1.000000e+00 : f32
    %54 = vector.broadcast %cst_18 : f32 to vector<2x32xf32>
    %55 = arith.addf %54, %53 : vector<2x32xf32>
    %56 = arith.divf %54, %55 : vector<2x32xf32>
    %57 = vector.extract_strided_slice %19 {offsets = [0, 64], sizes = [2, 32], strides = [1, 1]} : vector<2x128xf32> to vector<2x32xf32>
    %58 = math.tanh %57 : vector<2x32xf32>
    %59 = vector.extract_strided_slice %19 {offsets = [0, 96], sizes = [2, 32], strides = [1, 1]} : vector<2x128xf32> to vector<2x32xf32>
    %60 = arith.negf %59 : vector<2x32xf32>
    %61 = math.exp %60 : vector<2x32xf32>
    %cst_19 = arith.constant 1.000000e+00 : f32
    %62 = vector.broadcast %cst_19 : f32 to vector<2x32xf32>
    %63 = arith.addf %62, %61 : vector<2x32xf32>
    %64 = arith.divf %62, %63 : vector<2x32xf32>
    %65 = arith.mulf %56, %12 : vector<2x32xf32>
    %66 = arith.mulf %50, %58 : vector<2x32xf32>
    %67 = arith.addf %65, %66 : vector<2x32xf32>
    %68 = math.tanh %67 : vector<2x32xf32>
    %69 = arith.mulf %64, %68 : vector<2x32xf32>
    %70 = tpu.concatenate %44, %69 in 1 : vector<2x32xf32>, vector<2x32xf32> -> vector<2x64xf32>
    %c0_20 = arith.constant 0 : index
    %c0_21 = arith.constant 0 : index
    %71 = vector.load %arg9[%c0_20, %c0_21] : memref<16x64xf32, #tpu.memory_space<vmem>>, vector<2x32xf32>
    tpu.vector_store %arg9[%c0_20, %c0_21], %44 {strides = array<i32>} : memref<16x64xf32, #tpu.memory_space<vmem>>, vector<2x32xf32>,
    %c14 = arith.constant 14 : index
    %c32 = arith.constant 32 : index
    %72 = vector.load %arg9[%c14, %c32] : memref<16x64xf32, #tpu.memory_space<vmem>>, vector<2x32xf32>
    tpu.vector_store %arg9[%c14, %c32], %69 {strides = array<i32>} : memref<16x64xf32, #tpu.memory_space<vmem>>, vector<2x32xf32>,
    %73 = arith.truncf %70 : vector<2x64xf32> to vector<2x64xbf16>
    %cst_22 = arith.constant dense<0.000000e+00> : vector<2x256xf32>
    %74 = tpu.matmul %73, %10, %cst_22 {dimension_numbers = #tpu.dot_dimension_numbers<[1], [0], [0], [1], [0, 0, 1, 1], [], []>} : vector<2x64xbf16>, vector<64x256xbf16>, vector<2x256xf32> -> vector<2x256xf32>
    %75 = vector.extract_strided_slice %8 {offsets = [2, 0], sizes = [2, 128], strides = [1, 1]} : vector<16x256xf32> to vector<2x128xf32>
    %76 = vector.extract_strided_slice %74 {offsets = [0, 0], sizes = [2, 128], strides = [1, 1]} : vector<2x256xf32> to vector<2x128xf32>
    %77 = arith.addf %75, %76 : vector<2x128xf32>
    %78 = vector.extract_strided_slice %8 {offsets = [12, 128], sizes = [2, 128], strides = [1, 1]} : vector<16x256xf32> to vector<2x128xf32>
    %79 = vector.extract_strided_slice %74 {offsets = [0, 128], sizes = [2, 128], strides = [1, 1]} : vector<2x256xf32> to vector<2x128xf32>
    %80 = arith.addf %78, %79 : vector<2x128xf32>
    %81 = vector.extract_strided_slice %77 {offsets = [0, 0], sizes = [2, 32], strides = [1, 1]} : vector<2x128xf32> to vector<2x32xf32>
    %82 = arith.negf %81 : vector<2x32xf32>
    %83 = math.exp %82 : vector<2x32xf32>
    %cst_23 = arith.constant 1.000000e+00 : f32
    %84 = vector.broadcast %cst_23 : f32 to vector<2x32xf32>
    %85 = arith.addf %84, %83 : vector<2x32xf32>
    %86 = arith.divf %84, %85 : vector<2x32xf32>
    %87 = vector.extract_strided_slice %77 {offsets = [0, 32], sizes = [2, 32], strides = [1, 1]} : vector<2x128xf32> to vector<2x32xf32>
    %88 = arith.negf %87 : vector<2x32xf32>
    %89 = math.exp %88 : vector<2x32xf32>
    %cst_24 = arith.constant 1.000000e+00 : f32
    %90 = vector.broadcast %cst_24 : f32 to vector<2x32xf32>
    %91 = arith.addf %90, %89 : vector<2x32xf32>
    %92 = arith.divf %90, %91 : vector<2x32xf32>
    %93 = vector.extract_strided_slice %77 {offsets = [0, 64], sizes = [2, 32], strides = [1, 1]} : vector<2x128xf32> to vector<2x32xf32>
    %94 = math.tanh %93 : vector<2x32xf32>
    %95 = vector.extract_strided_slice %77 {offsets = [0, 96], sizes = [2, 32], strides = [1, 1]} : vector<2x128xf32> to vector<2x32xf32>
    %96 = arith.negf %95 : vector<2x32xf32>
    %97 = math.exp %96 : vector<2x32xf32>
    %cst_25 = arith.constant 1.000000e+00 : f32
    %98 = vector.broadcast %cst_25 : f32 to vector<2x32xf32>
    %99 = arith.addf %98, %97 : vector<2x32xf32>
    %100 = arith.divf %98, %99 : vector<2x32xf32>
    %101 = arith.mulf %92, %42 : vector<2x32xf32>
    %102 = arith.mulf %86, %94 : vector<2x32xf32>
    %103 = arith.addf %101, %102 : vector<2x32xf32>
    %104 = math.tanh %103 : vector<2x32xf32>
    %105 = arith.mulf %100, %104 : vector<2x32xf32>
    %106 = vector.extract_strided_slice %80 {offsets = [0, 0], sizes = [2, 32], strides = [1, 1]} : vector<2x128xf32> to vector<2x32xf32>
    %107 = arith.negf %106 : vector<2x32xf32>
    %108 = math.exp %107 : vector<2x32xf32>
    %cst_26 = arith.constant 1.000000e+00 : f32
    %109 = vector.broadcast %cst_26 : f32 to vector<2x32xf32>
    %110 = arith.addf %109, %108 : vector<2x32xf32>
    %111 = arith.divf %109, %110 : vector<2x32xf32>
    %112 = vector.extract_strided_slice %80 {offsets = [0, 32], sizes = [2, 32], strides = [1, 1]} : vector<2x128xf32> to vector<2x32xf32>
    %113 = arith.negf %112 : vector<2x32xf32>
    %114 = math.exp %113 : vector<2x32xf32>
    %cst_27 = arith.constant 1.000000e+00 : f32
    %115 = vector.broadcast %cst_27 : f32 to vector<2x32xf32>
    %116 = arith.addf %115, %114 : vector<2x32xf32>
    %117 = arith.divf %115, %116 : vector<2x32xf32>
    %118 = vector.extract_strided_slice %80 {offsets = [0, 64], sizes = [2, 32], strides = [1, 1]} : vector<2x128xf32> to vector<2x32xf32>
    %119 = math.tanh %118 : vector<2x32xf32>
    %120 = vector.extract_strided_slice %80 {offsets = [0, 96], sizes = [2, 32], strides = [1, 1]} : vector<2x128xf32> to vector<2x32xf32>
    %121 = arith.negf %120 : vector<2x32xf32>
    %122 = math.exp %121 : vector<2x32xf32>
    %cst_28 = arith.constant 1.000000e+00 : f32
    %123 = vector.broadcast %cst_28 : f32 to vector<2x32xf32>
    %124 = arith.addf %123, %122 : vector<2x32xf32>
    %125 = arith.divf %123, %124 : vector<2x32xf32>
    %126 = arith.mulf %117, %67 : vector<2x32xf32>
    %127 = arith.mulf %111, %119 : vector<2x32xf32>
    %128 = arith.addf %126, %127 : vector<2x32xf32>
    %129 = math.tanh %128 : vector<2x32xf32>
    %130 = arith.mulf %125, %129 : vector<2x32xf32>
    %131 = tpu.concatenate %105, %130 in 1 : vector<2x32xf32>, vector<2x32xf32> -> vector<2x64xf32>
    %c2 = arith.constant 2 : index
    %c0_29 = arith.constant 0 : index
    %132 = vector.load %arg9[%c2, %c0_29] : memref<16x64xf32, #tpu.memory_space<vmem>>, vector<2x32xf32>
    tpu.vector_store %arg9[%c2, %c0_29], %105 {strides = array<i32>} : memref<16x64xf32, #tpu.memory_space<vmem>>, vector<2x32xf32>,
    %c12 = arith.constant 12 : index
    %c32_30 = arith.constant 32 : index
    %133 = vector.load %arg9[%c12, %c32_30] : memref<16x64xf32, #tpu.memory_space<vmem>>, vector<2x32xf32>
    tpu.vector_store %arg9[%c12, %c32_30], %130 {strides = array<i32>} : memref<16x64xf32, #tpu.memory_space<vmem>>, vector<2x32xf32>,
    %134 = arith.truncf %131 : vector<2x64xf32> to vector<2x64xbf16>
    %cst_31 = arith.constant dense<0.000000e+00> : vector<2x256xf32>
    %135 = tpu.matmul %134, %10, %cst_31 {dimension_numbers = #tpu.dot_dimension_numbers<[1], [0], [0], [1], [0, 0, 1, 1], [], []>} : vector<2x64xbf16>, vector<64x256xbf16>, vector<2x256xf32> -> vector<2x256xf32>
    %136 = vector.extract_strided_slice %8 {offsets = [4, 0], sizes = [2, 128], strides = [1, 1]} : vector<16x256xf32> to vector<2x128xf32>
    %137 = vector.extract_strided_slice %135 {offsets = [0, 0], sizes = [2, 128], strides = [1, 1]} : vector<2x256xf32> to vector<2x128xf32>
    %138 = arith.addf %136, %137 : vector<2x128xf32>
    %139 = vector.extract_strided_slice %8 {offsets = [10, 128], sizes = [2, 128], strides = [1, 1]} : vector<16x256xf32> to vector<2x128xf32>
    %140 = vector.extract_strided_slice %135 {offsets = [0, 128], sizes = [2, 128], strides = [1, 1]} : vector<2x256xf32> to vector<2x128xf32>
    %141 = arith.addf %139, %140 : vector<2x128xf32>
    %142 = vector.extract_strided_slice %138 {offsets = [0, 0], sizes = [2, 32], strides = [1, 1]} : vector<2x128xf32> to vector<2x32xf32>
    %143 = arith.negf %142 : vector<2x32xf32>
    %144 = math.exp %143 : vector<2x32xf32>
    %cst_32 = arith.constant 1.000000e+00 : f32
    %145 = vector.broadcast %cst_32 : f32 to vector<2x32xf32>
    %146 = arith.addf %145, %144 : vector<2x32xf32>
    %147 = arith.divf %145, %146 : vector<2x32xf32>
    %148 = vector.extract_strided_slice %138 {offsets = [0, 32], sizes = [2, 32], strides = [1, 1]} : vector<2x128xf32> to vector<2x32xf32>
    %149 = arith.negf %148 : vector<2x32xf32>
    %150 = math.exp %149 : vector<2x32xf32>
    %cst_33 = arith.constant 1.000000e+00 : f32
    %151 = vector.broadcast %cst_33 : f32 to vector<2x32xf32>
    %152 = arith.addf %151, %150 : vector<2x32xf32>
    %153 = arith.divf %151, %152 : vector<2x32xf32>
    %154 = vector.extract_strided_slice %138 {offsets = [0, 64], sizes = [2, 32], strides = [1, 1]} : vector<2x128xf32> to vector<2x32xf32>
    %155 = math.tanh %154 : vector<2x32xf32>
    %156 = vector.extract_strided_slice %138 {offsets = [0, 96], sizes = [2, 32], strides = [1, 1]} : vector<2x128xf32> to vector<2x32xf32>
    %157 = arith.negf %156 : vector<2x32xf32>
    %158 = math.exp %157 : vector<2x32xf32>
    %cst_34 = arith.constant 1.000000e+00 : f32
    %159 = vector.broadcast %cst_34 : f32 to vector<2x32xf32>
    %160 = arith.addf %159, %158 : vector<2x32xf32>
    %161 = arith.divf %159, %160 : vector<2x32xf32>
    %162 = arith.mulf %153, %103 : vector<2x32xf32>
    %163 = arith.mulf %147, %155 : vector<2x32xf32>
    %164 = arith.addf %162, %163 : vector<2x32xf32>
    %165 = math.tanh %164 : vector<2x32xf32>
    %166 = arith.mulf %161, %165 : vector<2x32xf32>
    %167 = vector.extract_strided_slice %141 {offsets = [0, 0], sizes = [2, 32], strides = [1, 1]} : vector<2x128xf32> to vector<2x32xf32>
    %168 = arith.negf %167 : vector<2x32xf32>
    %169 = math.exp %168 : vector<2x32xf32>
    %cst_35 = arith.constant 1.000000e+00 : f32
    %170 = vector.broadcast %cst_35 : f32 to vector<2x32xf32>
    %171 = arith.addf %170, %169 : vector<2x32xf32>
    %172 = arith.divf %170, %171 : vector<2x32xf32>
    %173 = vector.extract_strided_slice %141 {offsets = [0, 32], sizes = [2, 32], strides = [1, 1]} : vector<2x128xf32> to vector<2x32xf32>
    %174 = arith.negf %173 : vector<2x32xf32>
    %175 = math.exp %174 : vector<2x32xf32>
    %cst_36 = arith.constant 1.000000e+00 : f32
    %176 = vector.broadcast %cst_36 : f32 to vector<2x32xf32>
    %177 = arith.addf %176, %175 : vector<2x32xf32>
    %178 = arith.divf %176, %177 : vector<2x32xf32>
    %179 = vector.extract_strided_slice %141 {offsets = [0, 64], sizes = [2, 32], strides = [1, 1]} : vector<2x128xf32> to vector<2x32xf32>
    %180 = math.tanh %179 : vector<2x32xf32>
    %181 = vector.extract_strided_slice %141 {offsets = [0, 96], sizes = [2, 32], strides = [1, 1]} : vector<2x128xf32> to vector<2x32xf32>
    %182 = arith.negf %181 : vector<2x32xf32>
    %183 = math.exp %182 : vector<2x32xf32>
    %cst_37 = arith.constant 1.000000e+00 : f32
    %184 = vector.broadcast %cst_37 : f32 to vector<2x32xf32>
    %185 = arith.addf %184, %183 : vector<2x32xf32>
    %186 = arith.divf %184, %185 : vector<2x32xf32>
    %187 = arith.mulf %178, %128 : vector<2x32xf32>
    %188 = arith.mulf %172, %180 : vector<2x32xf32>
    %189 = arith.addf %187, %188 : vector<2x32xf32>
    %190 = math.tanh %189 : vector<2x32xf32>
    %191 = arith.mulf %186, %190 : vector<2x32xf32>
    %192 = tpu.concatenate %166, %191 in 1 : vector<2x32xf32>, vector<2x32xf32> -> vector<2x64xf32>
    %c4 = arith.constant 4 : index
    %c0_38 = arith.constant 0 : index
    %193 = vector.load %arg9[%c4, %c0_38] : memref<16x64xf32, #tpu.memory_space<vmem>>, vector<2x32xf32>
    tpu.vector_store %arg9[%c4, %c0_38], %166 {strides = array<i32>} : memref<16x64xf32, #tpu.memory_space<vmem>>, vector<2x32xf32>,
    %c10 = arith.constant 10 : index
    %c32_39 = arith.constant 32 : index
    %194 = vector.load %arg9[%c10, %c32_39] : memref<16x64xf32, #tpu.memory_space<vmem>>, vector<2x32xf32>
    tpu.vector_store %arg9[%c10, %c32_39], %191 {strides = array<i32>} : memref<16x64xf32, #tpu.memory_space<vmem>>, vector<2x32xf32>,
    %195 = arith.truncf %192 : vector<2x64xf32> to vector<2x64xbf16>
    %cst_40 = arith.constant dense<0.000000e+00> : vector<2x256xf32>
    %196 = tpu.matmul %195, %10, %cst_40 {dimension_numbers = #tpu.dot_dimension_numbers<[1], [0], [0], [1], [0, 0, 1, 1], [], []>} : vector<2x64xbf16>, vector<64x256xbf16>, vector<2x256xf32> -> vector<2x256xf32>
    %197 = vector.extract_strided_slice %8 {offsets = [6, 0], sizes = [2, 128], strides = [1, 1]} : vector<16x256xf32> to vector<2x128xf32>
    %198 = vector.extract_strided_slice %196 {offsets = [0, 0], sizes = [2, 128], strides = [1, 1]} : vector<2x256xf32> to vector<2x128xf32>
    %199 = arith.addf %197, %198 : vector<2x128xf32>
    %200 = vector.extract_strided_slice %8 {offsets = [8, 128], sizes = [2, 128], strides = [1, 1]} : vector<16x256xf32> to vector<2x128xf32>
    %201 = vector.extract_strided_slice %196 {offsets = [0, 128], sizes = [2, 128], strides = [1, 1]} : vector<2x256xf32> to vector<2x128xf32>
    %202 = arith.addf %200, %201 : vector<2x128xf32>
    %203 = vector.extract_strided_slice %199 {offsets = [0, 0], sizes = [2, 32], strides = [1, 1]} : vector<2x128xf32> to vector<2x32xf32>
    %204 = arith.negf %203 : vector<2x32xf32>
    %205 = math.exp %204 : vector<2x32xf32>
    %cst_41 = arith.constant 1.000000e+00 : f32
    %206 = vector.broadcast %cst_41 : f32 to vector<2x32xf32>
    %207 = arith.addf %206, %205 : vector<2x32xf32>
    %208 = arith.divf %206, %207 : vector<2x32xf32>
    %209 = vector.extract_strided_slice %199 {offsets = [0, 32], sizes = [2, 32], strides = [1, 1]} : vector<2x128xf32> to vector<2x32xf32>
    %210 = arith.negf %209 : vector<2x32xf32>
    %211 = math.exp %210 : vector<2x32xf32>
    %cst_42 = arith.constant 1.000000e+00 : f32
    %212 = vector.broadcast %cst_42 : f32 to vector<2x32xf32>
    %213 = arith.addf %212, %211 : vector<2x32xf32>
    %214 = arith.divf %212, %213 : vector<2x32xf32>
    %215 = vector.extract_strided_slice %199 {offsets = [0, 64], sizes = [2, 32], strides = [1, 1]} : vector<2x128xf32> to vector<2x32xf32>
    %216 = math.tanh %215 : vector<2x32xf32>
    %217 = vector.extract_strided_slice %199 {offsets = [0, 96], sizes = [2, 32], strides = [1, 1]} : vector<2x128xf32> to vector<2x32xf32>
    %218 = arith.negf %217 : vector<2x32xf32>
    %219 = math.exp %218 : vector<2x32xf32>
    %cst_43 = arith.constant 1.000000e+00 : f32
    %220 = vector.broadcast %cst_43 : f32 to vector<2x32xf32>
    %221 = arith.addf %220, %219 : vector<2x32xf32>
    %222 = arith.divf %220, %221 : vector<2x32xf32>
    %223 = arith.mulf %214, %164 : vector<2x32xf32>
    %224 = arith.mulf %208, %216 : vector<2x32xf32>
    %225 = arith.addf %223, %224 : vector<2x32xf32>
    %226 = math.tanh %225 : vector<2x32xf32>
    %227 = arith.mulf %222, %226 : vector<2x32xf32>
    %228 = vector.extract_strided_slice %202 {offsets = [0, 0], sizes = [2, 32], strides = [1, 1]} : vector<2x128xf32> to vector<2x32xf32>
    %229 = arith.negf %228 : vector<2x32xf32>
    %230 = math.exp %229 : vector<2x32xf32>
    %cst_44 = arith.constant 1.000000e+00 : f32
    %231 = vector.broadcast %cst_44 : f32 to vector<2x32xf32>
    %232 = arith.addf %231, %230 : vector<2x32xf32>
    %233 = arith.divf %231, %232 : vector<2x32xf32>
    %234 = vector.extract_strided_slice %202 {offsets = [0, 32], sizes = [2, 32], strides = [1, 1]} : vector<2x128xf32> to vector<2x32xf32>
    %235 = arith.negf %234 : vector<2x32xf32>
    %236 = math.exp %235 : vector<2x32xf32>
    %cst_45 = arith.constant 1.000000e+00 : f32
    %237 = vector.broadcast %cst_45 : f32 to vector<2x32xf32>
    %238 = arith.addf %237, %236 : vector<2x32xf32>
    %239 = arith.divf %237, %238 : vector<2x32xf32>
    %240 = vector.extract_strided_slice %202 {offsets = [0, 64], sizes = [2, 32], strides = [1, 1]} : vector<2x128xf32> to vector<2x32xf32>
    %241 = math.tanh %240 : vector<2x32xf32>
    %242 = vector.extract_strided_slice %202 {offsets = [0, 96], sizes = [2, 32], strides = [1, 1]} : vector<2x128xf32> to vector<2x32xf32>
    %243 = arith.negf %242 : vector<2x32xf32>
    %244 = math.exp %243 : vector<2x32xf32>
    %cst_46 = arith.constant 1.000000e+00 : f32
    %245 = vector.broadcast %cst_46 : f32 to vector<2x32xf32>
    %246 = arith.addf %245, %244 : vector<2x32xf32>
    %247 = arith.divf %245, %246 : vector<2x32xf32>
    %248 = arith.mulf %239, %189 : vector<2x32xf32>
    %249 = arith.mulf %233, %241 : vector<2x32xf32>
    %250 = arith.addf %248, %249 : vector<2x32xf32>
    %251 = math.tanh %250 : vector<2x32xf32>
    %252 = arith.mulf %247, %251 : vector<2x32xf32>
    %253 = tpu.concatenate %227, %252 in 1 : vector<2x32xf32>, vector<2x32xf32> -> vector<2x64xf32>
    %c6 = arith.constant 6 : index
    %c0_47 = arith.constant 0 : index
    %254 = vector.load %arg9[%c6, %c0_47] : memref<16x64xf32, #tpu.memory_space<vmem>>, vector<2x32xf32>
    tpu.vector_store %arg9[%c6, %c0_47], %227 {strides = array<i32>} : memref<16x64xf32, #tpu.memory_space<vmem>>, vector<2x32xf32>,
    %c8 = arith.constant 8 : index
    %c32_48 = arith.constant 32 : index
    %255 = vector.load %arg9[%c8, %c32_48] : memref<16x64xf32, #tpu.memory_space<vmem>>, vector<2x32xf32>
    tpu.vector_store %arg9[%c8, %c32_48], %252 {strides = array<i32>} : memref<16x64xf32, #tpu.memory_space<vmem>>, vector<2x32xf32>,
    %256 = arith.truncf %253 : vector<2x64xf32> to vector<2x64xbf16>
    %cst_49 = arith.constant dense<0.000000e+00> : vector<2x256xf32>
    %257 = tpu.matmul %256, %10, %cst_49 {dimension_numbers = #tpu.dot_dimension_numbers<[1], [0], [0], [1], [0, 0, 1, 1], [], []>} : vector<2x64xbf16>, vector<64x256xbf16>, vector<2x256xf32> -> vector<2x256xf32>
    %258 = vector.extract_strided_slice %8 {offsets = [8, 0], sizes = [2, 128], strides = [1, 1]} : vector<16x256xf32> to vector<2x128xf32>
    %259 = vector.extract_strided_slice %257 {offsets = [0, 0], sizes = [2, 128], strides = [1, 1]} : vector<2x256xf32> to vector<2x128xf32>
    %260 = arith.addf %258, %259 : vector<2x128xf32>
    %261 = vector.extract_strided_slice %8 {offsets = [6, 128], sizes = [2, 128], strides = [1, 1]} : vector<16x256xf32> to vector<2x128xf32>
    %262 = vector.extract_strided_slice %257 {offsets = [0, 128], sizes = [2, 128], strides = [1, 1]} : vector<2x256xf32> to vector<2x128xf32>
    %263 = arith.addf %261, %262 : vector<2x128xf32>
    %264 = vector.extract_strided_slice %260 {offsets = [0, 0], sizes = [2, 32], strides = [1, 1]} : vector<2x128xf32> to vector<2x32xf32>
    %265 = arith.negf %264 : vector<2x32xf32>
    %266 = math.exp %265 : vector<2x32xf32>
    %cst_50 = arith.constant 1.000000e+00 : f32
    %267 = vector.broadcast %cst_50 : f32 to vector<2x32xf32>
    %268 = arith.addf %267, %266 : vector<2x32xf32>
    %269 = arith.divf %267, %268 : vector<2x32xf32>
    %270 = vector.extract_strided_slice %260 {offsets = [0, 32], sizes = [2, 32], strides = [1, 1]} : vector<2x128xf32> to vector<2x32xf32>
    %271 = arith.negf %270 : vector<2x32xf32>
    %272 = math.exp %271 : vector<2x32xf32>
    %cst_51 = arith.constant 1.000000e+00 : f32
    %273 = vector.broadcast %cst_51 : f32 to vector<2x32xf32>
    %274 = arith.addf %273, %272 : vector<2x32xf32>
    %275 = arith.divf %273, %274 : vector<2x32xf32>
    %276 = vector.extract_strided_slice %260 {offsets = [0, 64], sizes = [2, 32], strides = [1, 1]} : vector<2x128xf32> to vector<2x32xf32>
    %277 = math.tanh %276 : vector<2x32xf32>
    %278 = vector.extract_strided_slice %260 {offsets = [0, 96], sizes = [2, 32], strides = [1, 1]} : vector<2x128xf32> to vector<2x32xf32>
    %279 = arith.negf %278 : vector<2x32xf32>
    %280 = math.exp %279 : vector<2x32xf32>
    %cst_52 = arith.constant 1.000000e+00 : f32
    %281 = vector.broadcast %cst_52 : f32 to vector<2x32xf32>
    %282 = arith.addf %281, %280 : vector<2x32xf32>
    %283 = arith.divf %281, %282 : vector<2x32xf32>
    %284 = arith.mulf %275, %225 : vector<2x32xf32>
    %285 = arith.mulf %269, %277 : vector<2x32xf32>
    %286 = arith.addf %284, %285 : vector<2x32xf32>
    %287 = math.tanh %286 : vector<2x32xf32>
    %288 = arith.mulf %283, %287 : vector<2x32xf32>
    %289 = vector.extract_strided_slice %263 {offsets = [0, 0], sizes = [2, 32], strides = [1, 1]} : vector<2x128xf32> to vector<2x32xf32>
    %290 = arith.negf %289 : vector<2x32xf32>
    %291 = math.exp %290 : vector<2x32xf32>
    %cst_53 = arith.constant 1.000000e+00 : f32
    %292 = vector.broadcast %cst_53 : f32 to vector<2x32xf32>
    %293 = arith.addf %292, %291 : vector<2x32xf32>
    %294 = arith.divf %292, %293 : vector<2x32xf32>
    %295 = vector.extract_strided_slice %263 {offsets = [0, 32], sizes = [2, 32], strides = [1, 1]} : vector<2x128xf32> to vector<2x32xf32>
    %296 = arith.negf %295 : vector<2x32xf32>
    %297 = math.exp %296 : vector<2x32xf32>
    %cst_54 = arith.constant 1.000000e+00 : f32
    %298 = vector.broadcast %cst_54 : f32 to vector<2x32xf32>
    %299 = arith.addf %298, %297 : vector<2x32xf32>
    %300 = arith.divf %298, %299 : vector<2x32xf32>
    %301 = vector.extract_strided_slice %263 {offsets = [0, 64], sizes = [2, 32], strides = [1, 1]} : vector<2x128xf32> to vector<2x32xf32>
    %302 = math.tanh %301 : vector<2x32xf32>
    %303 = vector.extract_strided_slice %263 {offsets = [0, 96], sizes = [2, 32], strides = [1, 1]} : vector<2x128xf32> to vector<2x32xf32>
    %304 = arith.negf %303 : vector<2x32xf32>
    %305 = math.exp %304 : vector<2x32xf32>
    %cst_55 = arith.constant 1.000000e+00 : f32
    %306 = vector.broadcast %cst_55 : f32 to vector<2x32xf32>
    %307 = arith.addf %306, %305 : vector<2x32xf32>
    %308 = arith.divf %306, %307 : vector<2x32xf32>
    %309 = arith.mulf %300, %250 : vector<2x32xf32>
    %310 = arith.mulf %294, %302 : vector<2x32xf32>
    %311 = arith.addf %309, %310 : vector<2x32xf32>
    %312 = math.tanh %311 : vector<2x32xf32>
    %313 = arith.mulf %308, %312 : vector<2x32xf32>
    %314 = tpu.concatenate %288, %313 in 1 : vector<2x32xf32>, vector<2x32xf32> -> vector<2x64xf32>
    %c8_56 = arith.constant 8 : index
    %c0_57 = arith.constant 0 : index
    %315 = vector.load %arg9[%c8_56, %c0_57] : memref<16x64xf32, #tpu.memory_space<vmem>>, vector<2x32xf32>
    tpu.vector_store %arg9[%c8_56, %c0_57], %288 {strides = array<i32>} : memref<16x64xf32, #tpu.memory_space<vmem>>, vector<2x32xf32>,
    %c6_58 = arith.constant 6 : index
    %c32_59 = arith.constant 32 : index
    %316 = vector.load %arg9[%c6_58, %c32_59] : memref<16x64xf32, #tpu.memory_space<vmem>>, vector<2x32xf32>
    tpu.vector_store %arg9[%c6_58, %c32_59], %313 {strides = array<i32>} : memref<16x64xf32, #tpu.memory_space<vmem>>, vector<2x32xf32>,
    %317 = arith.truncf %314 : vector<2x64xf32> to vector<2x64xbf16>
    %cst_60 = arith.constant dense<0.000000e+00> : vector<2x256xf32>
    %318 = tpu.matmul %317, %10, %cst_60 {dimension_numbers = #tpu.dot_dimension_numbers<[1], [0], [0], [1], [0, 0, 1, 1], [], []>} : vector<2x64xbf16>, vector<64x256xbf16>, vector<2x256xf32> -> vector<2x256xf32>
    %319 = vector.extract_strided_slice %8 {offsets = [10, 0], sizes = [2, 128], strides = [1, 1]} : vector<16x256xf32> to vector<2x128xf32>
    %320 = vector.extract_strided_slice %318 {offsets = [0, 0], sizes = [2, 128], strides = [1, 1]} : vector<2x256xf32> to vector<2x128xf32>
    %321 = arith.addf %319, %320 : vector<2x128xf32>
    %322 = vector.extract_strided_slice %8 {offsets = [4, 128], sizes = [2, 128], strides = [1, 1]} : vector<16x256xf32> to vector<2x128xf32>
    %323 = vector.extract_strided_slice %318 {offsets = [0, 128], sizes = [2, 128], strides = [1, 1]} : vector<2x256xf32> to vector<2x128xf32>
    %324 = arith.addf %322, %323 : vector<2x128xf32>
    %325 = vector.extract_strided_slice %321 {offsets = [0, 0], sizes = [2, 32], strides = [1, 1]} : vector<2x128xf32> to vector<2x32xf32>
    %326 = arith.negf %325 : vector<2x32xf32>
    %327 = math.exp %326 : vector<2x32xf32>
    %cst_61 = arith.constant 1.000000e+00 : f32
    %328 = vector.broadcast %cst_61 : f32 to vector<2x32xf32>
    %329 = arith.addf %328, %327 : vector<2x32xf32>
    %330 = arith.divf %328, %329 : vector<2x32xf32>
    %331 = vector.extract_strided_slice %321 {offsets = [0, 32], sizes = [2, 32], strides = [1, 1]} : vector<2x128xf32> to vector<2x32xf32>
    %332 = arith.negf %331 : vector<2x32xf32>
    %333 = math.exp %332 : vector<2x32xf32>
    %cst_62 = arith.constant 1.000000e+00 : f32
    %334 = vector.broadcast %cst_62 : f32 to vector<2x32xf32>
    %335 = arith.addf %334, %333 : vector<2x32xf32>
    %336 = arith.divf %334, %335 : vector<2x32xf32>
    %337 = vector.extract_strided_slice %321 {offsets = [0, 64], sizes = [2, 32], strides = [1, 1]} : vector<2x128xf32> to vector<2x32xf32>
    %338 = math.tanh %337 : vector<2x32xf32>
    %339 = vector.extract_strided_slice %321 {offsets = [0, 96], sizes = [2, 32], strides = [1, 1]} : vector<2x128xf32> to vector<2x32xf32>
    %340 = arith.negf %339 : vector<2x32xf32>
    %341 = math.exp %340 : vector<2x32xf32>
    %cst_63 = arith.constant 1.000000e+00 : f32
    %342 = vector.broadcast %cst_63 : f32 to vector<2x32xf32>
    %343 = arith.addf %342, %341 : vector<2x32xf32>
    %344 = arith.divf %342, %343 : vector<2x32xf32>
    %345 = arith.mulf %336, %286 : vector<2x32xf32>
    %346 = arith.mulf %330, %338 : vector<2x32xf32>
    %347 = arith.addf %345, %346 : vector<2x32xf32>
    %348 = math.tanh %347 : vector<2x32xf32>
    %349 = arith.mulf %344, %348 : vector<2x32xf32>
    %350 = vector.extract_strided_slice %324 {offsets = [0, 0], sizes = [2, 32], strides = [1, 1]} : vector<2x128xf32> to vector<2x32xf32>
    %351 = arith.negf %350 : vector<2x32xf32>
    %352 = math.exp %351 : vector<2x32xf32>
    %cst_64 = arith.constant 1.000000e+00 : f32
    %353 = vector.broadcast %cst_64 : f32 to vector<2x32xf32>
    %354 = arith.addf %353, %352 : vector<2x32xf32>
    %355 = arith.divf %353, %354 : vector<2x32xf32>
    %356 = vector.extract_strided_slice %324 {offsets = [0, 32], sizes = [2, 32], strides = [1, 1]} : vector<2x128xf32> to vector<2x32xf32>
    %357 = arith.negf %356 : vector<2x32xf32>
    %358 = math.exp %357 : vector<2x32xf32>
    %cst_65 = arith.constant 1.000000e+00 : f32
    %359 = vector.broadcast %cst_65 : f32 to vector<2x32xf32>
    %360 = arith.addf %359, %358 : vector<2x32xf32>
    %361 = arith.divf %359, %360 : vector<2x32xf32>
    %362 = vector.extract_strided_slice %324 {offsets = [0, 64], sizes = [2, 32], strides = [1, 1]} : vector<2x128xf32> to vector<2x32xf32>
    %363 = math.tanh %362 : vector<2x32xf32>
    %364 = vector.extract_strided_slice %324 {offsets = [0, 96], sizes = [2, 32], strides = [1, 1]} : vector<2x128xf32> to vector<2x32xf32>
    %365 = arith.negf %364 : vector<2x32xf32>
    %366 = math.exp %365 : vector<2x32xf32>
    %cst_66 = arith.constant 1.000000e+00 : f32
    %367 = vector.broadcast %cst_66 : f32 to vector<2x32xf32>
    %368 = arith.addf %367, %366 : vector<2x32xf32>
    %369 = arith.divf %367, %368 : vector<2x32xf32>
    %370 = arith.mulf %361, %311 : vector<2x32xf32>
    %371 = arith.mulf %355, %363 : vector<2x32xf32>
    %372 = arith.addf %370, %371 : vector<2x32xf32>
    %373 = math.tanh %372 : vector<2x32xf32>
    %374 = arith.mulf %369, %373 : vector<2x32xf32>
    %375 = tpu.concatenate %349, %374 in 1 : vector<2x32xf32>, vector<2x32xf32> -> vector<2x64xf32>
    %c10_67 = arith.constant 10 : index
    %c0_68 = arith.constant 0 : index
    %376 = vector.load %arg9[%c10_67, %c0_68] : memref<16x64xf32, #tpu.memory_space<vmem>>, vector<2x32xf32>
    tpu.vector_store %arg9[%c10_67, %c0_68], %349 {strides = array<i32>} : memref<16x64xf32, #tpu.memory_space<vmem>>, vector<2x32xf32>,
    %c4_69 = arith.constant 4 : index
    %c32_70 = arith.constant 32 : index
    %377 = vector.load %arg9[%c4_69, %c32_70] : memref<16x64xf32, #tpu.memory_space<vmem>>, vector<2x32xf32>
    tpu.vector_store %arg9[%c4_69, %c32_70], %374 {strides = array<i32>} : memref<16x64xf32, #tpu.memory_space<vmem>>, vector<2x32xf32>,
    %378 = arith.truncf %375 : vector<2x64xf32> to vector<2x64xbf16>
    %cst_71 = arith.constant dense<0.000000e+00> : vector<2x256xf32>
    %379 = tpu.matmul %378, %10, %cst_71 {dimension_numbers = #tpu.dot_dimension_numbers<[1], [0], [0], [1], [0, 0, 1, 1], [], []>} : vector<2x64xbf16>, vector<64x256xbf16>, vector<2x256xf32> -> vector<2x256xf32>
    %380 = vector.extract_strided_slice %8 {offsets = [12, 0], sizes = [2, 128], strides = [1, 1]} : vector<16x256xf32> to vector<2x128xf32>
    %381 = vector.extract_strided_slice %379 {offsets = [0, 0], sizes = [2, 128], strides = [1, 1]} : vector<2x256xf32> to vector<2x128xf32>
    %382 = arith.addf %380, %381 : vector<2x128xf32>
    %383 = vector.extract_strided_slice %8 {offsets = [2, 128], sizes = [2, 128], strides = [1, 1]} : vector<16x256xf32> to vector<2x128xf32>
    %384 = vector.extract_strided_slice %379 {offsets = [0, 128], sizes = [2, 128], strides = [1, 1]} : vector<2x256xf32> to vector<2x128xf32>
    %385 = arith.addf %383, %384 : vector<2x128xf32>
    %386 = vector.extract_strided_slice %382 {offsets = [0, 0], sizes = [2, 32], strides = [1, 1]} : vector<2x128xf32> to vector<2x32xf32>
    %387 = arith.negf %386 : vector<2x32xf32>
    %388 = math.exp %387 : vector<2x32xf32>
    %cst_72 = arith.constant 1.000000e+00 : f32
    %389 = vector.broadcast %cst_72 : f32 to vector<2x32xf32>
    %390 = arith.addf %389, %388 : vector<2x32xf32>
    %391 = arith.divf %389, %390 : vector<2x32xf32>
    %392 = vector.extract_strided_slice %382 {offsets = [0, 32], sizes = [2, 32], strides = [1, 1]} : vector<2x128xf32> to vector<2x32xf32>
    %393 = arith.negf %392 : vector<2x32xf32>
    %394 = math.exp %393 : vector<2x32xf32>
    %cst_73 = arith.constant 1.000000e+00 : f32
    %395 = vector.broadcast %cst_73 : f32 to vector<2x32xf32>
    %396 = arith.addf %395, %394 : vector<2x32xf32>
    %397 = arith.divf %395, %396 : vector<2x32xf32>
    %398 = vector.extract_strided_slice %382 {offsets = [0, 64], sizes = [2, 32], strides = [1, 1]} : vector<2x128xf32> to vector<2x32xf32>
    %399 = math.tanh %398 : vector<2x32xf32>
    %400 = vector.extract_strided_slice %382 {offsets = [0, 96], sizes = [2, 32], strides = [1, 1]} : vector<2x128xf32> to vector<2x32xf32>
    %401 = arith.negf %400 : vector<2x32xf32>
    %402 = math.exp %401 : vector<2x32xf32>
    %cst_74 = arith.constant 1.000000e+00 : f32
    %403 = vector.broadcast %cst_74 : f32 to vector<2x32xf32>
    %404 = arith.addf %403, %402 : vector<2x32xf32>
    %405 = arith.divf %403, %404 : vector<2x32xf32>
    %406 = arith.mulf %397, %347 : vector<2x32xf32>
    %407 = arith.mulf %391, %399 : vector<2x32xf32>
    %408 = arith.addf %406, %407 : vector<2x32xf32>
    %409 = math.tanh %408 : vector<2x32xf32>
    %410 = arith.mulf %405, %409 : vector<2x32xf32>
    %411 = vector.extract_strided_slice %385 {offsets = [0, 0], sizes = [2, 32], strides = [1, 1]} : vector<2x128xf32> to vector<2x32xf32>
    %412 = arith.negf %411 : vector<2x32xf32>
    %413 = math.exp %412 : vector<2x32xf32>
    %cst_75 = arith.constant 1.000000e+00 : f32
    %414 = vector.broadcast %cst_75 : f32 to vector<2x32xf32>
    %415 = arith.addf %414, %413 : vector<2x32xf32>
    %416 = arith.divf %414, %415 : vector<2x32xf32>
    %417 = vector.extract_strided_slice %385 {offsets = [0, 32], sizes = [2, 32], strides = [1, 1]} : vector<2x128xf32> to vector<2x32xf32>
    %418 = arith.negf %417 : vector<2x32xf32>
    %419 = math.exp %418 : vector<2x32xf32>
    %cst_76 = arith.constant 1.000000e+00 : f32
    %420 = vector.broadcast %cst_76 : f32 to vector<2x32xf32>
    %421 = arith.addf %420, %419 : vector<2x32xf32>
    %422 = arith.divf %420, %421 : vector<2x32xf32>
    %423 = vector.extract_strided_slice %385 {offsets = [0, 64], sizes = [2, 32], strides = [1, 1]} : vector<2x128xf32> to vector<2x32xf32>
    %424 = math.tanh %423 : vector<2x32xf32>
    %425 = vector.extract_strided_slice %385 {offsets = [0, 96], sizes = [2, 32], strides = [1, 1]} : vector<2x128xf32> to vector<2x32xf32>
    %426 = arith.negf %425 : vector<2x32xf32>
    %427 = math.exp %426 : vector<2x32xf32>
    %cst_77 = arith.constant 1.000000e+00 : f32
    %428 = vector.broadcast %cst_77 : f32 to vector<2x32xf32>
    %429 = arith.addf %428, %427 : vector<2x32xf32>
    %430 = arith.divf %428, %429 : vector<2x32xf32>
    %431 = arith.mulf %422, %372 : vector<2x32xf32>
    %432 = arith.mulf %416, %424 : vector<2x32xf32>
    %433 = arith.addf %431, %432 : vector<2x32xf32>
    %434 = math.tanh %433 : vector<2x32xf32>
    %435 = arith.mulf %430, %434 : vector<2x32xf32>
    %436 = tpu.concatenate %410, %435 in 1 : vector<2x32xf32>, vector<2x32xf32> -> vector<2x64xf32>
    %c12_78 = arith.constant 12 : index
    %c0_79 = arith.constant 0 : index
    %437 = vector.load %arg9[%c12_78, %c0_79] : memref<16x64xf32, #tpu.memory_space<vmem>>, vector<2x32xf32>
    tpu.vector_store %arg9[%c12_78, %c0_79], %410 {strides = array<i32>} : memref<16x64xf32, #tpu.memory_space<vmem>>, vector<2x32xf32>,
    %c2_80 = arith.constant 2 : index
    %c32_81 = arith.constant 32 : index
    %438 = vector.load %arg9[%c2_80, %c32_81] : memref<16x64xf32, #tpu.memory_space<vmem>>, vector<2x32xf32>
    tpu.vector_store %arg9[%c2_80, %c32_81], %435 {strides = array<i32>} : memref<16x64xf32, #tpu.memory_space<vmem>>, vector<2x32xf32>,
    %439 = arith.truncf %436 : vector<2x64xf32> to vector<2x64xbf16>
    %cst_82 = arith.constant dense<0.000000e+00> : vector<2x256xf32>
    %440 = tpu.matmul %439, %10, %cst_82 {dimension_numbers = #tpu.dot_dimension_numbers<[1], [0], [0], [1], [0, 0, 1, 1], [], []>} : vector<2x64xbf16>, vector<64x256xbf16>, vector<2x256xf32> -> vector<2x256xf32>
    %441 = vector.extract_strided_slice %8 {offsets = [14, 0], sizes = [2, 128], strides = [1, 1]} : vector<16x256xf32> to vector<2x128xf32>
    %442 = vector.extract_strided_slice %440 {offsets = [0, 0], sizes = [2, 128], strides = [1, 1]} : vector<2x256xf32> to vector<2x128xf32>
    %443 = arith.addf %441, %442 : vector<2x128xf32>
    %444 = vector.extract_strided_slice %8 {offsets = [0, 128], sizes = [2, 128], strides = [1, 1]} : vector<16x256xf32> to vector<2x128xf32>
    %445 = vector.extract_strided_slice %440 {offsets = [0, 128], sizes = [2, 128], strides = [1, 1]} : vector<2x256xf32> to vector<2x128xf32>
    %446 = arith.addf %444, %445 : vector<2x128xf32>
    %447 = vector.extract_strided_slice %443 {offsets = [0, 0], sizes = [2, 32], strides = [1, 1]} : vector<2x128xf32> to vector<2x32xf32>
    %448 = arith.negf %447 : vector<2x32xf32>
    %449 = math.exp %448 : vector<2x32xf32>
    %cst_83 = arith.constant 1.000000e+00 : f32
    %450 = vector.broadcast %cst_83 : f32 to vector<2x32xf32>
    %451 = arith.addf %450, %449 : vector<2x32xf32>
    %452 = arith.divf %450, %451 : vector<2x32xf32>
    %453 = vector.extract_strided_slice %443 {offsets = [0, 32], sizes = [2, 32], strides = [1, 1]} : vector<2x128xf32> to vector<2x32xf32>
    %454 = arith.negf %453 : vector<2x32xf32>
    %455 = math.exp %454 : vector<2x32xf32>
    %cst_84 = arith.constant 1.000000e+00 : f32
    %456 = vector.broadcast %cst_84 : f32 to vector<2x32xf32>
    %457 = arith.addf %456, %455 : vector<2x32xf32>
    %458 = arith.divf %456, %457 : vector<2x32xf32>
    %459 = vector.extract_strided_slice %443 {offsets = [0, 64], sizes = [2, 32], strides = [1, 1]} : vector<2x128xf32> to vector<2x32xf32>
    %460 = math.tanh %459 : vector<2x32xf32>
    %461 = vector.extract_strided_slice %443 {offsets = [0, 96], sizes = [2, 32], strides = [1, 1]} : vector<2x128xf32> to vector<2x32xf32>
    %462 = arith.negf %461 : vector<2x32xf32>
    %463 = math.exp %462 : vector<2x32xf32>
    %cst_85 = arith.constant 1.000000e+00 : f32
    %464 = vector.broadcast %cst_85 : f32 to vector<2x32xf32>
    %465 = arith.addf %464, %463 : vector<2x32xf32>
    %466 = arith.divf %464, %465 : vector<2x32xf32>
    %467 = arith.mulf %458, %408 : vector<2x32xf32>
    %468 = arith.mulf %452, %460 : vector<2x32xf32>
    %469 = arith.addf %467, %468 : vector<2x32xf32>
    %470 = math.tanh %469 : vector<2x32xf32>
    %471 = arith.mulf %466, %470 : vector<2x32xf32>
    %472 = vector.extract_strided_slice %446 {offsets = [0, 0], sizes = [2, 32], strides = [1, 1]} : vector<2x128xf32> to vector<2x32xf32>
    %473 = arith.negf %472 : vector<2x32xf32>
    %474 = math.exp %473 : vector<2x32xf32>
    %cst_86 = arith.constant 1.000000e+00 : f32
    %475 = vector.broadcast %cst_86 : f32 to vector<2x32xf32>
    %476 = arith.addf %475, %474 : vector<2x32xf32>
    %477 = arith.divf %475, %476 : vector<2x32xf32>
    %478 = vector.extract_strided_slice %446 {offsets = [0, 32], sizes = [2, 32], strides = [1, 1]} : vector<2x128xf32> to vector<2x32xf32>
    %479 = arith.negf %478 : vector<2x32xf32>
    %480 = math.exp %479 : vector<2x32xf32>
    %cst_87 = arith.constant 1.000000e+00 : f32
    %481 = vector.broadcast %cst_87 : f32 to vector<2x32xf32>
    %482 = arith.addf %481, %480 : vector<2x32xf32>
    %483 = arith.divf %481, %482 : vector<2x32xf32>
    %484 = vector.extract_strided_slice %446 {offsets = [0, 64], sizes = [2, 32], strides = [1, 1]} : vector<2x128xf32> to vector<2x32xf32>
    %485 = math.tanh %484 : vector<2x32xf32>
    %486 = vector.extract_strided_slice %446 {offsets = [0, 96], sizes = [2, 32], strides = [1, 1]} : vector<2x128xf32> to vector<2x32xf32>
    %487 = arith.negf %486 : vector<2x32xf32>
    %488 = math.exp %487 : vector<2x32xf32>
    %cst_88 = arith.constant 1.000000e+00 : f32
    %489 = vector.broadcast %cst_88 : f32 to vector<2x32xf32>
    %490 = arith.addf %489, %488 : vector<2x32xf32>
    %491 = arith.divf %489, %490 : vector<2x32xf32>
    %492 = arith.mulf %483, %433 : vector<2x32xf32>
    %493 = arith.mulf %477, %485 : vector<2x32xf32>
    %494 = arith.addf %492, %493 : vector<2x32xf32>
    %495 = math.tanh %494 : vector<2x32xf32>
    %496 = arith.mulf %491, %495 : vector<2x32xf32>
    %c14_89 = arith.constant 14 : index
    %c0_90 = arith.constant 0 : index
    %497 = vector.load %arg9[%c14_89, %c0_90] : memref<16x64xf32, #tpu.memory_space<vmem>>, vector<2x32xf32>
    tpu.vector_store %arg9[%c14_89, %c0_90], %471 {strides = array<i32>} : memref<16x64xf32, #tpu.memory_space<vmem>>, vector<2x32xf32>,
    %c0_91 = arith.constant 0 : index
    %c32_92 = arith.constant 32 : index
    %498 = vector.load %arg9[%c0_91, %c32_92] : memref<16x64xf32, #tpu.memory_space<vmem>>, vector<2x32xf32>
    tpu.vector_store %arg9[%c0_91, %c32_92], %496 {strides = array<i32>} : memref<16x64xf32, #tpu.memory_space<vmem>>, vector<2x32xf32>,
    %c0_93 = arith.constant 0 : index
    %c0_94 = arith.constant 0 : index
    %499 = vector.load %arg9[%c0_93, %c0_94] : memref<16x64xf32, #tpu.memory_space<vmem>>, vector<16x64xf32>
    %500 = arith.truncf %499 : vector<16x64xf32> to vector<16x64xbf16>
    %c0_95 = arith.constant 0 : index
    %c0_96 = arith.constant 0 : index
    %c0_97 = arith.constant 0 : index
    %501 = vector.load %arg4[%c0_95, %c0_96, %c0_97] : memref<3x64x16xbf16, #tpu.memory_space<vmem>>, vector<1x64x16xbf16>
    %502 = vector.shape_cast %501 : vector<1x64x16xbf16> to vector<64x16xbf16>
    %cst_98 = arith.constant dense<0.000000e+00> : vector<16x16xf32>
    %503 = tpu.matmul %500, %502, %cst_98 {dimension_numbers = #tpu.dot_dimension_numbers<[1], [0], [0], [1], [0, 0, 1, 1], [], []>} : vector<16x64xbf16>, vector<64x16xbf16>, vector<16x16xf32> -> vector<16x16xf32>
    %c0_99 = arith.constant 0 : index
    %c0_100 = arith.constant 0 : index
    %c0_101 = arith.constant 0 : index
    %504 = vector.load %arg5[%c0_99, %c0_100, %c0_101] : memref<3x1x16xf32, #tpu.memory_space<vmem>>, vector<1x1x16xf32>
    %505 = vector.shape_cast %504 : vector<1x1x16xf32> to vector<1x16xf32>
    %506 = vector.broadcast %505 : vector<1x16xf32> to vector<16x16xf32>
    %507 = arith.addf %503, %506 : vector<16x16xf32>
    %cst_102 = arith.constant dense<0.000000e+00> : vector<16xf32>
    %508 = vector.multi_reduction <add>, %507, %cst_102 [1] : vector<16x16xf32> to vector<16xf32>
    %509 = vector.shape_cast %508 : vector<16xf32> to vector<16x1xf32>
    %cst_103 = arith.constant 1.600000e+01 : f32
    %510 = vector.broadcast %cst_103 : f32 to vector<16x1xf32>
    %511 = arith.divf %509, %510 : vector<16x1xf32>
    %512 = vector.broadcast %511 : vector<16x1xf32> to vector<16x16xf32>
    %513 = arith.subf %507, %512 : vector<16x16xf32>
    %514 = arith.mulf %513, %513 : vector<16x16xf32>
    %cst_104 = arith.constant dense<0.000000e+00> : vector<16xf32>
    %515 = vector.multi_reduction <add>, %514, %cst_104 [1] : vector<16x16xf32> to vector<16xf32>
    %516 = vector.shape_cast %515 : vector<16xf32> to vector<16x1xf32>
    %cst_105 = arith.constant 1.600000e+01 : f32
    %517 = vector.broadcast %cst_105 : f32 to vector<16x1xf32>
    %518 = arith.divf %516, %517 : vector<16x1xf32>
    %519 = vector.broadcast %511 : vector<16x1xf32> to vector<16x16xf32>
    %520 = arith.subf %507, %519 : vector<16x16xf32>
    %cst_106 = arith.constant 9.99999974E-6 : f32
    %521 = vector.broadcast %cst_106 : f32 to vector<16x1xf32>
    %522 = arith.addf %518, %521 : vector<16x1xf32>
    %523 = math.rsqrt %522 : vector<16x1xf32>
    %524 = vector.broadcast %523 : vector<16x1xf32> to vector<16x16xf32>
    %525 = arith.mulf %520, %524 : vector<16x16xf32>
    %c0_107 = arith.constant 0 : index
    %c0_108 = arith.constant 0 : index
    %c0_109 = arith.constant 0 : index
    %526 = vector.load %arg6[%c0_107, %c0_108, %c0_109] : memref<3x16x16xf32, #tpu.memory_space<vmem>>, vector<1x16x16xf32>
    %527 = vector.shape_cast %526 : vector<1x16x16xf32> to vector<16x16xf32>
    %528 = arith.mulf %525, %527 : vector<16x16xf32>
    %529 = arith.addf %1, %528 : vector<16x16xf32>
    %c0_110 = arith.constant 0 : index
    %c0_111 = arith.constant 0 : index
    %c0_112 = arith.constant 0 : index
    %530 = vector.load %arg7[%c0_110, %c0_111, %c0_112] : memref<3x16x16xf32, #tpu.memory_space<vmem>>, vector<1x16x16xf32>
    %531 = vector.shape_cast %530 : vector<1x16x16xf32> to vector<16x16xf32>
    %532 = arith.addf %529, %531 : vector<16x16xf32>
    %c1 = arith.constant 1 : index
    %c0_113 = arith.constant 0 : index
    %c0_114 = arith.constant 0 : index
    %533 = vector.load %arg1[%c1, %c0_113, %c0_114] : memref<3x16x256xbf16, #tpu.memory_space<vmem>>, vector<1x16x256xbf16>
    %534 = vector.shape_cast %533 : vector<1x16x256xbf16> to vector<16x256xbf16>
    %cst_115 = arith.constant dense<0.000000e+00> : vector<16x256xf32>
    %535 = tpu.matmul %0, %534, %cst_115 {dimension_numbers = #tpu.dot_dimension_numbers<[1], [0], [0], [1], [0, 0, 1, 1], [], []>} : vector<16x16xbf16>, vector<16x256xbf16>, vector<16x256xf32> -> vector<16x256xf32>
    %c1_116 = arith.constant 1 : index
    %c0_117 = arith.constant 0 : index
    %c0_118 = arith.constant 0 : index
    %536 = vector.load %arg2[%c1_116, %c0_117, %c0_118] : memref<3x1x256xf32, #tpu.memory_space<vmem>>, vector<1x1x256xf32>
    %537 = vector.shape_cast %536 : vector<1x1x256xf32> to vector<1x256xf32>
    %538 = vector.broadcast %537 : vector<1x256xf32> to vector<16x256xf32>
    %539 = arith.addf %535, %538 : vector<16x256xf32>
    %c1_119 = arith.constant 1 : index
    %c0_120 = arith.constant 0 : index
    %c0_121 = arith.constant 0 : index
    %540 = vector.load %arg3[%c1_119, %c0_120, %c0_121] : memref<3x64x256xbf16, #tpu.memory_space<vmem>>, vector<1x64x256xbf16>
    %541 = vector.shape_cast %540 : vector<1x64x256xbf16> to vector<64x256xbf16>
    %cst_122 = arith.constant 0.000000e+00 : f32
    %542 = vector.broadcast %cst_122 : f32 to vector<2x32xf32>
    %cst_123 = arith.constant 0.000000e+00 : f32
    %543 = vector.broadcast %cst_123 : f32 to vector<2x32xf32>
    %cst_124 = arith.constant 0.000000e+00 : f32
    %544 = vector.broadcast %cst_124 : f32 to vector<2x256xf32>
    %545 = vector.extract_strided_slice %539 {offsets = [0, 0], sizes = [2, 128], strides = [1, 1]} : vector<16x256xf32> to vector<2x128xf32>
    %546 = vector.extract_strided_slice %544 {offsets = [0, 0], sizes = [2, 128], strides = [1, 1]} : vector<2x256xf32> to vector<2x128xf32>
    %547 = arith.addf %545, %546 : vector<2x128xf32>
    %548 = vector.extract_strided_slice %539 {offsets = [14, 128], sizes = [2, 128], strides = [1, 1]} : vector<16x256xf32> to vector<2x128xf32>
    %549 = vector.extract_strided_slice %544 {offsets = [0, 128], sizes = [2, 128], strides = [1, 1]} : vector<2x256xf32> to vector<2x128xf32>
    %550 = arith.addf %548, %549 : vector<2x128xf32>
    %551 = vector.extract_strided_slice %547 {offsets = [0, 0], sizes = [2, 32], strides = [1, 1]} : vector<2x128xf32> to vector<2x32xf32>
    %552 = arith.negf %551 : vector<2x32xf32>
    %553 = math.exp %552 : vector<2x32xf32>
    %cst_125 = arith.constant 1.000000e+00 : f32
    %554 = vector.broadcast %cst_125 : f32 to vector<2x32xf32>
    %555 = arith.addf %554, %553 : vector<2x32xf32>
    %556 = arith.divf %554, %555 : vector<2x32xf32>
    %557 = vector.extract_strided_slice %547 {offsets = [0, 32], sizes = [2, 32], strides = [1, 1]} : vector<2x128xf32> to vector<2x32xf32>
    %558 = arith.negf %557 : vector<2x32xf32>
    %559 = math.exp %558 : vector<2x32xf32>
    %cst_126 = arith.constant 1.000000e+00 : f32
    %560 = vector.broadcast %cst_126 : f32 to vector<2x32xf32>
    %561 = arith.addf %560, %559 : vector<2x32xf32>
    %562 = arith.divf %560, %561 : vector<2x32xf32>
    %563 = vector.extract_strided_slice %547 {offsets = [0, 64], sizes = [2, 32], strides = [1, 1]} : vector<2x128xf32> to vector<2x32xf32>
    %564 = math.tanh %563 : vector<2x32xf32>
    %565 = vector.extract_strided_slice %547 {offsets = [0, 96], sizes = [2, 32], strides = [1, 1]} : vector<2x128xf32> to vector<2x32xf32>
    %566 = arith.negf %565 : vector<2x32xf32>
    %567 = math.exp %566 : vector<2x32xf32>
    %cst_127 = arith.constant 1.000000e+00 : f32
    %568 = vector.broadcast %cst_127 : f32 to vector<2x32xf32>
    %569 = arith.addf %568, %567 : vector<2x32xf32>
    %570 = arith.divf %568, %569 : vector<2x32xf32>
    %571 = arith.mulf %562, %542 : vector<2x32xf32>
    %572 = arith.mulf %556, %564 : vector<2x32xf32>
    %573 = arith.addf %571, %572 : vector<2x32xf32>
    %574 = math.tanh %573 : vector<2x32xf32>
    %575 = arith.mulf %570, %574 : vector<2x32xf32>
    %576 = vector.extract_strided_slice %550 {offsets = [0, 0], sizes = [2, 32], strides = [1, 1]} : vector<2x128xf32> to vector<2x32xf32>
    %577 = arith.negf %576 : vector<2x32xf32>
    %578 = math.exp %577 : vector<2x32xf32>
    %cst_128 = arith.constant 1.000000e+00 : f32
    %579 = vector.broadcast %cst_128 : f32 to vector<2x32xf32>
    %580 = arith.addf %579, %578 : vector<2x32xf32>
    %581 = arith.divf %579, %580 : vector<2x32xf32>
    %582 = vector.extract_strided_slice %550 {offsets = [0, 32], sizes = [2, 32], strides = [1, 1]} : vector<2x128xf32> to vector<2x32xf32>
    %583 = arith.negf %582 : vector<2x32xf32>
    %584 = math.exp %583 : vector<2x32xf32>
    %cst_129 = arith.constant 1.000000e+00 : f32
    %585 = vector.broadcast %cst_129 : f32 to vector<2x32xf32>
    %586 = arith.addf %585, %584 : vector<2x32xf32>
    %587 = arith.divf %585, %586 : vector<2x32xf32>
    %588 = vector.extract_strided_slice %550 {offsets = [0, 64], sizes = [2, 32], strides = [1, 1]} : vector<2x128xf32> to vector<2x32xf32>
    %589 = math.tanh %588 : vector<2x32xf32>
    %590 = vector.extract_strided_slice %550 {offsets = [0, 96], sizes = [2, 32], strides = [1, 1]} : vector<2x128xf32> to vector<2x32xf32>
    %591 = arith.negf %590 : vector<2x32xf32>
    %592 = math.exp %591 : vector<2x32xf32>
    %cst_130 = arith.constant 1.000000e+00 : f32
    %593 = vector.broadcast %cst_130 : f32 to vector<2x32xf32>
    %594 = arith.addf %593, %592 : vector<2x32xf32>
    %595 = arith.divf %593, %594 : vector<2x32xf32>
    %596 = arith.mulf %587, %543 : vector<2x32xf32>
    %597 = arith.mulf %581, %589 : vector<2x32xf32>
    %598 = arith.addf %596, %597 : vector<2x32xf32>
    %599 = math.tanh %598 : vector<2x32xf32>
    %600 = arith.mulf %595, %599 : vector<2x32xf32>
    %601 = tpu.concatenate %575, %600 in 1 : vector<2x32xf32>, vector<2x32xf32> -> vector<2x64xf32>
    %c0_131 = arith.constant 0 : index
    %c0_132 = arith.constant 0 : index
    %602 = vector.load %arg9[%c0_131, %c0_132] : memref<16x64xf32, #tpu.memory_space<vmem>>, vector<2x32xf32>
    tpu.vector_store %arg9[%c0_131, %c0_132], %575 {strides = array<i32>} : memref<16x64xf32, #tpu.memory_space<vmem>>, vector<2x32xf32>,
    %c14_133 = arith.constant 14 : index
    %c32_134 = arith.constant 32 : index
    %603 = vector.load %arg9[%c14_133, %c32_134] : memref<16x64xf32, #tpu.memory_space<vmem>>, vector<2x32xf32>
    tpu.vector_store %arg9[%c14_133, %c32_134], %600 {strides = array<i32>} : memref<16x64xf32, #tpu.memory_space<vmem>>, vector<2x32xf32>,
    %604 = arith.truncf %601 : vector<2x64xf32> to vector<2x64xbf16>
    %cst_135 = arith.constant dense<0.000000e+00> : vector<2x256xf32>
    %605 = tpu.matmul %604, %541, %cst_135 {dimension_numbers = #tpu.dot_dimension_numbers<[1], [0], [0], [1], [0, 0, 1, 1], [], []>} : vector<2x64xbf16>, vector<64x256xbf16>, vector<2x256xf32> -> vector<2x256xf32>
    %606 = vector.extract_strided_slice %539 {offsets = [2, 0], sizes = [2, 128], strides = [1, 1]} : vector<16x256xf32> to vector<2x128xf32>
    %607 = vector.extract_strided_slice %605 {offsets = [0, 0], sizes = [2, 128], strides = [1, 1]} : vector<2x256xf32> to vector<2x128xf32>
    %608 = arith.addf %606, %607 : vector<2x128xf32>
    %609 = vector.extract_strided_slice %539 {offsets = [12, 128], sizes = [2, 128], strides = [1, 1]} : vector<16x256xf32> to vector<2x128xf32>
    %610 = vector.extract_strided_slice %605 {offsets = [0, 128], sizes = [2, 128], strides = [1, 1]} : vector<2x256xf32> to vector<2x128xf32>
    %611 = arith.addf %609, %610 : vector<2x128xf32>
    %612 = vector.extract_strided_slice %608 {offsets = [0, 0], sizes = [2, 32], strides = [1, 1]} : vector<2x128xf32> to vector<2x32xf32>
    %613 = arith.negf %612 : vector<2x32xf32>
    %614 = math.exp %613 : vector<2x32xf32>
    %cst_136 = arith.constant 1.000000e+00 : f32
    %615 = vector.broadcast %cst_136 : f32 to vector<2x32xf32>
    %616 = arith.addf %615, %614 : vector<2x32xf32>
    %617 = arith.divf %615, %616 : vector<2x32xf32>
    %618 = vector.extract_strided_slice %608 {offsets = [0, 32], sizes = [2, 32], strides = [1, 1]} : vector<2x128xf32> to vector<2x32xf32>
    %619 = arith.negf %618 : vector<2x32xf32>
    %620 = math.exp %619 : vector<2x32xf32>
    %cst_137 = arith.constant 1.000000e+00 : f32
    %621 = vector.broadcast %cst_137 : f32 to vector<2x32xf32>
    %622 = arith.addf %621, %620 : vector<2x32xf32>
    %623 = arith.divf %621, %622 : vector<2x32xf32>
    %624 = vector.extract_strided_slice %608 {offsets = [0, 64], sizes = [2, 32], strides = [1, 1]} : vector<2x128xf32> to vector<2x32xf32>
    %625 = math.tanh %624 : vector<2x32xf32>
    %626 = vector.extract_strided_slice %608 {offsets = [0, 96], sizes = [2, 32], strides = [1, 1]} : vector<2x128xf32> to vector<2x32xf32>
    %627 = arith.negf %626 : vector<2x32xf32>
    %628 = math.exp %627 : vector<2x32xf32>
    %cst_138 = arith.constant 1.000000e+00 : f32
    %629 = vector.broadcast %cst_138 : f32 to vector<2x32xf32>
    %630 = arith.addf %629, %628 : vector<2x32xf32>
    %631 = arith.divf %629, %630 : vector<2x32xf32>
    %632 = arith.mulf %623, %573 : vector<2x32xf32>
    %633 = arith.mulf %617, %625 : vector<2x32xf32>
    %634 = arith.addf %632, %633 : vector<2x32xf32>
    %635 = math.tanh %634 : vector<2x32xf32>
    %636 = arith.mulf %631, %635 : vector<2x32xf32>
    %637 = vector.extract_strided_slice %611 {offsets = [0, 0], sizes = [2, 32], strides = [1, 1]} : vector<2x128xf32> to vector<2x32xf32>
    %638 = arith.negf %637 : vector<2x32xf32>
    %639 = math.exp %638 : vector<2x32xf32>
    %cst_139 = arith.constant 1.000000e+00 : f32
    %640 = vector.broadcast %cst_139 : f32 to vector<2x32xf32>
    %641 = arith.addf %640, %639 : vector<2x32xf32>
    %642 = arith.divf %640, %641 : vector<2x32xf32>
    %643 = vector.extract_strided_slice %611 {offsets = [0, 32], sizes = [2, 32], strides = [1, 1]} : vector<2x128xf32> to vector<2x32xf32>
    %644 = arith.negf %643 : vector<2x32xf32>
    %645 = math.exp %644 : vector<2x32xf32>
    %cst_140 = arith.constant 1.000000e+00 : f32
    %646 = vector.broadcast %cst_140 : f32 to vector<2x32xf32>
    %647 = arith.addf %646, %645 : vector<2x32xf32>
    %648 = arith.divf %646, %647 : vector<2x32xf32>
    %649 = vector.extract_strided_slice %611 {offsets = [0, 64], sizes = [2, 32], strides = [1, 1]} : vector<2x128xf32> to vector<2x32xf32>
    %650 = math.tanh %649 : vector<2x32xf32>
    %651 = vector.extract_strided_slice %611 {offsets = [0, 96], sizes = [2, 32], strides = [1, 1]} : vector<2x128xf32> to vector<2x32xf32>
    %652 = arith.negf %651 : vector<2x32xf32>
    %653 = math.exp %652 : vector<2x32xf32>
    %cst_141 = arith.constant 1.000000e+00 : f32
    %654 = vector.broadcast %cst_141 : f32 to vector<2x32xf32>
    %655 = arith.addf %654, %653 : vector<2x32xf32>
    %656 = arith.divf %654, %655 : vector<2x32xf32>
    %657 = arith.mulf %648, %598 : vector<2x32xf32>
    %658 = arith.mulf %642, %650 : vector<2x32xf32>
    %659 = arith.addf %657, %658 : vector<2x32xf32>
    %660 = math.tanh %659 : vector<2x32xf32>
    %661 = arith.mulf %656, %660 : vector<2x32xf32>
    %662 = tpu.concatenate %636, %661 in 1 : vector<2x32xf32>, vector<2x32xf32> -> vector<2x64xf32>
    %c2_142 = arith.constant 2 : index
    %c0_143 = arith.constant 0 : index
    %663 = vector.load %arg9[%c2_142, %c0_143] : memref<16x64xf32, #tpu.memory_space<vmem>>, vector<2x32xf32>
    tpu.vector_store %arg9[%c2_142, %c0_143], %636 {strides = array<i32>} : memref<16x64xf32, #tpu.memory_space<vmem>>, vector<2x32xf32>,
    %c12_144 = arith.constant 12 : index
    %c32_145 = arith.constant 32 : index
    %664 = vector.load %arg9[%c12_144, %c32_145] : memref<16x64xf32, #tpu.memory_space<vmem>>, vector<2x32xf32>
    tpu.vector_store %arg9[%c12_144, %c32_145], %661 {strides = array<i32>} : memref<16x64xf32, #tpu.memory_space<vmem>>, vector<2x32xf32>,
    %665 = arith.truncf %662 : vector<2x64xf32> to vector<2x64xbf16>
    %cst_146 = arith.constant dense<0.000000e+00> : vector<2x256xf32>
    %666 = tpu.matmul %665, %541, %cst_146 {dimension_numbers = #tpu.dot_dimension_numbers<[1], [0], [0], [1], [0, 0, 1, 1], [], []>} : vector<2x64xbf16>, vector<64x256xbf16>, vector<2x256xf32> -> vector<2x256xf32>
    %667 = vector.extract_strided_slice %539 {offsets = [4, 0], sizes = [2, 128], strides = [1, 1]} : vector<16x256xf32> to vector<2x128xf32>
    %668 = vector.extract_strided_slice %666 {offsets = [0, 0], sizes = [2, 128], strides = [1, 1]} : vector<2x256xf32> to vector<2x128xf32>
    %669 = arith.addf %667, %668 : vector<2x128xf32>
    %670 = vector.extract_strided_slice %539 {offsets = [10, 128], sizes = [2, 128], strides = [1, 1]} : vector<16x256xf32> to vector<2x128xf32>
    %671 = vector.extract_strided_slice %666 {offsets = [0, 128], sizes = [2, 128], strides = [1, 1]} : vector<2x256xf32> to vector<2x128xf32>
    %672 = arith.addf %670, %671 : vector<2x128xf32>
    %673 = vector.extract_strided_slice %669 {offsets = [0, 0], sizes = [2, 32], strides = [1, 1]} : vector<2x128xf32> to vector<2x32xf32>
    %674 = arith.negf %673 : vector<2x32xf32>
    %675 = math.exp %674 : vector<2x32xf32>
    %cst_147 = arith.constant 1.000000e+00 : f32
    %676 = vector.broadcast %cst_147 : f32 to vector<2x32xf32>
    %677 = arith.addf %676, %675 : vector<2x32xf32>
    %678 = arith.divf %676, %677 : vector<2x32xf32>
    %679 = vector.extract_strided_slice %669 {offsets = [0, 32], sizes = [2, 32], strides = [1, 1]} : vector<2x128xf32> to vector<2x32xf32>
    %680 = arith.negf %679 : vector<2x32xf32>
    %681 = math.exp %680 : vector<2x32xf32>
    %cst_148 = arith.constant 1.000000e+00 : f32
    %682 = vector.broadcast %cst_148 : f32 to vector<2x32xf32>
    %683 = arith.addf %682, %681 : vector<2x32xf32>
    %684 = arith.divf %682, %683 : vector<2x32xf32>
    %685 = vector.extract_strided_slice %669 {offsets = [0, 64], sizes = [2, 32], strides = [1, 1]} : vector<2x128xf32> to vector<2x32xf32>
    %686 = math.tanh %685 : vector<2x32xf32>
    %687 = vector.extract_strided_slice %669 {offsets = [0, 96], sizes = [2, 32], strides = [1, 1]} : vector<2x128xf32> to vector<2x32xf32>
    %688 = arith.negf %687 : vector<2x32xf32>
    %689 = math.exp %688 : vector<2x32xf32>
    %cst_149 = arith.constant 1.000000e+00 : f32
    %690 = vector.broadcast %cst_149 : f32 to vector<2x32xf32>
    %691 = arith.addf %690, %689 : vector<2x32xf32>
    %692 = arith.divf %690, %691 : vector<2x32xf32>
    %693 = arith.mulf %684, %634 : vector<2x32xf32>
    %694 = arith.mulf %678, %686 : vector<2x32xf32>
    %695 = arith.addf %693, %694 : vector<2x32xf32>
    %696 = math.tanh %695 : vector<2x32xf32>
    %697 = arith.mulf %692, %696 : vector<2x32xf32>
    %698 = vector.extract_strided_slice %672 {offsets = [0, 0], sizes = [2, 32], strides = [1, 1]} : vector<2x128xf32> to vector<2x32xf32>
    %699 = arith.negf %698 : vector<2x32xf32>
    %700 = math.exp %699 : vector<2x32xf32>
    %cst_150 = arith.constant 1.000000e+00 : f32
    %701 = vector.broadcast %cst_150 : f32 to vector<2x32xf32>
    %702 = arith.addf %701, %700 : vector<2x32xf32>
    %703 = arith.divf %701, %702 : vector<2x32xf32>
    %704 = vector.extract_strided_slice %672 {offsets = [0, 32], sizes = [2, 32], strides = [1, 1]} : vector<2x128xf32> to vector<2x32xf32>
    %705 = arith.negf %704 : vector<2x32xf32>
    %706 = math.exp %705 : vector<2x32xf32>
    %cst_151 = arith.constant 1.000000e+00 : f32
    %707 = vector.broadcast %cst_151 : f32 to vector<2x32xf32>
    %708 = arith.addf %707, %706 : vector<2x32xf32>
    %709 = arith.divf %707, %708 : vector<2x32xf32>
    %710 = vector.extract_strided_slice %672 {offsets = [0, 64], sizes = [2, 32], strides = [1, 1]} : vector<2x128xf32> to vector<2x32xf32>
    %711 = math.tanh %710 : vector<2x32xf32>
    %712 = vector.extract_strided_slice %672 {offsets = [0, 96], sizes = [2, 32], strides = [1, 1]} : vector<2x128xf32> to vector<2x32xf32>
    %713 = arith.negf %712 : vector<2x32xf32>
    %714 = math.exp %713 : vector<2x32xf32>
    %cst_152 = arith.constant 1.000000e+00 : f32
    %715 = vector.broadcast %cst_152 : f32 to vector<2x32xf32>
    %716 = arith.addf %715, %714 : vector<2x32xf32>
    %717 = arith.divf %715, %716 : vector<2x32xf32>
    %718 = arith.mulf %709, %659 : vector<2x32xf32>
    %719 = arith.mulf %703, %711 : vector<2x32xf32>
    %720 = arith.addf %718, %719 : vector<2x32xf32>
    %721 = math.tanh %720 : vector<2x32xf32>
    %722 = arith.mulf %717, %721 : vector<2x32xf32>
    %723 = tpu.concatenate %697, %722 in 1 : vector<2x32xf32>, vector<2x32xf32> -> vector<2x64xf32>
    %c4_153 = arith.constant 4 : index
    %c0_154 = arith.constant 0 : index
    %724 = vector.load %arg9[%c4_153, %c0_154] : memref<16x64xf32, #tpu.memory_space<vmem>>, vector<2x32xf32>
    tpu.vector_store %arg9[%c4_153, %c0_154], %697 {strides = array<i32>} : memref<16x64xf32, #tpu.memory_space<vmem>>, vector<2x32xf32>,
    %c10_155 = arith.constant 10 : index
    %c32_156 = arith.constant 32 : index
    %725 = vector.load %arg9[%c10_155, %c32_156] : memref<16x64xf32, #tpu.memory_space<vmem>>, vector<2x32xf32>
    tpu.vector_store %arg9[%c10_155, %c32_156], %722 {strides = array<i32>} : memref<16x64xf32, #tpu.memory_space<vmem>>, vector<2x32xf32>,
    %726 = arith.truncf %723 : vector<2x64xf32> to vector<2x64xbf16>
    %cst_157 = arith.constant dense<0.000000e+00> : vector<2x256xf32>
    %727 = tpu.matmul %726, %541, %cst_157 {dimension_numbers = #tpu.dot_dimension_numbers<[1], [0], [0], [1], [0, 0, 1, 1], [], []>} : vector<2x64xbf16>, vector<64x256xbf16>, vector<2x256xf32> -> vector<2x256xf32>
    %728 = vector.extract_strided_slice %539 {offsets = [6, 0], sizes = [2, 128], strides = [1, 1]} : vector<16x256xf32> to vector<2x128xf32>
    %729 = vector.extract_strided_slice %727 {offsets = [0, 0], sizes = [2, 128], strides = [1, 1]} : vector<2x256xf32> to vector<2x128xf32>
    %730 = arith.addf %728, %729 : vector<2x128xf32>
    %731 = vector.extract_strided_slice %539 {offsets = [8, 128], sizes = [2, 128], strides = [1, 1]} : vector<16x256xf32> to vector<2x128xf32>
    %732 = vector.extract_strided_slice %727 {offsets = [0, 128], sizes = [2, 128], strides = [1, 1]} : vector<2x256xf32> to vector<2x128xf32>
    %733 = arith.addf %731, %732 : vector<2x128xf32>
    %734 = vector.extract_strided_slice %730 {offsets = [0, 0], sizes = [2, 32], strides = [1, 1]} : vector<2x128xf32> to vector<2x32xf32>
    %735 = arith.negf %734 : vector<2x32xf32>
    %736 = math.exp %735 : vector<2x32xf32>
    %cst_158 = arith.constant 1.000000e+00 : f32
    %737 = vector.broadcast %cst_158 : f32 to vector<2x32xf32>
    %738 = arith.addf %737, %736 : vector<2x32xf32>
    %739 = arith.divf %737, %738 : vector<2x32xf32>
    %740 = vector.extract_strided_slice %730 {offsets = [0, 32], sizes = [2, 32], strides = [1, 1]} : vector<2x128xf32> to vector<2x32xf32>
    %741 = arith.negf %740 : vector<2x32xf32>
    %742 = math.exp %741 : vector<2x32xf32>
    %cst_159 = arith.constant 1.000000e+00 : f32
    %743 = vector.broadcast %cst_159 : f32 to vector<2x32xf32>
    %744 = arith.addf %743, %742 : vector<2x32xf32>
    %745 = arith.divf %743, %744 : vector<2x32xf32>
    %746 = vector.extract_strided_slice %730 {offsets = [0, 64], sizes = [2, 32], strides = [1, 1]} : vector<2x128xf32> to vector<2x32xf32>
    %747 = math.tanh %746 : vector<2x32xf32>
    %748 = vector.extract_strided_slice %730 {offsets = [0, 96], sizes = [2, 32], strides = [1, 1]} : vector<2x128xf32> to vector<2x32xf32>
    %749 = arith.negf %748 : vector<2x32xf32>
    %750 = math.exp %749 : vector<2x32xf32>
    %cst_160 = arith.constant 1.000000e+00 : f32
    %751 = vector.broadcast %cst_160 : f32 to vector<2x32xf32>
    %752 = arith.addf %751, %750 : vector<2x32xf32>
    %753 = arith.divf %751, %752 : vector<2x32xf32>
    %754 = arith.mulf %745, %695 : vector<2x32xf32>
    %755 = arith.mulf %739, %747 : vector<2x32xf32>
    %756 = arith.addf %754, %755 : vector<2x32xf32>
    %757 = math.tanh %756 : vector<2x32xf32>
    %758 = arith.mulf %753, %757 : vector<2x32xf32>
    %759 = vector.extract_strided_slice %733 {offsets = [0, 0], sizes = [2, 32], strides = [1, 1]} : vector<2x128xf32> to vector<2x32xf32>
    %760 = arith.negf %759 : vector<2x32xf32>
    %761 = math.exp %760 : vector<2x32xf32>
    %cst_161 = arith.constant 1.000000e+00 : f32
    %762 = vector.broadcast %cst_161 : f32 to vector<2x32xf32>
    %763 = arith.addf %762, %761 : vector<2x32xf32>
    %764 = arith.divf %762, %763 : vector<2x32xf32>
    %765 = vector.extract_strided_slice %733 {offsets = [0, 32], sizes = [2, 32], strides = [1, 1]} : vector<2x128xf32> to vector<2x32xf32>
    %766 = arith.negf %765 : vector<2x32xf32>
    %767 = math.exp %766 : vector<2x32xf32>
    %cst_162 = arith.constant 1.000000e+00 : f32
    %768 = vector.broadcast %cst_162 : f32 to vector<2x32xf32>
    %769 = arith.addf %768, %767 : vector<2x32xf32>
    %770 = arith.divf %768, %769 : vector<2x32xf32>
    %771 = vector.extract_strided_slice %733 {offsets = [0, 64], sizes = [2, 32], strides = [1, 1]} : vector<2x128xf32> to vector<2x32xf32>
    %772 = math.tanh %771 : vector<2x32xf32>
    %773 = vector.extract_strided_slice %733 {offsets = [0, 96], sizes = [2, 32], strides = [1, 1]} : vector<2x128xf32> to vector<2x32xf32>
    %774 = arith.negf %773 : vector<2x32xf32>
    %775 = math.exp %774 : vector<2x32xf32>
    %cst_163 = arith.constant 1.000000e+00 : f32
    %776 = vector.broadcast %cst_163 : f32 to vector<2x32xf32>
    %777 = arith.addf %776, %775 : vector<2x32xf32>
    %778 = arith.divf %776, %777 : vector<2x32xf32>
    %779 = arith.mulf %770, %720 : vector<2x32xf32>
    %780 = arith.mulf %764, %772 : vector<2x32xf32>
    %781 = arith.addf %779, %780 : vector<2x32xf32>
    %782 = math.tanh %781 : vector<2x32xf32>
    %783 = arith.mulf %778, %782 : vector<2x32xf32>
    %784 = tpu.concatenate %758, %783 in 1 : vector<2x32xf32>, vector<2x32xf32> -> vector<2x64xf32>
    %c6_164 = arith.constant 6 : index
    %c0_165 = arith.constant 0 : index
    %785 = vector.load %arg9[%c6_164, %c0_165] : memref<16x64xf32, #tpu.memory_space<vmem>>, vector<2x32xf32>
    tpu.vector_store %arg9[%c6_164, %c0_165], %758 {strides = array<i32>} : memref<16x64xf32, #tpu.memory_space<vmem>>, vector<2x32xf32>,
    %c8_166 = arith.constant 8 : index
    %c32_167 = arith.constant 32 : index
    %786 = vector.load %arg9[%c8_166, %c32_167] : memref<16x64xf32, #tpu.memory_space<vmem>>, vector<2x32xf32>
    tpu.vector_store %arg9[%c8_166, %c32_167], %783 {strides = array<i32>} : memref<16x64xf32, #tpu.memory_space<vmem>>, vector<2x32xf32>,
    %787 = arith.truncf %784 : vector<2x64xf32> to vector<2x64xbf16>
    %cst_168 = arith.constant dense<0.000000e+00> : vector<2x256xf32>
    %788 = tpu.matmul %787, %541, %cst_168 {dimension_numbers = #tpu.dot_dimension_numbers<[1], [0], [0], [1], [0, 0, 1, 1], [], []>} : vector<2x64xbf16>, vector<64x256xbf16>, vector<2x256xf32> -> vector<2x256xf32>
    %789 = vector.extract_strided_slice %539 {offsets = [8, 0], sizes = [2, 128], strides = [1, 1]} : vector<16x256xf32> to vector<2x128xf32>
    %790 = vector.extract_strided_slice %788 {offsets = [0, 0], sizes = [2, 128], strides = [1, 1]} : vector<2x256xf32> to vector<2x128xf32>
    %791 = arith.addf %789, %790 : vector<2x128xf32>
    %792 = vector.extract_strided_slice %539 {offsets = [6, 128], sizes = [2, 128], strides = [1, 1]} : vector<16x256xf32> to vector<2x128xf32>
    %793 = vector.extract_strided_slice %788 {offsets = [0, 128], sizes = [2, 128], strides = [1, 1]} : vector<2x256xf32> to vector<2x128xf32>
    %794 = arith.addf %792, %793 : vector<2x128xf32>
    %795 = vector.extract_strided_slice %791 {offsets = [0, 0], sizes = [2, 32], strides = [1, 1]} : vector<2x128xf32> to vector<2x32xf32>
    %796 = arith.negf %795 : vector<2x32xf32>
    %797 = math.exp %796 : vector<2x32xf32>
    %cst_169 = arith.constant 1.000000e+00 : f32
    %798 = vector.broadcast %cst_169 : f32 to vector<2x32xf32>
    %799 = arith.addf %798, %797 : vector<2x32xf32>
    %800 = arith.divf %798, %799 : vector<2x32xf32>
    %801 = vector.extract_strided_slice %791 {offsets = [0, 32], sizes = [2, 32], strides = [1, 1]} : vector<2x128xf32> to vector<2x32xf32>
    %802 = arith.negf %801 : vector<2x32xf32>
    %803 = math.exp %802 : vector<2x32xf32>
    %cst_170 = arith.constant 1.000000e+00 : f32
    %804 = vector.broadcast %cst_170 : f32 to vector<2x32xf32>
    %805 = arith.addf %804, %803 : vector<2x32xf32>
    %806 = arith.divf %804, %805 : vector<2x32xf32>
    %807 = vector.extract_strided_slice %791 {offsets = [0, 64], sizes = [2, 32], strides = [1, 1]} : vector<2x128xf32> to vector<2x32xf32>
    %808 = math.tanh %807 : vector<2x32xf32>
    %809 = vector.extract_strided_slice %791 {offsets = [0, 96], sizes = [2, 32], strides = [1, 1]} : vector<2x128xf32> to vector<2x32xf32>
    %810 = arith.negf %809 : vector<2x32xf32>
    %811 = math.exp %810 : vector<2x32xf32>
    %cst_171 = arith.constant 1.000000e+00 : f32
    %812 = vector.broadcast %cst_171 : f32 to vector<2x32xf32>
    %813 = arith.addf %812, %811 : vector<2x32xf32>
    %814 = arith.divf %812, %813 : vector<2x32xf32>
    %815 = arith.mulf %806, %756 : vector<2x32xf32>
    %816 = arith.mulf %800, %808 : vector<2x32xf32>
    %817 = arith.addf %815, %816 : vector<2x32xf32>
    %818 = math.tanh %817 : vector<2x32xf32>
    %819 = arith.mulf %814, %818 : vector<2x32xf32>
    %820 = vector.extract_strided_slice %794 {offsets = [0, 0], sizes = [2, 32], strides = [1, 1]} : vector<2x128xf32> to vector<2x32xf32>
    %821 = arith.negf %820 : vector<2x32xf32>
    %822 = math.exp %821 : vector<2x32xf32>
    %cst_172 = arith.constant 1.000000e+00 : f32
    %823 = vector.broadcast %cst_172 : f32 to vector<2x32xf32>
    %824 = arith.addf %823, %822 : vector<2x32xf32>
    %825 = arith.divf %823, %824 : vector<2x32xf32>
    %826 = vector.extract_strided_slice %794 {offsets = [0, 32], sizes = [2, 32], strides = [1, 1]} : vector<2x128xf32> to vector<2x32xf32>
    %827 = arith.negf %826 : vector<2x32xf32>
    %828 = math.exp %827 : vector<2x32xf32>
    %cst_173 = arith.constant 1.000000e+00 : f32
    %829 = vector.broadcast %cst_173 : f32 to vector<2x32xf32>
    %830 = arith.addf %829, %828 : vector<2x32xf32>
    %831 = arith.divf %829, %830 : vector<2x32xf32>
    %832 = vector.extract_strided_slice %794 {offsets = [0, 64], sizes = [2, 32], strides = [1, 1]} : vector<2x128xf32> to vector<2x32xf32>
    %833 = math.tanh %832 : vector<2x32xf32>
    %834 = vector.extract_strided_slice %794 {offsets = [0, 96], sizes = [2, 32], strides = [1, 1]} : vector<2x128xf32> to vector<2x32xf32>
    %835 = arith.negf %834 : vector<2x32xf32>
    %836 = math.exp %835 : vector<2x32xf32>
    %cst_174 = arith.constant 1.000000e+00 : f32
    %837 = vector.broadcast %cst_174 : f32 to vector<2x32xf32>
    %838 = arith.addf %837, %836 : vector<2x32xf32>
    %839 = arith.divf %837, %838 : vector<2x32xf32>
    %840 = arith.mulf %831, %781 : vector<2x32xf32>
    %841 = arith.mulf %825, %833 : vector<2x32xf32>
    %842 = arith.addf %840, %841 : vector<2x32xf32>
    %843 = math.tanh %842 : vector<2x32xf32>
    %844 = arith.mulf %839, %843 : vector<2x32xf32>
    %845 = tpu.concatenate %819, %844 in 1 : vector<2x32xf32>, vector<2x32xf32> -> vector<2x64xf32>
    %c8_175 = arith.constant 8 : index
    %c0_176 = arith.constant 0 : index
    %846 = vector.load %arg9[%c8_175, %c0_176] : memref<16x64xf32, #tpu.memory_space<vmem>>, vector<2x32xf32>
    tpu.vector_store %arg9[%c8_175, %c0_176], %819 {strides = array<i32>} : memref<16x64xf32, #tpu.memory_space<vmem>>, vector<2x32xf32>,
    %c6_177 = arith.constant 6 : index
    %c32_178 = arith.constant 32 : index
    %847 = vector.load %arg9[%c6_177, %c32_178] : memref<16x64xf32, #tpu.memory_space<vmem>>, vector<2x32xf32>
    tpu.vector_store %arg9[%c6_177, %c32_178], %844 {strides = array<i32>} : memref<16x64xf32, #tpu.memory_space<vmem>>, vector<2x32xf32>,
    %848 = arith.truncf %845 : vector<2x64xf32> to vector<2x64xbf16>
    %cst_179 = arith.constant dense<0.000000e+00> : vector<2x256xf32>
    %849 = tpu.matmul %848, %541, %cst_179 {dimension_numbers = #tpu.dot_dimension_numbers<[1], [0], [0], [1], [0, 0, 1, 1], [], []>} : vector<2x64xbf16>, vector<64x256xbf16>, vector<2x256xf32> -> vector<2x256xf32>
    %850 = vector.extract_strided_slice %539 {offsets = [10, 0], sizes = [2, 128], strides = [1, 1]} : vector<16x256xf32> to vector<2x128xf32>
    %851 = vector.extract_strided_slice %849 {offsets = [0, 0], sizes = [2, 128], strides = [1, 1]} : vector<2x256xf32> to vector<2x128xf32>
    %852 = arith.addf %850, %851 : vector<2x128xf32>
    %853 = vector.extract_strided_slice %539 {offsets = [4, 128], sizes = [2, 128], strides = [1, 1]} : vector<16x256xf32> to vector<2x128xf32>
    %854 = vector.extract_strided_slice %849 {offsets = [0, 128], sizes = [2, 128], strides = [1, 1]} : vector<2x256xf32> to vector<2x128xf32>
    %855 = arith.addf %853, %854 : vector<2x128xf32>
    %856 = vector.extract_strided_slice %852 {offsets = [0, 0], sizes = [2, 32], strides = [1, 1]} : vector<2x128xf32> to vector<2x32xf32>
    %857 = arith.negf %856 : vector<2x32xf32>
    %858 = math.exp %857 : vector<2x32xf32>
    %cst_180 = arith.constant 1.000000e+00 : f32
    %859 = vector.broadcast %cst_180 : f32 to vector<2x32xf32>
    %860 = arith.addf %859, %858 : vector<2x32xf32>
    %861 = arith.divf %859, %860 : vector<2x32xf32>
    %862 = vector.extract_strided_slice %852 {offsets = [0, 32], sizes = [2, 32], strides = [1, 1]} : vector<2x128xf32> to vector<2x32xf32>
    %863 = arith.negf %862 : vector<2x32xf32>
    %864 = math.exp %863 : vector<2x32xf32>
    %cst_181 = arith.constant 1.000000e+00 : f32
    %865 = vector.broadcast %cst_181 : f32 to vector<2x32xf32>
    %866 = arith.addf %865, %864 : vector<2x32xf32>
    %867 = arith.divf %865, %866 : vector<2x32xf32>
    %868 = vector.extract_strided_slice %852 {offsets = [0, 64], sizes = [2, 32], strides = [1, 1]} : vector<2x128xf32> to vector<2x32xf32>
    %869 = math.tanh %868 : vector<2x32xf32>
    %870 = vector.extract_strided_slice %852 {offsets = [0, 96], sizes = [2, 32], strides = [1, 1]} : vector<2x128xf32> to vector<2x32xf32>
    %871 = arith.negf %870 : vector<2x32xf32>
    %872 = math.exp %871 : vector<2x32xf32>
    %cst_182 = arith.constant 1.000000e+00 : f32
    %873 = vector.broadcast %cst_182 : f32 to vector<2x32xf32>
    %874 = arith.addf %873, %872 : vector<2x32xf32>
    %875 = arith.divf %873, %874 : vector<2x32xf32>
    %876 = arith.mulf %867, %817 : vector<2x32xf32>
    %877 = arith.mulf %861, %869 : vector<2x32xf32>
    %878 = arith.addf %876, %877 : vector<2x32xf32>
    %879 = math.tanh %878 : vector<2x32xf32>
    %880 = arith.mulf %875, %879 : vector<2x32xf32>
    %881 = vector.extract_strided_slice %855 {offsets = [0, 0], sizes = [2, 32], strides = [1, 1]} : vector<2x128xf32> to vector<2x32xf32>
    %882 = arith.negf %881 : vector<2x32xf32>
    %883 = math.exp %882 : vector<2x32xf32>
    %cst_183 = arith.constant 1.000000e+00 : f32
    %884 = vector.broadcast %cst_183 : f32 to vector<2x32xf32>
    %885 = arith.addf %884, %883 : vector<2x32xf32>
    %886 = arith.divf %884, %885 : vector<2x32xf32>
    %887 = vector.extract_strided_slice %855 {offsets = [0, 32], sizes = [2, 32], strides = [1, 1]} : vector<2x128xf32> to vector<2x32xf32>
    %888 = arith.negf %887 : vector<2x32xf32>
    %889 = math.exp %888 : vector<2x32xf32>
    %cst_184 = arith.constant 1.000000e+00 : f32
    %890 = vector.broadcast %cst_184 : f32 to vector<2x32xf32>
    %891 = arith.addf %890, %889 : vector<2x32xf32>
    %892 = arith.divf %890, %891 : vector<2x32xf32>
    %893 = vector.extract_strided_slice %855 {offsets = [0, 64], sizes = [2, 32], strides = [1, 1]} : vector<2x128xf32> to vector<2x32xf32>
    %894 = math.tanh %893 : vector<2x32xf32>
    %895 = vector.extract_strided_slice %855 {offsets = [0, 96], sizes = [2, 32], strides = [1, 1]} : vector<2x128xf32> to vector<2x32xf32>
    %896 = arith.negf %895 : vector<2x32xf32>
    %897 = math.exp %896 : vector<2x32xf32>
    %cst_185 = arith.constant 1.000000e+00 : f32
    %898 = vector.broadcast %cst_185 : f32 to vector<2x32xf32>
    %899 = arith.addf %898, %897 : vector<2x32xf32>
    %900 = arith.divf %898, %899 : vector<2x32xf32>
    %901 = arith.mulf %892, %842 : vector<2x32xf32>
    %902 = arith.mulf %886, %894 : vector<2x32xf32>
    %903 = arith.addf %901, %902 : vector<2x32xf32>
    %904 = math.tanh %903 : vector<2x32xf32>
    %905 = arith.mulf %900, %904 : vector<2x32xf32>
    %906 = tpu.concatenate %880, %905 in 1 : vector<2x32xf32>, vector<2x32xf32> -> vector<2x64xf32>
    %c10_186 = arith.constant 10 : index
    %c0_187 = arith.constant 0 : index
    %907 = vector.load %arg9[%c10_186, %c0_187] : memref<16x64xf32, #tpu.memory_space<vmem>>, vector<2x32xf32>
    tpu.vector_store %arg9[%c10_186, %c0_187], %880 {strides = array<i32>} : memref<16x64xf32, #tpu.memory_space<vmem>>, vector<2x32xf32>,
    %c4_188 = arith.constant 4 : index
    %c32_189 = arith.constant 32 : index
    %908 = vector.load %arg9[%c4_188, %c32_189] : memref<16x64xf32, #tpu.memory_space<vmem>>, vector<2x32xf32>
    tpu.vector_store %arg9[%c4_188, %c32_189], %905 {strides = array<i32>} : memref<16x64xf32, #tpu.memory_space<vmem>>, vector<2x32xf32>,
    %909 = arith.truncf %906 : vector<2x64xf32> to vector<2x64xbf16>
    %cst_190 = arith.constant dense<0.000000e+00> : vector<2x256xf32>
    %910 = tpu.matmul %909, %541, %cst_190 {dimension_numbers = #tpu.dot_dimension_numbers<[1], [0], [0], [1], [0, 0, 1, 1], [], []>} : vector<2x64xbf16>, vector<64x256xbf16>, vector<2x256xf32> -> vector<2x256xf32>
    %911 = vector.extract_strided_slice %539 {offsets = [12, 0], sizes = [2, 128], strides = [1, 1]} : vector<16x256xf32> to vector<2x128xf32>
    %912 = vector.extract_strided_slice %910 {offsets = [0, 0], sizes = [2, 128], strides = [1, 1]} : vector<2x256xf32> to vector<2x128xf32>
    %913 = arith.addf %911, %912 : vector<2x128xf32>
    %914 = vector.extract_strided_slice %539 {offsets = [2, 128], sizes = [2, 128], strides = [1, 1]} : vector<16x256xf32> to vector<2x128xf32>
    %915 = vector.extract_strided_slice %910 {offsets = [0, 128], sizes = [2, 128], strides = [1, 1]} : vector<2x256xf32> to vector<2x128xf32>
    %916 = arith.addf %914, %915 : vector<2x128xf32>
    %917 = vector.extract_strided_slice %913 {offsets = [0, 0], sizes = [2, 32], strides = [1, 1]} : vector<2x128xf32> to vector<2x32xf32>
    %918 = arith.negf %917 : vector<2x32xf32>
    %919 = math.exp %918 : vector<2x32xf32>
    %cst_191 = arith.constant 1.000000e+00 : f32
    %920 = vector.broadcast %cst_191 : f32 to vector<2x32xf32>
    %921 = arith.addf %920, %919 : vector<2x32xf32>
    %922 = arith.divf %920, %921 : vector<2x32xf32>
    %923 = vector.extract_strided_slice %913 {offsets = [0, 32], sizes = [2, 32], strides = [1, 1]} : vector<2x128xf32> to vector<2x32xf32>
    %924 = arith.negf %923 : vector<2x32xf32>
    %925 = math.exp %924 : vector<2x32xf32>
    %cst_192 = arith.constant 1.000000e+00 : f32
    %926 = vector.broadcast %cst_192 : f32 to vector<2x32xf32>
    %927 = arith.addf %926, %925 : vector<2x32xf32>
    %928 = arith.divf %926, %927 : vector<2x32xf32>
    %929 = vector.extract_strided_slice %913 {offsets = [0, 64], sizes = [2, 32], strides = [1, 1]} : vector<2x128xf32> to vector<2x32xf32>
    %930 = math.tanh %929 : vector<2x32xf32>
    %931 = vector.extract_strided_slice %913 {offsets = [0, 96], sizes = [2, 32], strides = [1, 1]} : vector<2x128xf32> to vector<2x32xf32>
    %932 = arith.negf %931 : vector<2x32xf32>
    %933 = math.exp %932 : vector<2x32xf32>
    %cst_193 = arith.constant 1.000000e+00 : f32
    %934 = vector.broadcast %cst_193 : f32 to vector<2x32xf32>
    %935 = arith.addf %934, %933 : vector<2x32xf32>
    %936 = arith.divf %934, %935 : vector<2x32xf32>
    %937 = arith.mulf %928, %878 : vector<2x32xf32>
    %938 = arith.mulf %922, %930 : vector<2x32xf32>
    %939 = arith.addf %937, %938 : vector<2x32xf32>
    %940 = math.tanh %939 : vector<2x32xf32>
    %941 = arith.mulf %936, %940 : vector<2x32xf32>
    %942 = vector.extract_strided_slice %916 {offsets = [0, 0], sizes = [2, 32], strides = [1, 1]} : vector<2x128xf32> to vector<2x32xf32>
    %943 = arith.negf %942 : vector<2x32xf32>
    %944 = math.exp %943 : vector<2x32xf32>
    %cst_194 = arith.constant 1.000000e+00 : f32
    %945 = vector.broadcast %cst_194 : f32 to vector<2x32xf32>
    %946 = arith.addf %945, %944 : vector<2x32xf32>
    %947 = arith.divf %945, %946 : vector<2x32xf32>
    %948 = vector.extract_strided_slice %916 {offsets = [0, 32], sizes = [2, 32], strides = [1, 1]} : vector<2x128xf32> to vector<2x32xf32>
    %949 = arith.negf %948 : vector<2x32xf32>
    %950 = math.exp %949 : vector<2x32xf32>
    %cst_195 = arith.constant 1.000000e+00 : f32
    %951 = vector.broadcast %cst_195 : f32 to vector<2x32xf32>
    %952 = arith.addf %951, %950 : vector<2x32xf32>
    %953 = arith.divf %951, %952 : vector<2x32xf32>
    %954 = vector.extract_strided_slice %916 {offsets = [0, 64], sizes = [2, 32], strides = [1, 1]} : vector<2x128xf32> to vector<2x32xf32>
    %955 = math.tanh %954 : vector<2x32xf32>
    %956 = vector.extract_strided_slice %916 {offsets = [0, 96], sizes = [2, 32], strides = [1, 1]} : vector<2x128xf32> to vector<2x32xf32>
    %957 = arith.negf %956 : vector<2x32xf32>
    %958 = math.exp %957 : vector<2x32xf32>
    %cst_196 = arith.constant 1.000000e+00 : f32
    %959 = vector.broadcast %cst_196 : f32 to vector<2x32xf32>
    %960 = arith.addf %959, %958 : vector<2x32xf32>
    %961 = arith.divf %959, %960 : vector<2x32xf32>
    %962 = arith.mulf %953, %903 : vector<2x32xf32>
    %963 = arith.mulf %947, %955 : vector<2x32xf32>
    %964 = arith.addf %962, %963 : vector<2x32xf32>
    %965 = math.tanh %964 : vector<2x32xf32>
    %966 = arith.mulf %961, %965 : vector<2x32xf32>
    %967 = tpu.concatenate %941, %966 in 1 : vector<2x32xf32>, vector<2x32xf32> -> vector<2x64xf32>
    %c12_197 = arith.constant 12 : index
    %c0_198 = arith.constant 0 : index
    %968 = vector.load %arg9[%c12_197, %c0_198] : memref<16x64xf32, #tpu.memory_space<vmem>>, vector<2x32xf32>
    tpu.vector_store %arg9[%c12_197, %c0_198], %941 {strides = array<i32>} : memref<16x64xf32, #tpu.memory_space<vmem>>, vector<2x32xf32>,
    %c2_199 = arith.constant 2 : index
    %c32_200 = arith.constant 32 : index
    %969 = vector.load %arg9[%c2_199, %c32_200] : memref<16x64xf32, #tpu.memory_space<vmem>>, vector<2x32xf32>
    tpu.vector_store %arg9[%c2_199, %c32_200], %966 {strides = array<i32>} : memref<16x64xf32, #tpu.memory_space<vmem>>, vector<2x32xf32>,
    %970 = arith.truncf %967 : vector<2x64xf32> to vector<2x64xbf16>
    %cst_201 = arith.constant dense<0.000000e+00> : vector<2x256xf32>
    %971 = tpu.matmul %970, %541, %cst_201 {dimension_numbers = #tpu.dot_dimension_numbers<[1], [0], [0], [1], [0, 0, 1, 1], [], []>} : vector<2x64xbf16>, vector<64x256xbf16>, vector<2x256xf32> -> vector<2x256xf32>
    %972 = vector.extract_strided_slice %539 {offsets = [14, 0], sizes = [2, 128], strides = [1, 1]} : vector<16x256xf32> to vector<2x128xf32>
    %973 = vector.extract_strided_slice %971 {offsets = [0, 0], sizes = [2, 128], strides = [1, 1]} : vector<2x256xf32> to vector<2x128xf32>
    %974 = arith.addf %972, %973 : vector<2x128xf32>
    %975 = vector.extract_strided_slice %539 {offsets = [0, 128], sizes = [2, 128], strides = [1, 1]} : vector<16x256xf32> to vector<2x128xf32>
    %976 = vector.extract_strided_slice %971 {offsets = [0, 128], sizes = [2, 128], strides = [1, 1]} : vector<2x256xf32> to vector<2x128xf32>
    %977 = arith.addf %975, %976 : vector<2x128xf32>
    %978 = vector.extract_strided_slice %974 {offsets = [0, 0], sizes = [2, 32], strides = [1, 1]} : vector<2x128xf32> to vector<2x32xf32>
    %979 = arith.negf %978 : vector<2x32xf32>
    %980 = math.exp %979 : vector<2x32xf32>
    %cst_202 = arith.constant 1.000000e+00 : f32
    %981 = vector.broadcast %cst_202 : f32 to vector<2x32xf32>
    %982 = arith.addf %981, %980 : vector<2x32xf32>
    %983 = arith.divf %981, %982 : vector<2x32xf32>
    %984 = vector.extract_strided_slice %974 {offsets = [0, 32], sizes = [2, 32], strides = [1, 1]} : vector<2x128xf32> to vector<2x32xf32>
    %985 = arith.negf %984 : vector<2x32xf32>
    %986 = math.exp %985 : vector<2x32xf32>
    %cst_203 = arith.constant 1.000000e+00 : f32
    %987 = vector.broadcast %cst_203 : f32 to vector<2x32xf32>
    %988 = arith.addf %987, %986 : vector<2x32xf32>
    %989 = arith.divf %987, %988 : vector<2x32xf32>
    %990 = vector.extract_strided_slice %974 {offsets = [0, 64], sizes = [2, 32], strides = [1, 1]} : vector<2x128xf32> to vector<2x32xf32>
    %991 = math.tanh %990 : vector<2x32xf32>
    %992 = vector.extract_strided_slice %974 {offsets = [0, 96], sizes = [2, 32], strides = [1, 1]} : vector<2x128xf32> to vector<2x32xf32>
    %993 = arith.negf %992 : vector<2x32xf32>
    %994 = math.exp %993 : vector<2x32xf32>
    %cst_204 = arith.constant 1.000000e+00 : f32
    %995 = vector.broadcast %cst_204 : f32 to vector<2x32xf32>
    %996 = arith.addf %995, %994 : vector<2x32xf32>
    %997 = arith.divf %995, %996 : vector<2x32xf32>
    %998 = arith.mulf %989, %939 : vector<2x32xf32>
    %999 = arith.mulf %983, %991 : vector<2x32xf32>
    %1000 = arith.addf %998, %999 : vector<2x32xf32>
    %1001 = math.tanh %1000 : vector<2x32xf32>
    %1002 = arith.mulf %997, %1001 : vector<2x32xf32>
    %1003 = vector.extract_strided_slice %977 {offsets = [0, 0], sizes = [2, 32], strides = [1, 1]} : vector<2x128xf32> to vector<2x32xf32>
    %1004 = arith.negf %1003 : vector<2x32xf32>
    %1005 = math.exp %1004 : vector<2x32xf32>
    %cst_205 = arith.constant 1.000000e+00 : f32
    %1006 = vector.broadcast %cst_205 : f32 to vector<2x32xf32>
    %1007 = arith.addf %1006, %1005 : vector<2x32xf32>
    %1008 = arith.divf %1006, %1007 : vector<2x32xf32>
    %1009 = vector.extract_strided_slice %977 {offsets = [0, 32], sizes = [2, 32], strides = [1, 1]} : vector<2x128xf32> to vector<2x32xf32>
    %1010 = arith.negf %1009 : vector<2x32xf32>
    %1011 = math.exp %1010 : vector<2x32xf32>
    %cst_206 = arith.constant 1.000000e+00 : f32
    %1012 = vector.broadcast %cst_206 : f32 to vector<2x32xf32>
    %1013 = arith.addf %1012, %1011 : vector<2x32xf32>
    %1014 = arith.divf %1012, %1013 : vector<2x32xf32>
    %1015 = vector.extract_strided_slice %977 {offsets = [0, 64], sizes = [2, 32], strides = [1, 1]} : vector<2x128xf32> to vector<2x32xf32>
    %1016 = math.tanh %1015 : vector<2x32xf32>
    %1017 = vector.extract_strided_slice %977 {offsets = [0, 96], sizes = [2, 32], strides = [1, 1]} : vector<2x128xf32> to vector<2x32xf32>
    %1018 = arith.negf %1017 : vector<2x32xf32>
    %1019 = math.exp %1018 : vector<2x32xf32>
    %cst_207 = arith.constant 1.000000e+00 : f32
    %1020 = vector.broadcast %cst_207 : f32 to vector<2x32xf32>
    %1021 = arith.addf %1020, %1019 : vector<2x32xf32>
    %1022 = arith.divf %1020, %1021 : vector<2x32xf32>
    %1023 = arith.mulf %1014, %964 : vector<2x32xf32>
    %1024 = arith.mulf %1008, %1016 : vector<2x32xf32>
    %1025 = arith.addf %1023, %1024 : vector<2x32xf32>
    %1026 = math.tanh %1025 : vector<2x32xf32>
    %1027 = arith.mulf %1022, %1026 : vector<2x32xf32>
    %c14_208 = arith.constant 14 : index
    %c0_209 = arith.constant 0 : index
    %1028 = vector.load %arg9[%c14_208, %c0_209] : memref<16x64xf32, #tpu.memory_space<vmem>>, vector<2x32xf32>
    tpu.vector_store %arg9[%c14_208, %c0_209], %1002 {strides = array<i32>} : memref<16x64xf32, #tpu.memory_space<vmem>>, vector<2x32xf32>,
    %c0_210 = arith.constant 0 : index
    %c32_211 = arith.constant 32 : index
    %1029 = vector.load %arg9[%c0_210, %c32_211] : memref<16x64xf32, #tpu.memory_space<vmem>>, vector<2x32xf32>
    tpu.vector_store %arg9[%c0_210, %c32_211], %1027 {strides = array<i32>} : memref<16x64xf32, #tpu.memory_space<vmem>>, vector<2x32xf32>,
    %c0_212 = arith.constant 0 : index
    %c0_213 = arith.constant 0 : index
    %1030 = vector.load %arg9[%c0_212, %c0_213] : memref<16x64xf32, #tpu.memory_space<vmem>>, vector<16x64xf32>
    %1031 = arith.truncf %1030 : vector<16x64xf32> to vector<16x64xbf16>
    %c1_214 = arith.constant 1 : index
    %c0_215 = arith.constant 0 : index
    %c0_216 = arith.constant 0 : index
    %1032 = vector.load %arg4[%c1_214, %c0_215, %c0_216] : memref<3x64x16xbf16, #tpu.memory_space<vmem>>, vector<1x64x16xbf16>
    %1033 = vector.shape_cast %1032 : vector<1x64x16xbf16> to vector<64x16xbf16>
    %cst_217 = arith.constant dense<0.000000e+00> : vector<16x16xf32>
    %1034 = tpu.matmul %1031, %1033, %cst_217 {dimension_numbers = #tpu.dot_dimension_numbers<[1], [0], [0], [1], [0, 0, 1, 1], [], []>} : vector<16x64xbf16>, vector<64x16xbf16>, vector<16x16xf32> -> vector<16x16xf32>
    %c1_218 = arith.constant 1 : index
    %c0_219 = arith.constant 0 : index
    %c0_220 = arith.constant 0 : index
    %1035 = vector.load %arg5[%c1_218, %c0_219, %c0_220] : memref<3x1x16xf32, #tpu.memory_space<vmem>>, vector<1x1x16xf32>
    %1036 = vector.shape_cast %1035 : vector<1x1x16xf32> to vector<1x16xf32>
    %1037 = vector.broadcast %1036 : vector<1x16xf32> to vector<16x16xf32>
    %1038 = arith.addf %1034, %1037 : vector<16x16xf32>
    %cst_221 = arith.constant dense<0.000000e+00> : vector<16xf32>
    %1039 = vector.multi_reduction <add>, %1038, %cst_221 [1] : vector<16x16xf32> to vector<16xf32>
    %1040 = vector.shape_cast %1039 : vector<16xf32> to vector<16x1xf32>
    %cst_222 = arith.constant 1.600000e+01 : f32
    %1041 = vector.broadcast %cst_222 : f32 to vector<16x1xf32>
    %1042 = arith.divf %1040, %1041 : vector<16x1xf32>
    %1043 = vector.broadcast %1042 : vector<16x1xf32> to vector<16x16xf32>
    %1044 = arith.subf %1038, %1043 : vector<16x16xf32>
    %1045 = arith.mulf %1044, %1044 : vector<16x16xf32>
    %cst_223 = arith.constant dense<0.000000e+00> : vector<16xf32>
    %1046 = vector.multi_reduction <add>, %1045, %cst_223 [1] : vector<16x16xf32> to vector<16xf32>
    %1047 = vector.shape_cast %1046 : vector<16xf32> to vector<16x1xf32>
    %cst_224 = arith.constant 1.600000e+01 : f32
    %1048 = vector.broadcast %cst_224 : f32 to vector<16x1xf32>
    %1049 = arith.divf %1047, %1048 : vector<16x1xf32>
    %1050 = vector.broadcast %1042 : vector<16x1xf32> to vector<16x16xf32>
    %1051 = arith.subf %1038, %1050 : vector<16x16xf32>
    %cst_225 = arith.constant 9.99999974E-6 : f32
    %1052 = vector.broadcast %cst_225 : f32 to vector<16x1xf32>
    %1053 = arith.addf %1049, %1052 : vector<16x1xf32>
    %1054 = math.rsqrt %1053 : vector<16x1xf32>
    %1055 = vector.broadcast %1054 : vector<16x1xf32> to vector<16x16xf32>
    %1056 = arith.mulf %1051, %1055 : vector<16x16xf32>
    %c1_226 = arith.constant 1 : index
    %c0_227 = arith.constant 0 : index
    %c0_228 = arith.constant 0 : index
    %1057 = vector.load %arg6[%c1_226, %c0_227, %c0_228] : memref<3x16x16xf32, #tpu.memory_space<vmem>>, vector<1x16x16xf32>
    %1058 = vector.shape_cast %1057 : vector<1x16x16xf32> to vector<16x16xf32>
    %1059 = arith.mulf %1056, %1058 : vector<16x16xf32>
    %1060 = arith.addf %532, %1059 : vector<16x16xf32>
    %c1_229 = arith.constant 1 : index
    %c0_230 = arith.constant 0 : index
    %c0_231 = arith.constant 0 : index
    %1061 = vector.load %arg7[%c1_229, %c0_230, %c0_231] : memref<3x16x16xf32, #tpu.memory_space<vmem>>, vector<1x16x16xf32>
    %1062 = vector.shape_cast %1061 : vector<1x16x16xf32> to vector<16x16xf32>
    %1063 = arith.addf %1060, %1062 : vector<16x16xf32>
    %c2_232 = arith.constant 2 : index
    %c0_233 = arith.constant 0 : index
    %c0_234 = arith.constant 0 : index
    %1064 = vector.load %arg1[%c2_232, %c0_233, %c0_234] : memref<3x16x256xbf16, #tpu.memory_space<vmem>>, vector<1x16x256xbf16>
    %1065 = vector.shape_cast %1064 : vector<1x16x256xbf16> to vector<16x256xbf16>
    %cst_235 = arith.constant dense<0.000000e+00> : vector<16x256xf32>
    %1066 = tpu.matmul %0, %1065, %cst_235 {dimension_numbers = #tpu.dot_dimension_numbers<[1], [0], [0], [1], [0, 0, 1, 1], [], []>} : vector<16x16xbf16>, vector<16x256xbf16>, vector<16x256xf32> -> vector<16x256xf32>
    %c2_236 = arith.constant 2 : index
    %c0_237 = arith.constant 0 : index
    %c0_238 = arith.constant 0 : index
    %1067 = vector.load %arg2[%c2_236, %c0_237, %c0_238] : memref<3x1x256xf32, #tpu.memory_space<vmem>>, vector<1x1x256xf32>
    %1068 = vector.shape_cast %1067 : vector<1x1x256xf32> to vector<1x256xf32>
    %1069 = vector.broadcast %1068 : vector<1x256xf32> to vector<16x256xf32>
    %1070 = arith.addf %1066, %1069 : vector<16x256xf32>
    %c2_239 = arith.constant 2 : index
    %c0_240 = arith.constant 0 : index
    %c0_241 = arith.constant 0 : index
    %1071 = vector.load %arg3[%c2_239, %c0_240, %c0_241] : memref<3x64x256xbf16, #tpu.memory_space<vmem>>, vector<1x64x256xbf16>
    %1072 = vector.shape_cast %1071 : vector<1x64x256xbf16> to vector<64x256xbf16>
    %cst_242 = arith.constant 0.000000e+00 : f32
    %1073 = vector.broadcast %cst_242 : f32 to vector<2x32xf32>
    %cst_243 = arith.constant 0.000000e+00 : f32
    %1074 = vector.broadcast %cst_243 : f32 to vector<2x32xf32>
    %cst_244 = arith.constant 0.000000e+00 : f32
    %1075 = vector.broadcast %cst_244 : f32 to vector<2x256xf32>
    %1076 = vector.extract_strided_slice %1070 {offsets = [0, 0], sizes = [2, 128], strides = [1, 1]} : vector<16x256xf32> to vector<2x128xf32>
    %1077 = vector.extract_strided_slice %1075 {offsets = [0, 0], sizes = [2, 128], strides = [1, 1]} : vector<2x256xf32> to vector<2x128xf32>
    %1078 = arith.addf %1076, %1077 : vector<2x128xf32>
    %1079 = vector.extract_strided_slice %1070 {offsets = [14, 128], sizes = [2, 128], strides = [1, 1]} : vector<16x256xf32> to vector<2x128xf32>
    %1080 = vector.extract_strided_slice %1075 {offsets = [0, 128], sizes = [2, 128], strides = [1, 1]} : vector<2x256xf32> to vector<2x128xf32>
    %1081 = arith.addf %1079, %1080 : vector<2x128xf32>
    %1082 = vector.extract_strided_slice %1078 {offsets = [0, 0], sizes = [2, 32], strides = [1, 1]} : vector<2x128xf32> to vector<2x32xf32>
    %1083 = arith.negf %1082 : vector<2x32xf32>
    %1084 = math.exp %1083 : vector<2x32xf32>
    %cst_245 = arith.constant 1.000000e+00 : f32
    %1085 = vector.broadcast %cst_245 : f32 to vector<2x32xf32>
    %1086 = arith.addf %1085, %1084 : vector<2x32xf32>
    %1087 = arith.divf %1085, %1086 : vector<2x32xf32>
    %1088 = vector.extract_strided_slice %1078 {offsets = [0, 32], sizes = [2, 32], strides = [1, 1]} : vector<2x128xf32> to vector<2x32xf32>
    %1089 = arith.negf %1088 : vector<2x32xf32>
    %1090 = math.exp %1089 : vector<2x32xf32>
    %cst_246 = arith.constant 1.000000e+00 : f32
    %1091 = vector.broadcast %cst_246 : f32 to vector<2x32xf32>
    %1092 = arith.addf %1091, %1090 : vector<2x32xf32>
    %1093 = arith.divf %1091, %1092 : vector<2x32xf32>
    %1094 = vector.extract_strided_slice %1078 {offsets = [0, 64], sizes = [2, 32], strides = [1, 1]} : vector<2x128xf32> to vector<2x32xf32>
    %1095 = math.tanh %1094 : vector<2x32xf32>
    %1096 = vector.extract_strided_slice %1078 {offsets = [0, 96], sizes = [2, 32], strides = [1, 1]} : vector<2x128xf32> to vector<2x32xf32>
    %1097 = arith.negf %1096 : vector<2x32xf32>
    %1098 = math.exp %1097 : vector<2x32xf32>
    %cst_247 = arith.constant 1.000000e+00 : f32
    %1099 = vector.broadcast %cst_247 : f32 to vector<2x32xf32>
    %1100 = arith.addf %1099, %1098 : vector<2x32xf32>
    %1101 = arith.divf %1099, %1100 : vector<2x32xf32>
    %1102 = arith.mulf %1093, %1073 : vector<2x32xf32>
    %1103 = arith.mulf %1087, %1095 : vector<2x32xf32>
    %1104 = arith.addf %1102, %1103 : vector<2x32xf32>
    %1105 = math.tanh %1104 : vector<2x32xf32>
    %1106 = arith.mulf %1101, %1105 : vector<2x32xf32>
    %1107 = vector.extract_strided_slice %1081 {offsets = [0, 0], sizes = [2, 32], strides = [1, 1]} : vector<2x128xf32> to vector<2x32xf32>
    %1108 = arith.negf %1107 : vector<2x32xf32>
    %1109 = math.exp %1108 : vector<2x32xf32>
    %cst_248 = arith.constant 1.000000e+00 : f32
    %1110 = vector.broadcast %cst_248 : f32 to vector<2x32xf32>
    %1111 = arith.addf %1110, %1109 : vector<2x32xf32>
    %1112 = arith.divf %1110, %1111 : vector<2x32xf32>
    %1113 = vector.extract_strided_slice %1081 {offsets = [0, 32], sizes = [2, 32], strides = [1, 1]} : vector<2x128xf32> to vector<2x32xf32>
    %1114 = arith.negf %1113 : vector<2x32xf32>
    %1115 = math.exp %1114 : vector<2x32xf32>
    %cst_249 = arith.constant 1.000000e+00 : f32
    %1116 = vector.broadcast %cst_249 : f32 to vector<2x32xf32>
    %1117 = arith.addf %1116, %1115 : vector<2x32xf32>
    %1118 = arith.divf %1116, %1117 : vector<2x32xf32>
    %1119 = vector.extract_strided_slice %1081 {offsets = [0, 64], sizes = [2, 32], strides = [1, 1]} : vector<2x128xf32> to vector<2x32xf32>
    %1120 = math.tanh %1119 : vector<2x32xf32>
    %1121 = vector.extract_strided_slice %1081 {offsets = [0, 96], sizes = [2, 32], strides = [1, 1]} : vector<2x128xf32> to vector<2x32xf32>
    %1122 = arith.negf %1121 : vector<2x32xf32>
    %1123 = math.exp %1122 : vector<2x32xf32>
    %cst_250 = arith.constant 1.000000e+00 : f32
    %1124 = vector.broadcast %cst_250 : f32 to vector<2x32xf32>
    %1125 = arith.addf %1124, %1123 : vector<2x32xf32>
    %1126 = arith.divf %1124, %1125 : vector<2x32xf32>
    %1127 = arith.mulf %1118, %1074 : vector<2x32xf32>
    %1128 = arith.mulf %1112, %1120 : vector<2x32xf32>
    %1129 = arith.addf %1127, %1128 : vector<2x32xf32>
    %1130 = math.tanh %1129 : vector<2x32xf32>
    %1131 = arith.mulf %1126, %1130 : vector<2x32xf32>
    %1132 = tpu.concatenate %1106, %1131 in 1 : vector<2x32xf32>, vector<2x32xf32> -> vector<2x64xf32>
    %c0_251 = arith.constant 0 : index
    %c0_252 = arith.constant 0 : index
    %1133 = vector.load %arg9[%c0_251, %c0_252] : memref<16x64xf32, #tpu.memory_space<vmem>>, vector<2x32xf32>
    tpu.vector_store %arg9[%c0_251, %c0_252], %1106 {strides = array<i32>} : memref<16x64xf32, #tpu.memory_space<vmem>>, vector<2x32xf32>,
    %c14_253 = arith.constant 14 : index
    %c32_254 = arith.constant 32 : index
    %1134 = vector.load %arg9[%c14_253, %c32_254] : memref<16x64xf32, #tpu.memory_space<vmem>>, vector<2x32xf32>
    tpu.vector_store %arg9[%c14_253, %c32_254], %1131 {strides = array<i32>} : memref<16x64xf32, #tpu.memory_space<vmem>>, vector<2x32xf32>,
    %1135 = arith.truncf %1132 : vector<2x64xf32> to vector<2x64xbf16>
    %cst_255 = arith.constant dense<0.000000e+00> : vector<2x256xf32>
    %1136 = tpu.matmul %1135, %1072, %cst_255 {dimension_numbers = #tpu.dot_dimension_numbers<[1], [0], [0], [1], [0, 0, 1, 1], [], []>} : vector<2x64xbf16>, vector<64x256xbf16>, vector<2x256xf32> -> vector<2x256xf32>
    %1137 = vector.extract_strided_slice %1070 {offsets = [2, 0], sizes = [2, 128], strides = [1, 1]} : vector<16x256xf32> to vector<2x128xf32>
    %1138 = vector.extract_strided_slice %1136 {offsets = [0, 0], sizes = [2, 128], strides = [1, 1]} : vector<2x256xf32> to vector<2x128xf32>
    %1139 = arith.addf %1137, %1138 : vector<2x128xf32>
    %1140 = vector.extract_strided_slice %1070 {offsets = [12, 128], sizes = [2, 128], strides = [1, 1]} : vector<16x256xf32> to vector<2x128xf32>
    %1141 = vector.extract_strided_slice %1136 {offsets = [0, 128], sizes = [2, 128], strides = [1, 1]} : vector<2x256xf32> to vector<2x128xf32>
    %1142 = arith.addf %1140, %1141 : vector<2x128xf32>
    %1143 = vector.extract_strided_slice %1139 {offsets = [0, 0], sizes = [2, 32], strides = [1, 1]} : vector<2x128xf32> to vector<2x32xf32>
    %1144 = arith.negf %1143 : vector<2x32xf32>
    %1145 = math.exp %1144 : vector<2x32xf32>
    %cst_256 = arith.constant 1.000000e+00 : f32
    %1146 = vector.broadcast %cst_256 : f32 to vector<2x32xf32>
    %1147 = arith.addf %1146, %1145 : vector<2x32xf32>
    %1148 = arith.divf %1146, %1147 : vector<2x32xf32>
    %1149 = vector.extract_strided_slice %1139 {offsets = [0, 32], sizes = [2, 32], strides = [1, 1]} : vector<2x128xf32> to vector<2x32xf32>
    %1150 = arith.negf %1149 : vector<2x32xf32>
    %1151 = math.exp %1150 : vector<2x32xf32>
    %cst_257 = arith.constant 1.000000e+00 : f32
    %1152 = vector.broadcast %cst_257 : f32 to vector<2x32xf32>
    %1153 = arith.addf %1152, %1151 : vector<2x32xf32>
    %1154 = arith.divf %1152, %1153 : vector<2x32xf32>
    %1155 = vector.extract_strided_slice %1139 {offsets = [0, 64], sizes = [2, 32], strides = [1, 1]} : vector<2x128xf32> to vector<2x32xf32>
    %1156 = math.tanh %1155 : vector<2x32xf32>
    %1157 = vector.extract_strided_slice %1139 {offsets = [0, 96], sizes = [2, 32], strides = [1, 1]} : vector<2x128xf32> to vector<2x32xf32>
    %1158 = arith.negf %1157 : vector<2x32xf32>
    %1159 = math.exp %1158 : vector<2x32xf32>
    %cst_258 = arith.constant 1.000000e+00 : f32
    %1160 = vector.broadcast %cst_258 : f32 to vector<2x32xf32>
    %1161 = arith.addf %1160, %1159 : vector<2x32xf32>
    %1162 = arith.divf %1160, %1161 : vector<2x32xf32>
    %1163 = arith.mulf %1154, %1104 : vector<2x32xf32>
    %1164 = arith.mulf %1148, %1156 : vector<2x32xf32>
    %1165 = arith.addf %1163, %1164 : vector<2x32xf32>
    %1166 = math.tanh %1165 : vector<2x32xf32>
    %1167 = arith.mulf %1162, %1166 : vector<2x32xf32>
    %1168 = vector.extract_strided_slice %1142 {offsets = [0, 0], sizes = [2, 32], strides = [1, 1]} : vector<2x128xf32> to vector<2x32xf32>
    %1169 = arith.negf %1168 : vector<2x32xf32>
    %1170 = math.exp %1169 : vector<2x32xf32>
    %cst_259 = arith.constant 1.000000e+00 : f32
    %1171 = vector.broadcast %cst_259 : f32 to vector<2x32xf32>
    %1172 = arith.addf %1171, %1170 : vector<2x32xf32>
    %1173 = arith.divf %1171, %1172 : vector<2x32xf32>
    %1174 = vector.extract_strided_slice %1142 {offsets = [0, 32], sizes = [2, 32], strides = [1, 1]} : vector<2x128xf32> to vector<2x32xf32>
    %1175 = arith.negf %1174 : vector<2x32xf32>
    %1176 = math.exp %1175 : vector<2x32xf32>
    %cst_260 = arith.constant 1.000000e+00 : f32
    %1177 = vector.broadcast %cst_260 : f32 to vector<2x32xf32>
    %1178 = arith.addf %1177, %1176 : vector<2x32xf32>
    %1179 = arith.divf %1177, %1178 : vector<2x32xf32>
    %1180 = vector.extract_strided_slice %1142 {offsets = [0, 64], sizes = [2, 32], strides = [1, 1]} : vector<2x128xf32> to vector<2x32xf32>
    %1181 = math.tanh %1180 : vector<2x32xf32>
    %1182 = vector.extract_strided_slice %1142 {offsets = [0, 96], sizes = [2, 32], strides = [1, 1]} : vector<2x128xf32> to vector<2x32xf32>
    %1183 = arith.negf %1182 : vector<2x32xf32>
    %1184 = math.exp %1183 : vector<2x32xf32>
    %cst_261 = arith.constant 1.000000e+00 : f32
    %1185 = vector.broadcast %cst_261 : f32 to vector<2x32xf32>
    %1186 = arith.addf %1185, %1184 : vector<2x32xf32>
    %1187 = arith.divf %1185, %1186 : vector<2x32xf32>
    %1188 = arith.mulf %1179, %1129 : vector<2x32xf32>
    %1189 = arith.mulf %1173, %1181 : vector<2x32xf32>
    %1190 = arith.addf %1188, %1189 : vector<2x32xf32>
    %1191 = math.tanh %1190 : vector<2x32xf32>
    %1192 = arith.mulf %1187, %1191 : vector<2x32xf32>
    %1193 = tpu.concatenate %1167, %1192 in 1 : vector<2x32xf32>, vector<2x32xf32> -> vector<2x64xf32>
    %c2_262 = arith.constant 2 : index
    %c0_263 = arith.constant 0 : index
    %1194 = vector.load %arg9[%c2_262, %c0_263] : memref<16x64xf32, #tpu.memory_space<vmem>>, vector<2x32xf32>
    tpu.vector_store %arg9[%c2_262, %c0_263], %1167 {strides = array<i32>} : memref<16x64xf32, #tpu.memory_space<vmem>>, vector<2x32xf32>,
    %c12_264 = arith.constant 12 : index
    %c32_265 = arith.constant 32 : index
    %1195 = vector.load %arg9[%c12_264, %c32_265] : memref<16x64xf32, #tpu.memory_space<vmem>>, vector<2x32xf32>
    tpu.vector_store %arg9[%c12_264, %c32_265], %1192 {strides = array<i32>} : memref<16x64xf32, #tpu.memory_space<vmem>>, vector<2x32xf32>,
    %1196 = arith.truncf %1193 : vector<2x64xf32> to vector<2x64xbf16>
    %cst_266 = arith.constant dense<0.000000e+00> : vector<2x256xf32>
    %1197 = tpu.matmul %1196, %1072, %cst_266 {dimension_numbers = #tpu.dot_dimension_numbers<[1], [0], [0], [1], [0, 0, 1, 1], [], []>} : vector<2x64xbf16>, vector<64x256xbf16>, vector<2x256xf32> -> vector<2x256xf32>
    %1198 = vector.extract_strided_slice %1070 {offsets = [4, 0], sizes = [2, 128], strides = [1, 1]} : vector<16x256xf32> to vector<2x128xf32>
    %1199 = vector.extract_strided_slice %1197 {offsets = [0, 0], sizes = [2, 128], strides = [1, 1]} : vector<2x256xf32> to vector<2x128xf32>
    %1200 = arith.addf %1198, %1199 : vector<2x128xf32>
    %1201 = vector.extract_strided_slice %1070 {offsets = [10, 128], sizes = [2, 128], strides = [1, 1]} : vector<16x256xf32> to vector<2x128xf32>
    %1202 = vector.extract_strided_slice %1197 {offsets = [0, 128], sizes = [2, 128], strides = [1, 1]} : vector<2x256xf32> to vector<2x128xf32>
    %1203 = arith.addf %1201, %1202 : vector<2x128xf32>
    %1204 = vector.extract_strided_slice %1200 {offsets = [0, 0], sizes = [2, 32], strides = [1, 1]} : vector<2x128xf32> to vector<2x32xf32>
    %1205 = arith.negf %1204 : vector<2x32xf32>
    %1206 = math.exp %1205 : vector<2x32xf32>
    %cst_267 = arith.constant 1.000000e+00 : f32
    %1207 = vector.broadcast %cst_267 : f32 to vector<2x32xf32>
    %1208 = arith.addf %1207, %1206 : vector<2x32xf32>
    %1209 = arith.divf %1207, %1208 : vector<2x32xf32>
    %1210 = vector.extract_strided_slice %1200 {offsets = [0, 32], sizes = [2, 32], strides = [1, 1]} : vector<2x128xf32> to vector<2x32xf32>
    %1211 = arith.negf %1210 : vector<2x32xf32>
    %1212 = math.exp %1211 : vector<2x32xf32>
    %cst_268 = arith.constant 1.000000e+00 : f32
    %1213 = vector.broadcast %cst_268 : f32 to vector<2x32xf32>
    %1214 = arith.addf %1213, %1212 : vector<2x32xf32>
    %1215 = arith.divf %1213, %1214 : vector<2x32xf32>
    %1216 = vector.extract_strided_slice %1200 {offsets = [0, 64], sizes = [2, 32], strides = [1, 1]} : vector<2x128xf32> to vector<2x32xf32>
    %1217 = math.tanh %1216 : vector<2x32xf32>
    %1218 = vector.extract_strided_slice %1200 {offsets = [0, 96], sizes = [2, 32], strides = [1, 1]} : vector<2x128xf32> to vector<2x32xf32>
    %1219 = arith.negf %1218 : vector<2x32xf32>
    %1220 = math.exp %1219 : vector<2x32xf32>
    %cst_269 = arith.constant 1.000000e+00 : f32
    %1221 = vector.broadcast %cst_269 : f32 to vector<2x32xf32>
    %1222 = arith.addf %1221, %1220 : vector<2x32xf32>
    %1223 = arith.divf %1221, %1222 : vector<2x32xf32>
    %1224 = arith.mulf %1215, %1165 : vector<2x32xf32>
    %1225 = arith.mulf %1209, %1217 : vector<2x32xf32>
    %1226 = arith.addf %1224, %1225 : vector<2x32xf32>
    %1227 = math.tanh %1226 : vector<2x32xf32>
    %1228 = arith.mulf %1223, %1227 : vector<2x32xf32>
    %1229 = vector.extract_strided_slice %1203 {offsets = [0, 0], sizes = [2, 32], strides = [1, 1]} : vector<2x128xf32> to vector<2x32xf32>
    %1230 = arith.negf %1229 : vector<2x32xf32>
    %1231 = math.exp %1230 : vector<2x32xf32>
    %cst_270 = arith.constant 1.000000e+00 : f32
    %1232 = vector.broadcast %cst_270 : f32 to vector<2x32xf32>
    %1233 = arith.addf %1232, %1231 : vector<2x32xf32>
    %1234 = arith.divf %1232, %1233 : vector<2x32xf32>
    %1235 = vector.extract_strided_slice %1203 {offsets = [0, 32], sizes = [2, 32], strides = [1, 1]} : vector<2x128xf32> to vector<2x32xf32>
    %1236 = arith.negf %1235 : vector<2x32xf32>
    %1237 = math.exp %1236 : vector<2x32xf32>
    %cst_271 = arith.constant 1.000000e+00 : f32
    %1238 = vector.broadcast %cst_271 : f32 to vector<2x32xf32>
    %1239 = arith.addf %1238, %1237 : vector<2x32xf32>
    %1240 = arith.divf %1238, %1239 : vector<2x32xf32>
    %1241 = vector.extract_strided_slice %1203 {offsets = [0, 64], sizes = [2, 32], strides = [1, 1]} : vector<2x128xf32> to vector<2x32xf32>
    %1242 = math.tanh %1241 : vector<2x32xf32>
    %1243 = vector.extract_strided_slice %1203 {offsets = [0, 96], sizes = [2, 32], strides = [1, 1]} : vector<2x128xf32> to vector<2x32xf32>
    %1244 = arith.negf %1243 : vector<2x32xf32>
    %1245 = math.exp %1244 : vector<2x32xf32>
    %cst_272 = arith.constant 1.000000e+00 : f32
    %1246 = vector.broadcast %cst_272 : f32 to vector<2x32xf32>
    %1247 = arith.addf %1246, %1245 : vector<2x32xf32>
    %1248 = arith.divf %1246, %1247 : vector<2x32xf32>
    %1249 = arith.mulf %1240, %1190 : vector<2x32xf32>
    %1250 = arith.mulf %1234, %1242 : vector<2x32xf32>
    %1251 = arith.addf %1249, %1250 : vector<2x32xf32>
    %1252 = math.tanh %1251 : vector<2x32xf32>
    %1253 = arith.mulf %1248, %1252 : vector<2x32xf32>
    %1254 = tpu.concatenate %1228, %1253 in 1 : vector<2x32xf32>, vector<2x32xf32> -> vector<2x64xf32>
    %c4_273 = arith.constant 4 : index
    %c0_274 = arith.constant 0 : index
    %1255 = vector.load %arg9[%c4_273, %c0_274] : memref<16x64xf32, #tpu.memory_space<vmem>>, vector<2x32xf32>
    tpu.vector_store %arg9[%c4_273, %c0_274], %1228 {strides = array<i32>} : memref<16x64xf32, #tpu.memory_space<vmem>>, vector<2x32xf32>,
    %c10_275 = arith.constant 10 : index
    %c32_276 = arith.constant 32 : index
    %1256 = vector.load %arg9[%c10_275, %c32_276] : memref<16x64xf32, #tpu.memory_space<vmem>>, vector<2x32xf32>
    tpu.vector_store %arg9[%c10_275, %c32_276], %1253 {strides = array<i32>} : memref<16x64xf32, #tpu.memory_space<vmem>>, vector<2x32xf32>,
    %1257 = arith.truncf %1254 : vector<2x64xf32> to vector<2x64xbf16>
    %cst_277 = arith.constant dense<0.000000e+00> : vector<2x256xf32>
    %1258 = tpu.matmul %1257, %1072, %cst_277 {dimension_numbers = #tpu.dot_dimension_numbers<[1], [0], [0], [1], [0, 0, 1, 1], [], []>} : vector<2x64xbf16>, vector<64x256xbf16>, vector<2x256xf32> -> vector<2x256xf32>
    %1259 = vector.extract_strided_slice %1070 {offsets = [6, 0], sizes = [2, 128], strides = [1, 1]} : vector<16x256xf32> to vector<2x128xf32>
    %1260 = vector.extract_strided_slice %1258 {offsets = [0, 0], sizes = [2, 128], strides = [1, 1]} : vector<2x256xf32> to vector<2x128xf32>
    %1261 = arith.addf %1259, %1260 : vector<2x128xf32>
    %1262 = vector.extract_strided_slice %1070 {offsets = [8, 128], sizes = [2, 128], strides = [1, 1]} : vector<16x256xf32> to vector<2x128xf32>
    %1263 = vector.extract_strided_slice %1258 {offsets = [0, 128], sizes = [2, 128], strides = [1, 1]} : vector<2x256xf32> to vector<2x128xf32>
    %1264 = arith.addf %1262, %1263 : vector<2x128xf32>
    %1265 = vector.extract_strided_slice %1261 {offsets = [0, 0], sizes = [2, 32], strides = [1, 1]} : vector<2x128xf32> to vector<2x32xf32>
    %1266 = arith.negf %1265 : vector<2x32xf32>
    %1267 = math.exp %1266 : vector<2x32xf32>
    %cst_278 = arith.constant 1.000000e+00 : f32
    %1268 = vector.broadcast %cst_278 : f32 to vector<2x32xf32>
    %1269 = arith.addf %1268, %1267 : vector<2x32xf32>
    %1270 = arith.divf %1268, %1269 : vector<2x32xf32>
    %1271 = vector.extract_strided_slice %1261 {offsets = [0, 32], sizes = [2, 32], strides = [1, 1]} : vector<2x128xf32> to vector<2x32xf32>
    %1272 = arith.negf %1271 : vector<2x32xf32>
    %1273 = math.exp %1272 : vector<2x32xf32>
    %cst_279 = arith.constant 1.000000e+00 : f32
    %1274 = vector.broadcast %cst_279 : f32 to vector<2x32xf32>
    %1275 = arith.addf %1274, %1273 : vector<2x32xf32>
    %1276 = arith.divf %1274, %1275 : vector<2x32xf32>
    %1277 = vector.extract_strided_slice %1261 {offsets = [0, 64], sizes = [2, 32], strides = [1, 1]} : vector<2x128xf32> to vector<2x32xf32>
    %1278 = math.tanh %1277 : vector<2x32xf32>
    %1279 = vector.extract_strided_slice %1261 {offsets = [0, 96], sizes = [2, 32], strides = [1, 1]} : vector<2x128xf32> to vector<2x32xf32>
    %1280 = arith.negf %1279 : vector<2x32xf32>
    %1281 = math.exp %1280 : vector<2x32xf32>
    %cst_280 = arith.constant 1.000000e+00 : f32
    %1282 = vector.broadcast %cst_280 : f32 to vector<2x32xf32>
    %1283 = arith.addf %1282, %1281 : vector<2x32xf32>
    %1284 = arith.divf %1282, %1283 : vector<2x32xf32>
    %1285 = arith.mulf %1276, %1226 : vector<2x32xf32>
    %1286 = arith.mulf %1270, %1278 : vector<2x32xf32>
    %1287 = arith.addf %1285, %1286 : vector<2x32xf32>
    %1288 = math.tanh %1287 : vector<2x32xf32>
    %1289 = arith.mulf %1284, %1288 : vector<2x32xf32>
    %1290 = vector.extract_strided_slice %1264 {offsets = [0, 0], sizes = [2, 32], strides = [1, 1]} : vector<2x128xf32> to vector<2x32xf32>
    %1291 = arith.negf %1290 : vector<2x32xf32>
    %1292 = math.exp %1291 : vector<2x32xf32>
    %cst_281 = arith.constant 1.000000e+00 : f32
    %1293 = vector.broadcast %cst_281 : f32 to vector<2x32xf32>
    %1294 = arith.addf %1293, %1292 : vector<2x32xf32>
    %1295 = arith.divf %1293, %1294 : vector<2x32xf32>
    %1296 = vector.extract_strided_slice %1264 {offsets = [0, 32], sizes = [2, 32], strides = [1, 1]} : vector<2x128xf32> to vector<2x32xf32>
    %1297 = arith.negf %1296 : vector<2x32xf32>
    %1298 = math.exp %1297 : vector<2x32xf32>
    %cst_282 = arith.constant 1.000000e+00 : f32
    %1299 = vector.broadcast %cst_282 : f32 to vector<2x32xf32>
    %1300 = arith.addf %1299, %1298 : vector<2x32xf32>
    %1301 = arith.divf %1299, %1300 : vector<2x32xf32>
    %1302 = vector.extract_strided_slice %1264 {offsets = [0, 64], sizes = [2, 32], strides = [1, 1]} : vector<2x128xf32> to vector<2x32xf32>
    %1303 = math.tanh %1302 : vector<2x32xf32>
    %1304 = vector.extract_strided_slice %1264 {offsets = [0, 96], sizes = [2, 32], strides = [1, 1]} : vector<2x128xf32> to vector<2x32xf32>
    %1305 = arith.negf %1304 : vector<2x32xf32>
    %1306 = math.exp %1305 : vector<2x32xf32>
    %cst_283 = arith.constant 1.000000e+00 : f32
    %1307 = vector.broadcast %cst_283 : f32 to vector<2x32xf32>
    %1308 = arith.addf %1307, %1306 : vector<2x32xf32>
    %1309 = arith.divf %1307, %1308 : vector<2x32xf32>
    %1310 = arith.mulf %1301, %1251 : vector<2x32xf32>
    %1311 = arith.mulf %1295, %1303 : vector<2x32xf32>
    %1312 = arith.addf %1310, %1311 : vector<2x32xf32>
    %1313 = math.tanh %1312 : vector<2x32xf32>
    %1314 = arith.mulf %1309, %1313 : vector<2x32xf32>
    %1315 = tpu.concatenate %1289, %1314 in 1 : vector<2x32xf32>, vector<2x32xf32> -> vector<2x64xf32>
    %c6_284 = arith.constant 6 : index
    %c0_285 = arith.constant 0 : index
    %1316 = vector.load %arg9[%c6_284, %c0_285] : memref<16x64xf32, #tpu.memory_space<vmem>>, vector<2x32xf32>
    tpu.vector_store %arg9[%c6_284, %c0_285], %1289 {strides = array<i32>} : memref<16x64xf32, #tpu.memory_space<vmem>>, vector<2x32xf32>,
    %c8_286 = arith.constant 8 : index
    %c32_287 = arith.constant 32 : index
    %1317 = vector.load %arg9[%c8_286, %c32_287] : memref<16x64xf32, #tpu.memory_space<vmem>>, vector<2x32xf32>
    tpu.vector_store %arg9[%c8_286, %c32_287], %1314 {strides = array<i32>} : memref<16x64xf32, #tpu.memory_space<vmem>>, vector<2x32xf32>,
    %1318 = arith.truncf %1315 : vector<2x64xf32> to vector<2x64xbf16>
    %cst_288 = arith.constant dense<0.000000e+00> : vector<2x256xf32>
    %1319 = tpu.matmul %1318, %1072, %cst_288 {dimension_numbers = #tpu.dot_dimension_numbers<[1], [0], [0], [1], [0, 0, 1, 1], [], []>} : vector<2x64xbf16>, vector<64x256xbf16>, vector<2x256xf32> -> vector<2x256xf32>
    %1320 = vector.extract_strided_slice %1070 {offsets = [8, 0], sizes = [2, 128], strides = [1, 1]} : vector<16x256xf32> to vector<2x128xf32>
    %1321 = vector.extract_strided_slice %1319 {offsets = [0, 0], sizes = [2, 128], strides = [1, 1]} : vector<2x256xf32> to vector<2x128xf32>
    %1322 = arith.addf %1320, %1321 : vector<2x128xf32>
    %1323 = vector.extract_strided_slice %1070 {offsets = [6, 128], sizes = [2, 128], strides = [1, 1]} : vector<16x256xf32> to vector<2x128xf32>
    %1324 = vector.extract_strided_slice %1319 {offsets = [0, 128], sizes = [2, 128], strides = [1, 1]} : vector<2x256xf32> to vector<2x128xf32>
    %1325 = arith.addf %1323, %1324 : vector<2x128xf32>
    %1326 = vector.extract_strided_slice %1322 {offsets = [0, 0], sizes = [2, 32], strides = [1, 1]} : vector<2x128xf32> to vector<2x32xf32>
    %1327 = arith.negf %1326 : vector<2x32xf32>
    %1328 = math.exp %1327 : vector<2x32xf32>
    %cst_289 = arith.constant 1.000000e+00 : f32
    %1329 = vector.broadcast %cst_289 : f32 to vector<2x32xf32>
    %1330 = arith.addf %1329, %1328 : vector<2x32xf32>
    %1331 = arith.divf %1329, %1330 : vector<2x32xf32>
    %1332 = vector.extract_strided_slice %1322 {offsets = [0, 32], sizes = [2, 32], strides = [1, 1]} : vector<2x128xf32> to vector<2x32xf32>
    %1333 = arith.negf %1332 : vector<2x32xf32>
    %1334 = math.exp %1333 : vector<2x32xf32>
    %cst_290 = arith.constant 1.000000e+00 : f32
    %1335 = vector.broadcast %cst_290 : f32 to vector<2x32xf32>
    %1336 = arith.addf %1335, %1334 : vector<2x32xf32>
    %1337 = arith.divf %1335, %1336 : vector<2x32xf32>
    %1338 = vector.extract_strided_slice %1322 {offsets = [0, 64], sizes = [2, 32], strides = [1, 1]} : vector<2x128xf32> to vector<2x32xf32>
    %1339 = math.tanh %1338 : vector<2x32xf32>
    %1340 = vector.extract_strided_slice %1322 {offsets = [0, 96], sizes = [2, 32], strides = [1, 1]} : vector<2x128xf32> to vector<2x32xf32>
    %1341 = arith.negf %1340 : vector<2x32xf32>
    %1342 = math.exp %1341 : vector<2x32xf32>
    %cst_291 = arith.constant 1.000000e+00 : f32
    %1343 = vector.broadcast %cst_291 : f32 to vector<2x32xf32>
    %1344 = arith.addf %1343, %1342 : vector<2x32xf32>
    %1345 = arith.divf %1343, %1344 : vector<2x32xf32>
    %1346 = arith.mulf %1337, %1287 : vector<2x32xf32>
    %1347 = arith.mulf %1331, %1339 : vector<2x32xf32>
    %1348 = arith.addf %1346, %1347 : vector<2x32xf32>
    %1349 = math.tanh %1348 : vector<2x32xf32>
    %1350 = arith.mulf %1345, %1349 : vector<2x32xf32>
    %1351 = vector.extract_strided_slice %1325 {offsets = [0, 0], sizes = [2, 32], strides = [1, 1]} : vector<2x128xf32> to vector<2x32xf32>
    %1352 = arith.negf %1351 : vector<2x32xf32>
    %1353 = math.exp %1352 : vector<2x32xf32>
    %cst_292 = arith.constant 1.000000e+00 : f32
    %1354 = vector.broadcast %cst_292 : f32 to vector<2x32xf32>
    %1355 = arith.addf %1354, %1353 : vector<2x32xf32>
    %1356 = arith.divf %1354, %1355 : vector<2x32xf32>
    %1357 = vector.extract_strided_slice %1325 {offsets = [0, 32], sizes = [2, 32], strides = [1, 1]} : vector<2x128xf32> to vector<2x32xf32>
    %1358 = arith.negf %1357 : vector<2x32xf32>
    %1359 = math.exp %1358 : vector<2x32xf32>
    %cst_293 = arith.constant 1.000000e+00 : f32
    %1360 = vector.broadcast %cst_293 : f32 to vector<2x32xf32>
    %1361 = arith.addf %1360, %1359 : vector<2x32xf32>
    %1362 = arith.divf %1360, %1361 : vector<2x32xf32>
    %1363 = vector.extract_strided_slice %1325 {offsets = [0, 64], sizes = [2, 32], strides = [1, 1]} : vector<2x128xf32> to vector<2x32xf32>
    %1364 = math.tanh %1363 : vector<2x32xf32>
    %1365 = vector.extract_strided_slice %1325 {offsets = [0, 96], sizes = [2, 32], strides = [1, 1]} : vector<2x128xf32> to vector<2x32xf32>
    %1366 = arith.negf %1365 : vector<2x32xf32>
    %1367 = math.exp %1366 : vector<2x32xf32>
    %cst_294 = arith.constant 1.000000e+00 : f32
    %1368 = vector.broadcast %cst_294 : f32 to vector<2x32xf32>
    %1369 = arith.addf %1368, %1367 : vector<2x32xf32>
    %1370 = arith.divf %1368, %1369 : vector<2x32xf32>
    %1371 = arith.mulf %1362, %1312 : vector<2x32xf32>
    %1372 = arith.mulf %1356, %1364 : vector<2x32xf32>
    %1373 = arith.addf %1371, %1372 : vector<2x32xf32>
    %1374 = math.tanh %1373 : vector<2x32xf32>
    %1375 = arith.mulf %1370, %1374 : vector<2x32xf32>
    %1376 = tpu.concatenate %1350, %1375 in 1 : vector<2x32xf32>, vector<2x32xf32> -> vector<2x64xf32>
    %c8_295 = arith.constant 8 : index
    %c0_296 = arith.constant 0 : index
    %1377 = vector.load %arg9[%c8_295, %c0_296] : memref<16x64xf32, #tpu.memory_space<vmem>>, vector<2x32xf32>
    tpu.vector_store %arg9[%c8_295, %c0_296], %1350 {strides = array<i32>} : memref<16x64xf32, #tpu.memory_space<vmem>>, vector<2x32xf32>,
    %c6_297 = arith.constant 6 : index
    %c32_298 = arith.constant 32 : index
    %1378 = vector.load %arg9[%c6_297, %c32_298] : memref<16x64xf32, #tpu.memory_space<vmem>>, vector<2x32xf32>
    tpu.vector_store %arg9[%c6_297, %c32_298], %1375 {strides = array<i32>} : memref<16x64xf32, #tpu.memory_space<vmem>>, vector<2x32xf32>,
    %1379 = arith.truncf %1376 : vector<2x64xf32> to vector<2x64xbf16>
    %cst_299 = arith.constant dense<0.000000e+00> : vector<2x256xf32>
    %1380 = tpu.matmul %1379, %1072, %cst_299 {dimension_numbers = #tpu.dot_dimension_numbers<[1], [0], [0], [1], [0, 0, 1, 1], [], []>} : vector<2x64xbf16>, vector<64x256xbf16>, vector<2x256xf32> -> vector<2x256xf32>
    %1381 = vector.extract_strided_slice %1070 {offsets = [10, 0], sizes = [2, 128], strides = [1, 1]} : vector<16x256xf32> to vector<2x128xf32>
    %1382 = vector.extract_strided_slice %1380 {offsets = [0, 0], sizes = [2, 128], strides = [1, 1]} : vector<2x256xf32> to vector<2x128xf32>
    %1383 = arith.addf %1381, %1382 : vector<2x128xf32>
    %1384 = vector.extract_strided_slice %1070 {offsets = [4, 128], sizes = [2, 128], strides = [1, 1]} : vector<16x256xf32> to vector<2x128xf32>
    %1385 = vector.extract_strided_slice %1380 {offsets = [0, 128], sizes = [2, 128], strides = [1, 1]} : vector<2x256xf32> to vector<2x128xf32>
    %1386 = arith.addf %1384, %1385 : vector<2x128xf32>
    %1387 = vector.extract_strided_slice %1383 {offsets = [0, 0], sizes = [2, 32], strides = [1, 1]} : vector<2x128xf32> to vector<2x32xf32>
    %1388 = arith.negf %1387 : vector<2x32xf32>
    %1389 = math.exp %1388 : vector<2x32xf32>
    %cst_300 = arith.constant 1.000000e+00 : f32
    %1390 = vector.broadcast %cst_300 : f32 to vector<2x32xf32>
    %1391 = arith.addf %1390, %1389 : vector<2x32xf32>
    %1392 = arith.divf %1390, %1391 : vector<2x32xf32>
    %1393 = vector.extract_strided_slice %1383 {offsets = [0, 32], sizes = [2, 32], strides = [1, 1]} : vector<2x128xf32> to vector<2x32xf32>
    %1394 = arith.negf %1393 : vector<2x32xf32>
    %1395 = math.exp %1394 : vector<2x32xf32>
    %cst_301 = arith.constant 1.000000e+00 : f32
    %1396 = vector.broadcast %cst_301 : f32 to vector<2x32xf32>
    %1397 = arith.addf %1396, %1395 : vector<2x32xf32>
    %1398 = arith.divf %1396, %1397 : vector<2x32xf32>
    %1399 = vector.extract_strided_slice %1383 {offsets = [0, 64], sizes = [2, 32], strides = [1, 1]} : vector<2x128xf32> to vector<2x32xf32>
    %1400 = math.tanh %1399 : vector<2x32xf32>
    %1401 = vector.extract_strided_slice %1383 {offsets = [0, 96], sizes = [2, 32], strides = [1, 1]} : vector<2x128xf32> to vector<2x32xf32>
    %1402 = arith.negf %1401 : vector<2x32xf32>
    %1403 = math.exp %1402 : vector<2x32xf32>
    %cst_302 = arith.constant 1.000000e+00 : f32
    %1404 = vector.broadcast %cst_302 : f32 to vector<2x32xf32>
    %1405 = arith.addf %1404, %1403 : vector<2x32xf32>
    %1406 = arith.divf %1404, %1405 : vector<2x32xf32>
    %1407 = arith.mulf %1398, %1348 : vector<2x32xf32>
    %1408 = arith.mulf %1392, %1400 : vector<2x32xf32>
    %1409 = arith.addf %1407, %1408 : vector<2x32xf32>
    %1410 = math.tanh %1409 : vector<2x32xf32>
    %1411 = arith.mulf %1406, %1410 : vector<2x32xf32>
    %1412 = vector.extract_strided_slice %1386 {offsets = [0, 0], sizes = [2, 32], strides = [1, 1]} : vector<2x128xf32> to vector<2x32xf32>
    %1413 = arith.negf %1412 : vector<2x32xf32>
    %1414 = math.exp %1413 : vector<2x32xf32>
    %cst_303 = arith.constant 1.000000e+00 : f32
    %1415 = vector.broadcast %cst_303 : f32 to vector<2x32xf32>
    %1416 = arith.addf %1415, %1414 : vector<2x32xf32>
    %1417 = arith.divf %1415, %1416 : vector<2x32xf32>
    %1418 = vector.extract_strided_slice %1386 {offsets = [0, 32], sizes = [2, 32], strides = [1, 1]} : vector<2x128xf32> to vector<2x32xf32>
    %1419 = arith.negf %1418 : vector<2x32xf32>
    %1420 = math.exp %1419 : vector<2x32xf32>
    %cst_304 = arith.constant 1.000000e+00 : f32
    %1421 = vector.broadcast %cst_304 : f32 to vector<2x32xf32>
    %1422 = arith.addf %1421, %1420 : vector<2x32xf32>
    %1423 = arith.divf %1421, %1422 : vector<2x32xf32>
    %1424 = vector.extract_strided_slice %1386 {offsets = [0, 64], sizes = [2, 32], strides = [1, 1]} : vector<2x128xf32> to vector<2x32xf32>
    %1425 = math.tanh %1424 : vector<2x32xf32>
    %1426 = vector.extract_strided_slice %1386 {offsets = [0, 96], sizes = [2, 32], strides = [1, 1]} : vector<2x128xf32> to vector<2x32xf32>
    %1427 = arith.negf %1426 : vector<2x32xf32>
    %1428 = math.exp %1427 : vector<2x32xf32>
    %cst_305 = arith.constant 1.000000e+00 : f32
    %1429 = vector.broadcast %cst_305 : f32 to vector<2x32xf32>
    %1430 = arith.addf %1429, %1428 : vector<2x32xf32>
    %1431 = arith.divf %1429, %1430 : vector<2x32xf32>
    %1432 = arith.mulf %1423, %1373 : vector<2x32xf32>
    %1433 = arith.mulf %1417, %1425 : vector<2x32xf32>
    %1434 = arith.addf %1432, %1433 : vector<2x32xf32>
    %1435 = math.tanh %1434 : vector<2x32xf32>
    %1436 = arith.mulf %1431, %1435 : vector<2x32xf32>
    %1437 = tpu.concatenate %1411, %1436 in 1 : vector<2x32xf32>, vector<2x32xf32> -> vector<2x64xf32>
    %c10_306 = arith.constant 10 : index
    %c0_307 = arith.constant 0 : index
    %1438 = vector.load %arg9[%c10_306, %c0_307] : memref<16x64xf32, #tpu.memory_space<vmem>>, vector<2x32xf32>
    tpu.vector_store %arg9[%c10_306, %c0_307], %1411 {strides = array<i32>} : memref<16x64xf32, #tpu.memory_space<vmem>>, vector<2x32xf32>,
    %c4_308 = arith.constant 4 : index
    %c32_309 = arith.constant 32 : index
    %1439 = vector.load %arg9[%c4_308, %c32_309] : memref<16x64xf32, #tpu.memory_space<vmem>>, vector<2x32xf32>
    tpu.vector_store %arg9[%c4_308, %c32_309], %1436 {strides = array<i32>} : memref<16x64xf32, #tpu.memory_space<vmem>>, vector<2x32xf32>,
    %1440 = arith.truncf %1437 : vector<2x64xf32> to vector<2x64xbf16>
    %cst_310 = arith.constant dense<0.000000e+00> : vector<2x256xf32>
    %1441 = tpu.matmul %1440, %1072, %cst_310 {dimension_numbers = #tpu.dot_dimension_numbers<[1], [0], [0], [1], [0, 0, 1, 1], [], []>} : vector<2x64xbf16>, vector<64x256xbf16>, vector<2x256xf32> -> vector<2x256xf32>
    %1442 = vector.extract_strided_slice %1070 {offsets = [12, 0], sizes = [2, 128], strides = [1, 1]} : vector<16x256xf32> to vector<2x128xf32>
    %1443 = vector.extract_strided_slice %1441 {offsets = [0, 0], sizes = [2, 128], strides = [1, 1]} : vector<2x256xf32> to vector<2x128xf32>
    %1444 = arith.addf %1442, %1443 : vector<2x128xf32>
    %1445 = vector.extract_strided_slice %1070 {offsets = [2, 128], sizes = [2, 128], strides = [1, 1]} : vector<16x256xf32> to vector<2x128xf32>
    %1446 = vector.extract_strided_slice %1441 {offsets = [0, 128], sizes = [2, 128], strides = [1, 1]} : vector<2x256xf32> to vector<2x128xf32>
    %1447 = arith.addf %1445, %1446 : vector<2x128xf32>
    %1448 = vector.extract_strided_slice %1444 {offsets = [0, 0], sizes = [2, 32], strides = [1, 1]} : vector<2x128xf32> to vector<2x32xf32>
    %1449 = arith.negf %1448 : vector<2x32xf32>
    %1450 = math.exp %1449 : vector<2x32xf32>
    %cst_311 = arith.constant 1.000000e+00 : f32
    %1451 = vector.broadcast %cst_311 : f32 to vector<2x32xf32>
    %1452 = arith.addf %1451, %1450 : vector<2x32xf32>
    %1453 = arith.divf %1451, %1452 : vector<2x32xf32>
    %1454 = vector.extract_strided_slice %1444 {offsets = [0, 32], sizes = [2, 32], strides = [1, 1]} : vector<2x128xf32> to vector<2x32xf32>
    %1455 = arith.negf %1454 : vector<2x32xf32>
    %1456 = math.exp %1455 : vector<2x32xf32>
    %cst_312 = arith.constant 1.000000e+00 : f32
    %1457 = vector.broadcast %cst_312 : f32 to vector<2x32xf32>
    %1458 = arith.addf %1457, %1456 : vector<2x32xf32>
    %1459 = arith.divf %1457, %1458 : vector<2x32xf32>
    %1460 = vector.extract_strided_slice %1444 {offsets = [0, 64], sizes = [2, 32], strides = [1, 1]} : vector<2x128xf32> to vector<2x32xf32>
    %1461 = math.tanh %1460 : vector<2x32xf32>
    %1462 = vector.extract_strided_slice %1444 {offsets = [0, 96], sizes = [2, 32], strides = [1, 1]} : vector<2x128xf32> to vector<2x32xf32>
    %1463 = arith.negf %1462 : vector<2x32xf32>
    %1464 = math.exp %1463 : vector<2x32xf32>
    %cst_313 = arith.constant 1.000000e+00 : f32
    %1465 = vector.broadcast %cst_313 : f32 to vector<2x32xf32>
    %1466 = arith.addf %1465, %1464 : vector<2x32xf32>
    %1467 = arith.divf %1465, %1466 : vector<2x32xf32>
    %1468 = arith.mulf %1459, %1409 : vector<2x32xf32>
    %1469 = arith.mulf %1453, %1461 : vector<2x32xf32>
    %1470 = arith.addf %1468, %1469 : vector<2x32xf32>
    %1471 = math.tanh %1470 : vector<2x32xf32>
    %1472 = arith.mulf %1467, %1471 : vector<2x32xf32>
    %1473 = vector.extract_strided_slice %1447 {offsets = [0, 0], sizes = [2, 32], strides = [1, 1]} : vector<2x128xf32> to vector<2x32xf32>
    %1474 = arith.negf %1473 : vector<2x32xf32>
    %1475 = math.exp %1474 : vector<2x32xf32>
    %cst_314 = arith.constant 1.000000e+00 : f32
    %1476 = vector.broadcast %cst_314 : f32 to vector<2x32xf32>
    %1477 = arith.addf %1476, %1475 : vector<2x32xf32>
    %1478 = arith.divf %1476, %1477 : vector<2x32xf32>
    %1479 = vector.extract_strided_slice %1447 {offsets = [0, 32], sizes = [2, 32], strides = [1, 1]} : vector<2x128xf32> to vector<2x32xf32>
    %1480 = arith.negf %1479 : vector<2x32xf32>
    %1481 = math.exp %1480 : vector<2x32xf32>
    %cst_315 = arith.constant 1.000000e+00 : f32
    %1482 = vector.broadcast %cst_315 : f32 to vector<2x32xf32>
    %1483 = arith.addf %1482, %1481 : vector<2x32xf32>
    %1484 = arith.divf %1482, %1483 : vector<2x32xf32>
    %1485 = vector.extract_strided_slice %1447 {offsets = [0, 64], sizes = [2, 32], strides = [1, 1]} : vector<2x128xf32> to vector<2x32xf32>
    %1486 = math.tanh %1485 : vector<2x32xf32>
    %1487 = vector.extract_strided_slice %1447 {offsets = [0, 96], sizes = [2, 32], strides = [1, 1]} : vector<2x128xf32> to vector<2x32xf32>
    %1488 = arith.negf %1487 : vector<2x32xf32>
    %1489 = math.exp %1488 : vector<2x32xf32>
    %cst_316 = arith.constant 1.000000e+00 : f32
    %1490 = vector.broadcast %cst_316 : f32 to vector<2x32xf32>
    %1491 = arith.addf %1490, %1489 : vector<2x32xf32>
    %1492 = arith.divf %1490, %1491 : vector<2x32xf32>
    %1493 = arith.mulf %1484, %1434 : vector<2x32xf32>
    %1494 = arith.mulf %1478, %1486 : vector<2x32xf32>
    %1495 = arith.addf %1493, %1494 : vector<2x32xf32>
    %1496 = math.tanh %1495 : vector<2x32xf32>
    %1497 = arith.mulf %1492, %1496 : vector<2x32xf32>
    %1498 = tpu.concatenate %1472, %1497 in 1 : vector<2x32xf32>, vector<2x32xf32> -> vector<2x64xf32>
    %c12_317 = arith.constant 12 : index
    %c0_318 = arith.constant 0 : index
    %1499 = vector.load %arg9[%c12_317, %c0_318] : memref<16x64xf32, #tpu.memory_space<vmem>>, vector<2x32xf32>
    tpu.vector_store %arg9[%c12_317, %c0_318], %1472 {strides = array<i32>} : memref<16x64xf32, #tpu.memory_space<vmem>>, vector<2x32xf32>,
    %c2_319 = arith.constant 2 : index
    %c32_320 = arith.constant 32 : index
    %1500 = vector.load %arg9[%c2_319, %c32_320] : memref<16x64xf32, #tpu.memory_space<vmem>>, vector<2x32xf32>
    tpu.vector_store %arg9[%c2_319, %c32_320], %1497 {strides = array<i32>} : memref<16x64xf32, #tpu.memory_space<vmem>>, vector<2x32xf32>,
    %1501 = arith.truncf %1498 : vector<2x64xf32> to vector<2x64xbf16>
    %cst_321 = arith.constant dense<0.000000e+00> : vector<2x256xf32>
    %1502 = tpu.matmul %1501, %1072, %cst_321 {dimension_numbers = #tpu.dot_dimension_numbers<[1], [0], [0], [1], [0, 0, 1, 1], [], []>} : vector<2x64xbf16>, vector<64x256xbf16>, vector<2x256xf32> -> vector<2x256xf32>
    %1503 = vector.extract_strided_slice %1070 {offsets = [14, 0], sizes = [2, 128], strides = [1, 1]} : vector<16x256xf32> to vector<2x128xf32>
    %1504 = vector.extract_strided_slice %1502 {offsets = [0, 0], sizes = [2, 128], strides = [1, 1]} : vector<2x256xf32> to vector<2x128xf32>
    %1505 = arith.addf %1503, %1504 : vector<2x128xf32>
    %1506 = vector.extract_strided_slice %1070 {offsets = [0, 128], sizes = [2, 128], strides = [1, 1]} : vector<16x256xf32> to vector<2x128xf32>
    %1507 = vector.extract_strided_slice %1502 {offsets = [0, 128], sizes = [2, 128], strides = [1, 1]} : vector<2x256xf32> to vector<2x128xf32>
    %1508 = arith.addf %1506, %1507 : vector<2x128xf32>
    %1509 = vector.extract_strided_slice %1505 {offsets = [0, 0], sizes = [2, 32], strides = [1, 1]} : vector<2x128xf32> to vector<2x32xf32>
    %1510 = arith.negf %1509 : vector<2x32xf32>
    %1511 = math.exp %1510 : vector<2x32xf32>
    %cst_322 = arith.constant 1.000000e+00 : f32
    %1512 = vector.broadcast %cst_322 : f32 to vector<2x32xf32>
    %1513 = arith.addf %1512, %1511 : vector<2x32xf32>
    %1514 = arith.divf %1512, %1513 : vector<2x32xf32>
    %1515 = vector.extract_strided_slice %1505 {offsets = [0, 32], sizes = [2, 32], strides = [1, 1]} : vector<2x128xf32> to vector<2x32xf32>
    %1516 = arith.negf %1515 : vector<2x32xf32>
    %1517 = math.exp %1516 : vector<2x32xf32>
    %cst_323 = arith.constant 1.000000e+00 : f32
    %1518 = vector.broadcast %cst_323 : f32 to vector<2x32xf32>
    %1519 = arith.addf %1518, %1517 : vector<2x32xf32>
    %1520 = arith.divf %1518, %1519 : vector<2x32xf32>
    %1521 = vector.extract_strided_slice %1505 {offsets = [0, 64], sizes = [2, 32], strides = [1, 1]} : vector<2x128xf32> to vector<2x32xf32>
    %1522 = math.tanh %1521 : vector<2x32xf32>
    %1523 = vector.extract_strided_slice %1505 {offsets = [0, 96], sizes = [2, 32], strides = [1, 1]} : vector<2x128xf32> to vector<2x32xf32>
    %1524 = arith.negf %1523 : vector<2x32xf32>
    %1525 = math.exp %1524 : vector<2x32xf32>
    %cst_324 = arith.constant 1.000000e+00 : f32
    %1526 = vector.broadcast %cst_324 : f32 to vector<2x32xf32>
    %1527 = arith.addf %1526, %1525 : vector<2x32xf32>
    %1528 = arith.divf %1526, %1527 : vector<2x32xf32>
    %1529 = arith.mulf %1520, %1470 : vector<2x32xf32>
    %1530 = arith.mulf %1514, %1522 : vector<2x32xf32>
    %1531 = arith.addf %1529, %1530 : vector<2x32xf32>
    %1532 = math.tanh %1531 : vector<2x32xf32>
    %1533 = arith.mulf %1528, %1532 : vector<2x32xf32>
    %1534 = vector.extract_strided_slice %1508 {offsets = [0, 0], sizes = [2, 32], strides = [1, 1]} : vector<2x128xf32> to vector<2x32xf32>
    %1535 = arith.negf %1534 : vector<2x32xf32>
    %1536 = math.exp %1535 : vector<2x32xf32>
    %cst_325 = arith.constant 1.000000e+00 : f32
    %1537 = vector.broadcast %cst_325 : f32 to vector<2x32xf32>
    %1538 = arith.addf %1537, %1536 : vector<2x32xf32>
    %1539 = arith.divf %1537, %1538 : vector<2x32xf32>
    %1540 = vector.extract_strided_slice %1508 {offsets = [0, 32], sizes = [2, 32], strides = [1, 1]} : vector<2x128xf32> to vector<2x32xf32>
    %1541 = arith.negf %1540 : vector<2x32xf32>
    %1542 = math.exp %1541 : vector<2x32xf32>
    %cst_326 = arith.constant 1.000000e+00 : f32
    %1543 = vector.broadcast %cst_326 : f32 to vector<2x32xf32>
    %1544 = arith.addf %1543, %1542 : vector<2x32xf32>
    %1545 = arith.divf %1543, %1544 : vector<2x32xf32>
    %1546 = vector.extract_strided_slice %1508 {offsets = [0, 64], sizes = [2, 32], strides = [1, 1]} : vector<2x128xf32> to vector<2x32xf32>
    %1547 = math.tanh %1546 : vector<2x32xf32>
    %1548 = vector.extract_strided_slice %1508 {offsets = [0, 96], sizes = [2, 32], strides = [1, 1]} : vector<2x128xf32> to vector<2x32xf32>
    %1549 = arith.negf %1548 : vector<2x32xf32>
    %1550 = math.exp %1549 : vector<2x32xf32>
    %cst_327 = arith.constant 1.000000e+00 : f32
    %1551 = vector.broadcast %cst_327 : f32 to vector<2x32xf32>
    %1552 = arith.addf %1551, %1550 : vector<2x32xf32>
    %1553 = arith.divf %1551, %1552 : vector<2x32xf32>
    %1554 = arith.mulf %1545, %1495 : vector<2x32xf32>
    %1555 = arith.mulf %1539, %1547 : vector<2x32xf32>
    %1556 = arith.addf %1554, %1555 : vector<2x32xf32>
    %1557 = math.tanh %1556 : vector<2x32xf32>
    %1558 = arith.mulf %1553, %1557 : vector<2x32xf32>
    %c14_328 = arith.constant 14 : index
    %c0_329 = arith.constant 0 : index
    %1559 = vector.load %arg9[%c14_328, %c0_329] : memref<16x64xf32, #tpu.memory_space<vmem>>, vector<2x32xf32>
    tpu.vector_store %arg9[%c14_328, %c0_329], %1533 {strides = array<i32>} : memref<16x64xf32, #tpu.memory_space<vmem>>, vector<2x32xf32>,
    %c0_330 = arith.constant 0 : index
    %c32_331 = arith.constant 32 : index
    %1560 = vector.load %arg9[%c0_330, %c32_331] : memref<16x64xf32, #tpu.memory_space<vmem>>, vector<2x32xf32>
    tpu.vector_store %arg9[%c0_330, %c32_331], %1558 {strides = array<i32>} : memref<16x64xf32, #tpu.memory_space<vmem>>, vector<2x32xf32>,
    %c0_332 = arith.constant 0 : index
    %c0_333 = arith.constant 0 : index
    %1561 = vector.load %arg9[%c0_332, %c0_333] : memref<16x64xf32, #tpu.memory_space<vmem>>, vector<16x64xf32>
    %1562 = arith.truncf %1561 : vector<16x64xf32> to vector<16x64xbf16>
    %c2_334 = arith.constant 2 : index
    %c0_335 = arith.constant 0 : index
    %c0_336 = arith.constant 0 : index
    %1563 = vector.load %arg4[%c2_334, %c0_335, %c0_336] : memref<3x64x16xbf16, #tpu.memory_space<vmem>>, vector<1x64x16xbf16>
    %1564 = vector.shape_cast %1563 : vector<1x64x16xbf16> to vector<64x16xbf16>
    %cst_337 = arith.constant dense<0.000000e+00> : vector<16x16xf32>
    %1565 = tpu.matmul %1562, %1564, %cst_337 {dimension_numbers = #tpu.dot_dimension_numbers<[1], [0], [0], [1], [0, 0, 1, 1], [], []>} : vector<16x64xbf16>, vector<64x16xbf16>, vector<16x16xf32> -> vector<16x16xf32>
    %c2_338 = arith.constant 2 : index
    %c0_339 = arith.constant 0 : index
    %c0_340 = arith.constant 0 : index
    %1566 = vector.load %arg5[%c2_338, %c0_339, %c0_340] : memref<3x1x16xf32, #tpu.memory_space<vmem>>, vector<1x1x16xf32>
    %1567 = vector.shape_cast %1566 : vector<1x1x16xf32> to vector<1x16xf32>
    %1568 = vector.broadcast %1567 : vector<1x16xf32> to vector<16x16xf32>
    %1569 = arith.addf %1565, %1568 : vector<16x16xf32>
    %cst_341 = arith.constant dense<0.000000e+00> : vector<16xf32>
    %1570 = vector.multi_reduction <add>, %1569, %cst_341 [1] : vector<16x16xf32> to vector<16xf32>
    %1571 = vector.shape_cast %1570 : vector<16xf32> to vector<16x1xf32>
    %cst_342 = arith.constant 1.600000e+01 : f32
    %1572 = vector.broadcast %cst_342 : f32 to vector<16x1xf32>
    %1573 = arith.divf %1571, %1572 : vector<16x1xf32>
    %1574 = vector.broadcast %1573 : vector<16x1xf32> to vector<16x16xf32>
    %1575 = arith.subf %1569, %1574 : vector<16x16xf32>
    %1576 = arith.mulf %1575, %1575 : vector<16x16xf32>
    %cst_343 = arith.constant dense<0.000000e+00> : vector<16xf32>
    %1577 = vector.multi_reduction <add>, %1576, %cst_343 [1] : vector<16x16xf32> to vector<16xf32>
    %1578 = vector.shape_cast %1577 : vector<16xf32> to vector<16x1xf32>
    %cst_344 = arith.constant 1.600000e+01 : f32
    %1579 = vector.broadcast %cst_344 : f32 to vector<16x1xf32>
    %1580 = arith.divf %1578, %1579 : vector<16x1xf32>
    %1581 = vector.broadcast %1573 : vector<16x1xf32> to vector<16x16xf32>
    %1582 = arith.subf %1569, %1581 : vector<16x16xf32>
    %cst_345 = arith.constant 9.99999974E-6 : f32
    %1583 = vector.broadcast %cst_345 : f32 to vector<16x1xf32>
    %1584 = arith.addf %1580, %1583 : vector<16x1xf32>
    %1585 = math.rsqrt %1584 : vector<16x1xf32>
    %1586 = vector.broadcast %1585 : vector<16x1xf32> to vector<16x16xf32>
    %1587 = arith.mulf %1582, %1586 : vector<16x16xf32>
    %c2_346 = arith.constant 2 : index
    %c0_347 = arith.constant 0 : index
    %c0_348 = arith.constant 0 : index
    %1588 = vector.load %arg6[%c2_346, %c0_347, %c0_348] : memref<3x16x16xf32, #tpu.memory_space<vmem>>, vector<1x16x16xf32>
    %1589 = vector.shape_cast %1588 : vector<1x16x16xf32> to vector<16x16xf32>
    %1590 = arith.mulf %1587, %1589 : vector<16x16xf32>
    %1591 = arith.addf %1063, %1590 : vector<16x16xf32>
    %c2_349 = arith.constant 2 : index
    %c0_350 = arith.constant 0 : index
    %c0_351 = arith.constant 0 : index
    %1592 = vector.load %arg7[%c2_349, %c0_350, %c0_351] : memref<3x16x16xf32, #tpu.memory_space<vmem>>, vector<1x16x16xf32>
    %1593 = vector.shape_cast %1592 : vector<1x16x16xf32> to vector<16x16xf32>
    %1594 = arith.addf %1591, %1593 : vector<16x16xf32>
    %c0_352 = arith.constant 0 : index
    %c0_353 = arith.constant 0 : index
    %1595 = vector.load %arg8[%c0_352, %c0_353] : memref<16x16xf32, #tpu.memory_space<vmem>>, vector<16x16xf32>
    tpu.vector_store %arg8[%c0_352, %c0_353], %1594 {strides = array<i32>} : memref<16x16xf32, #tpu.memory_space<vmem>>, vector<16x16xf32>,
    return
  }
}

</mosaic_0001>

<bundles_post_ra>
// kernel: dlds_forward.1
= control target key start
LH: loop header
LB: loop body
LE: loop exit
PB: predicated region body
PF: predicated region fallthrough
CT: control target
= control target key end

     0   :  { %v4208_v1 = vmov 0   ;;  %vm61_vm0 = vcmask 130048   ;;  %v36_v4 = vlaneseq  ;;  %s4209_s13 = smov 64   ;;  %s4210_s14 = smov 32   ;;  %vm175_vm1 = vcmask 261120   ;;  %s5454_s1 = inlined_call_operand.vmem [shape: bf16[3,16,256], index: 1, kind: input, shape index: {}]   ;;  %s5455_s0 = inlined_call_operand.vmem [shape: bf16[16,16], index: 0, kind: input, shape index: {}]   ;;  %s5456_s2 = inlined_call_operand.vmem [shape: f32[3,1,256], index: 2, kind: input, shape index: {}]   ;;  %s5457_s3 = inlined_call_operand.vmem [shape: bf16[3,64,256], index: 3, kind: input, shape index: {}]   ;;  %s5458_s4 = inlined_call_operand.vmem [shape: bf16[3,64,16], index: 4, kind: input, shape index: {}]   ;;  %s5459_s5 = inlined_call_operand.vmem [shape: f32[3,1,16], index: 5, kind: input, shape index: {}]   ;;  %s5460_s6 = inlined_call_operand.vmem [shape: f32[3,16,16], index: 6, kind: input, shape index: {}]   ;;  %s5461_s7 = inlined_call_operand.vmem [shape: f32[3,16,16], index: 7, kind: input, shape index: {}]   ;;  %s5462_s8 = inlined_call_operand.vmem [shape: f32[16,16], index: 8, kind: output, shape index: {}]  }
   0x1   :  { %v3753_v0 = vld [vmem:[%s5454_s1 + $0x4] ss:$8 sps:$4 sm:$0xff]   ;;  %97 = vmatprep.mubr.bf16.mxu0 %v4208_v1  ;;  %261 = vmatprep.mubr.bf16.mxu1 %v4208_v1  ;;  %v3755_v2 = vld [vmem:[%s5454_s1] ss:$8 sps:$4 sm:$0xff]   ;;  %v4316_v41 = vld [vmem:[%s5457_s3 + $0x14] ss:$8 sps:$4 sm:$0xff]  }
   0x2   :  { %65 = vmatprep.subr.bf16.mxu0 %v3753_v0  ;;  %v3756_v3 = vld [vmem:[%s5455_s0] sm:$0xff]   ;;  %v37_v5 = vshrl.u32 %v36_v4, 7  ;;  %v4323_v42 = vld [vmem:[%s5457_s3 + $0x10] ss:$8 sps:$4 sm:$0xff]   ;;  %v4355_v49 = vld [vmem:[%s5457_s3 + $0x34] ss:$8 sps:$4 sm:$0xff]  }
   0x3   :  { %66 = vmatpush1.bf16.msra.mxu0 %v3755_v2  ;;  %v34_v7 = vld [vmem:[%s5456_s2] sm:$0x3]  ;;  %v4305_v39 = vld [vmem:[%s5457_s3 + $0x4] ss:$8 sps:$4 sm:$0xff]   ;;  %v114_v47 = vld [vmem:[%s5457_s3 + $0x30] sm:$0xff]  ;;  %vm177_vm2 = vcmask 254976  }
   0x4   :  { %v4271_v6 = vsub.s32 1, %v37_v5  ;;  %v4276_v8 = vsub.s32 0, %v37_v5  ;;  %v4310_v40 = vld [vmem:[%s5457_s3] ss:$8 sps:$4 sm:$0xff]   ;;  %229 = vmatprep.subr.bf16.mxu1 %v4305_v39  ;;  %355 = vmatprep.subr.bf16.mxu0 %v4305_v39  ;;  %v4328_v43 = vld [vmem:[%s5457_s3 + $0x24] ss:$8 sps:$4 sm:$0xff]  }
   0x5   :  { %230 = vmatpush1.bf16.msra.mxu1 %v4310_v40  ;;  %v4336_v45 = vld [vmem:[%s5457_s3 + $0x20] ss:$8 sps:$4 sm:$0xff]   ;;  %v115_v48 = vld [vmem:[%s5457_s3 + $0x38] sm:$0xff]  ;;  %vm225_vm3 = vcmask 523264   ;;  %vm342_vm4 = vcmask 257026   ;;  %vm468_vm5 = vcmask 259076  }
   0x6   :  { %3531 = vmatmul.mubr.msk.bf16.vlgmr.msra.gmra.mrb[0].mxu0 %vm61_vm0, %v3756_v3  ;;  %v43_v9 = vrot.slane %v34_v7, %v4271_v6  ;;  %v39_v11 = vrot.slane %v34_v7, %v4276_v8  ;;  %231 = vmatprep.subr.bf16.mxu1 %v4316_v41  ;;  %v4357_v50 = vcombine.low %v114_v47, %v115_v48  ;;  %vm591_vm6 = vcmask 261126  }
   0x7   :  { %387 = vmatprep.mubr.bf16.mxu0 %v4208_v1  ;;  %356 = vmatpush1.bf16.msra.mxu0 %v4310_v40  ;;  %vm4212_vm7 = vmmov 0   ;;  %vm347_vm8 = vcmask 521476   ;;  %vm182_vm9 = vcmask 523526   ;;  %vm596_vm10 = vcmask 517376  }
   0x8   :  { %357 = vmatprep.subr.bf16.mxu0 %v4316_v41  ;;  %vm473_vm11 = vcmask 519426  }
   0x9   :  { %232 = vmatpush1.bf16.msra.mxu1 %v4323_v42 }
   0xa   :  { %233 = vmatprep.subr.bf16.mxu1 %v4328_v43 }
   0xb   :  { %358 = vmatpush1.bf16.msra.mxu0 %v4323_v42 }
   0xc   :  { %359 = vmatprep.subr.bf16.mxu0 %v4328_v43 }
   0xd   :  { %234 = vmatpush1.bf16.msra.mxu1 %v4336_v45 }
   0xe   :  { %235 = vmatprep.subr.bf16.mxu1 %v4355_v49 }
   0xf   :  { %360 = vmatpush1.bf16.msra.mxu0 %v4336_v45 }
  0x10   :  { %361 = vmatprep.subr.bf16.mxu0 %v4355_v49 }
  0x11   :  { %236 = vmatpush1.bf16.msra.mxu1 %v4357_v50 }
  0x12   :  { %481 = vmatprep.subr.bf16.mxu1 %v4305_v39 }
  0x13   :  { %362 = vmatpush1.bf16.msra.mxu0 %v4357_v50 }
  0x14   :  { %604 = vmatprep.subr.bf16.mxu0 %v4305_v39 }
  0xd9   :  { %v99_v10 = vpop.f32.mrb[0].mxu0 }
  0xda   :  { %v101_v12 = vpop.f32.mrb[1].mxu0  ;;  %v4286_v18 = vadd.f32 %v99_v10, %v39_v11 }
  0xdb   :  { %v4280_v13 = vadd.f32 %v101_v12, %v43_v9  ;;  %v103_v14 = vpop.f32.mrb[2].mxu0 }
  0xdc   :  { %v4282_v15 = vadd.f32 %v103_v14, %v39_v11  ;;  %v105_v16 = vpop.f32.mrb[3].mxu0  ;;  %v3532_v22 = vmul.f32 -1.442695, %v4286_v18 }
  0xdd   :  { %v4284_v17 = vadd.f32 %v105_v16, %v43_v9 }
  0xdf   :  { %3810 = vtanh.f32 %v4284_v17  ;;  %v3533_v21 = vmul.f32 -1.442695, %v4284_v17 }
  0xe0   :  { %3812 = vtanh.f32 %v4286_v18 }
  0xe1   :  { %3814 = vpow2.f32 %v3533_v21 }
  0xe2   :  { %3816 = vpow2.f32 %v3532_v22 }
  0xe9   :  { %v3811_v19 = vpop.eup %3810 }
  0xea   :  { %151 = vrot.lane.b32.xlu0 %v3811_v19, %s4209_s13  ;;  %v3813_v20 = vpop.eup %3812 }
  0xeb   :  { %v3815_v23 = vpop.eup %3814 }
  0xec   :  { %v145_v24 = vadd.f32 1.0, %v3815_v23  ;;  %v3817_v25 = vpop.eup %3816 }
  0xed   :  { %v121_v26 = vadd.f32 1.0, %v3817_v25 }
  0xee   :  { %127 = vrot.lane.b32.xlu0 %v3813_v20, %s4209_s13  ;;  %3818 = vrcp.f32 %v145_v24 }
  0xef   :  { %3820 = vrcp.f32 %v121_v26 }
  0xf8   :  { %v3819_v27 = vpop.eup %3818 }
  0xf9   :  { %v3821_v30 = vpop.eup %3820  ;;  %v149_v33 = vmul.f32 0.0, %v3819_v27 }
  0xfa   :  { %v125_v36 = vmul.f32 0.0, %v3821_v30 }
 0x15c   :  { %v152_v28 = vpop.permute.xlu0 %151 }
 0x15d   :  { %v154_v29 = vmul.f32 %v3819_v27, %v152_v28 }
 0x15f   :  { %156 = vrot.lane.b32.xlu1 %v154_v29, %s4210_s14 }
 0x160   :  { %v128_v31 = vpop.permute.xlu0 %127 }
 0x161   :  { %v130_v32 = vmul.f32 %v3821_v30, %v128_v31 }
 0x163   :  { %132 = vrot.lane.b32.xlu1 %v130_v32, %s4210_s14 }
 0x1d1   :  { %v157_v34 = vpop.permute.xlu1 %156 }
 0x1d2   :  { %v4296_v35 = vadd.f32 %v157_v34, %v149_v33 }
 0x1d4   :  { %3822 = vtanh.f32 %v4296_v35  ;;  %v313_v26 = vrot.slane %v4296_v35, 2 }
 0x1d5   :  { %v133_v37 = vpop.permute.xlu1 %132 }
 0x1d6   :  { %v4299_v38 = vadd.f32 %v133_v37, %v125_v36 }
 0x1d8   :  { %3824 = vtanh.f32 %v4299_v38  ;;  %v286_v25 = vrot.slane %v4299_v38, 6 }
 0x1de   :  { %v3823_v44 = vpop.eup %3822 }
 0x1df   :  { %162 = vrot.lane.b32.xlu0 %v3823_v44, %s4209_s13 }
 0x1e2   :  { %v3825_v46 = vpop.eup %3824 }
 0x1e3   :  { %138 = vrot.lane.b32.xlu1 %v3825_v46, %s4209_s13 }
 0x251   :  { %v163_v51 = vpop.permute.xlu0 %162 }
 0x252   :  { %v4365_v52 = vmul.f32 %v3819_v27, %v163_v51 }
 0x254   :  { %v171_v53 = vrot.slane %v4365_v52, 6 }
 0x255   :  { %v139_v54 = vpop.permute.xlu1 %138 }
 0x256   :  { %v141_v55 = vmul.f32 %v3821_v30, %v139_v54  ;;  %172 = vrot.lane.b32.xlu1 %v171_v53, %s4209_s13 }
 0x258   :  { %167 = vrot.lane.b32.xlu0 %v141_v55, %s4210_s14 }
 0x2c8   :  { %v173_v56 = vpop.permute.xlu1 %172 }
 0x2ca   :  { %v168_v57 = vpop.permute.xlu0 %167 }
 0x2cb   :  { %v176_v58 = vsel %vm175_vm1, %v168_v57, %v173_v56  ;;  %178 = vst.msk [vmem:[#allocation2] sm:$0x3] %vm177_vm2, %v168_v57 }
 0x2cc   :  { %v184_v59 = vpack.c.bf16 %v176_v58, %v176_v58 }
 0x2ce   :  { %3542 = vmatmul.mubr.msk.bf16.vlgmr.msra.gmra.mrb[0].mxu1 %vm225_vm3, %v184_v59 }
 0x2cf   :  { %482 = vmatpush1.bf16.msra.mxu1 %v4310_v40  ;;  %513 = vmatprep.mubr.bf16.mxu1 %v4208_v1 }
 0x2d0   :  { %483 = vmatprep.subr.bf16.mxu1 %v4316_v41 }
 0x2d3   :  { %484 = vmatpush1.bf16.msra.mxu1 %v4323_v42 }
 0x2d4   :  { %485 = vmatprep.subr.bf16.mxu1 %v4328_v43 }
 0x2d7   :  { %486 = vmatpush1.bf16.msra.mxu1 %v4336_v45 }
 0x2d8   :  { %487 = vmatprep.subr.bf16.mxu1 %v4355_v49 }
 0x2db   :  { %488 = vmatpush1.bf16.msra.mxu1 %v4357_v50 }
 0x2dc   :  { %723 = vmatprep.subr.bf16.mxu1 %v4305_v39 }
 0x3a1   :  { %v263_v60 = vpop.f32.mrb[0].mxu1 }
 0x3a2   :  { %v271_v61 = vrot.slane %v263_v60, 6  ;;  %v265_v62 = vpop.f32.mrb[1].mxu1 }
 0x3a3   :  { %v275_v63 = vrot.slane %v265_v62, 4  ;;  %v267_v0 = vpop.f32.mrb[2].mxu1 }
 0x3a4   :  { %v273_v2 = vadd.f32 %v271_v61, %v4286_v18  ;;  %v268_v3 = vpop.f32.mrb[3].mxu1 }
 0x3a5   :  { %v277_v4 = vadd.f32 %v275_v63, %v4284_v17 }
 0x3a6   :  { %3826 = vtanh.f32 %v273_v2  ;;  %v3543_v9 = vmul.f32 -1.442695, %v273_v2 }
 0x3a7   :  { %3828 = vtanh.f32 %v277_v4  ;;  %v3544_v10 = vmul.f32 -1.442695, %v277_v4 }
 0x3a8   :  { %3830 = vpow2.f32 %v3543_v9 }
 0x3a9   :  { %3832 = vpow2.f32 %v3544_v10 }
 0x3b0   :  { %v3827_v5 = vpop.eup %3826 }
 0x3b1   :  { %v3829_v7 = vpop.eup %3828  ;;  %290 = vrot.lane.b32.xlu1 %v3827_v5, %s4209_s13 }
 0x3b2   :  { %317 = vrot.lane.b32.xlu0 %v3829_v7, %s4209_s13  ;;  %v3831_v11 = vpop.eup %3830 }
 0x3b3   :  { %v3833_v12 = vpop.eup %3832  ;;  %v281_v14 = vadd.f32 1.0, %v3831_v11 }
 0x3b4   :  { %v308_v16 = vadd.f32 1.0, %v3833_v12 }
 0x3b5   :  { %3834 = vrcp.f32 %v281_v14 }
 0x3b6   :  { %3836 = vrcp.f32 %v308_v16 }
 0x3bf   :  { %v3835_v19 = vpop.eup %3834 }
 0x3c0   :  { %v3837_v21 = vpop.eup %3836  ;;  %v288_v27 = vmul.f32 %v3835_v19, %v286_v25 }
 0x3c1   :  { %v315_v29 = vmul.f32 %v3837_v21, %v313_v26 }
 0x423   :  { %v291_v20 = vpop.permute.xlu1 %290 }
 0x424   :  { %v293_v22 = vmul.f32 %v3835_v19, %v291_v20  ;;  %v318_v23 = vpop.permute.xlu0 %317 }
 0x425   :  { %v320_v24 = vmul.f32 %v3837_v21, %v318_v23 }
 0x426   :  { %295 = vrot.lane.b32.xlu1 %v293_v22, %s4210_s14 }
 0x427   :  { %322 = vrot.lane.b32.xlu0 %v320_v24, %s4210_s14 }
 0x498   :  { %v296_v28 = vpop.permute.xlu1 %295 }
 0x499   :  { %v4390_v30 = vadd.f32 %v296_v28, %v288_v27  ;;  %v323_v31 = vpop.permute.xlu0 %322 }
 0x49a   :  { %v4392_v32 = vadd.f32 %v323_v31, %v315_v29 }
 0x49b   :  { %3838 = vtanh.f32 %v4390_v30 }
 0x49c   :  { %3840 = vtanh.f32 %v4392_v32  ;;  %v439_v20 = vrot.slane %v4392_v32, 2 }
 0x4a5   :  { %v3839_v33 = vpop.eup %3838 }
 0x4a6   :  { %v3841_v34 = vpop.eup %3840  ;;  %301 = vrot.lane.b32.xlu1 %v3839_v33, %s4209_s13 }
 0x4a7   :  { %328 = vrot.lane.b32.xlu0 %v3841_v34, %s4209_s13 }
 0x518   :  { %v302_v36 = vpop.permute.xlu1 %301 }
 0x519   :  { %v304_v35 = vmul.f32 %v3835_v19, %v302_v36  ;;  %v329_v37 = vpop.permute.xlu0 %328  ;;  %v412_v19 = vrot.slane %v4390_v30, 6 }
 0x51a   :  { %v4398_v38 = vmul.f32 %v3837_v21, %v329_v37 }
 0x51b   :  { %333 = vrot.lane.b32.xlu0 %v304_v35, %s4210_s14 }
 0x51c   :  { %v337_v44 = vrot.slane %v4398_v38, 2 }
 0x51e   :  { %338 = vrot.lane.b32.xlu1 %v337_v44, %s4209_s13 }
 0x58d   :  { %v334_v46 = vpop.permute.xlu0 %333 }
 0x58e   :  { %343 = vst.msk [vmem:[#allocation2] sm:$0xc] %vm342_vm4, %v334_v46 }
 0x590   :  { %v339_v47 = vpop.permute.xlu1 %338 }
 0x591   :  { %v341_v48 = vsel %vm175_vm1, %v334_v46, %v339_v47 }
 0x592   :  { %v349_v51 = vpack.c.bf16 %v341_v48, %v341_v48 }
 0x594   :  { %v351_v53 = vrot.slane %v349_v51, 1 }
 0x596   :  { %3545 = vmatmul.mubr.msk.bf16.vlgmr.msra.gmra.mrb[4].mxu0 %vm225_vm3, %v351_v53 }
 0x597   :  { %605 = vmatpush1.bf16.msra.mxu0 %v4310_v40  ;;  %636 = vmatprep.mubr.bf16.mxu0 %v4208_v1 }
 0x598   :  { %606 = vmatprep.subr.bf16.mxu0 %v4316_v41 }
 0x59b   :  { %607 = vmatpush1.bf16.msra.mxu0 %v4323_v42 }
 0x59c   :  { %608 = vmatprep.subr.bf16.mxu0 %v4328_v43 }
 0x59f   :  { %609 = vmatpush1.bf16.msra.mxu0 %v4336_v45 }
 0x5a0   :  { %610 = vmatprep.subr.bf16.mxu0 %v4355_v49 }
 0x5a3   :  { %611 = vmatpush1.bf16.msra.mxu0 %v4357_v50 }
 0x5a4   :  { %847 = vmatprep.subr.bf16.mxu0 %v4305_v39 }
 0x669   :  { %v389_v54 = vpop.f32.mrb[4].mxu0 }
 0x66a   :  { %v397_v55 = vrot.slane %v389_v54, 4  ;;  %v391_v56 = vpop.f32.mrb[5].mxu0 }
 0x66b   :  { %v401_v57 = vrot.slane %v391_v56, 6  ;;  %v393_v58 = vpop.f32.mrb[6].mxu0 }
 0x66c   :  { %v399_v59 = vadd.f32 %v397_v55, %v4286_v18  ;;  %v394_v60 = vpop.f32.mrb[7].mxu0 }
 0x66d   :  { %v403_v61 = vadd.f32 %v401_v57, %v4284_v17 }
 0x66e   :  { %3842 = vtanh.f32 %v399_v59  ;;  %v3546_v0 = vmul.f32 -1.442695, %v399_v59 }
 0x66f   :  { %3844 = vtanh.f32 %v403_v61  ;;  %v3547_v2 = vmul.f32 -1.442695, %v403_v61 }
 0x670   :  { %3846 = vpow2.f32 %v3546_v0 }
 0x671   :  { %3848 = vpow2.f32 %v3547_v2 }
 0x678   :  { %v3843_v62 = vpop.eup %3842 }
 0x679   :  { %v3845_v63 = vpop.eup %3844  ;;  %416 = vrot.lane.b32.xlu1 %v3843_v62, %s4209_s13 }
 0x67a   :  { %443 = vrot.lane.b32.xlu0 %v3845_v63, %s4209_s13  ;;  %v3847_v3 = vpop.eup %3846 }
 0x67b   :  { %v3849_v4 = vpop.eup %3848  ;;  %v407_v5 = vadd.f32 1.0, %v3847_v3 }
 0x67c   :  { %v434_v7 = vadd.f32 1.0, %v3849_v4 }
 0x67d   :  { %3850 = vrcp.f32 %v407_v5 }
 0x67e   :  { %3852 = vrcp.f32 %v434_v7 }
 0x687   :  { %v3851_v9 = vpop.eup %3850 }
 0x688   :  { %v3853_v11 = vpop.eup %3852  ;;  %v414_v21 = vmul.f32 %v3851_v9, %v412_v19 }
 0x689   :  { %v441_v23 = vmul.f32 %v3853_v11, %v439_v20 }
 0x6eb   :  { %v417_v10 = vpop.permute.xlu1 %416 }
 0x6ec   :  { %v419_v12 = vmul.f32 %v3851_v9, %v417_v10  ;;  %v444_v14 = vpop.permute.xlu0 %443 }
 0x6ed   :  { %v446_v16 = vmul.f32 %v3853_v11, %v444_v14 }
 0x6ee   :  { %421 = vrot.lane.b32.xlu1 %v419_v12, %s4210_s14 }
 0x6ef   :  { %448 = vrot.lane.b32.xlu0 %v446_v16, %s4210_s14 }
 0x760   :  { %v422_v22 = vpop.permute.xlu1 %421 }
 0x761   :  { %v4423_v24 = vadd.f32 %v422_v22, %v414_v21  ;;  %v449_v25 = vpop.permute.xlu0 %448 }
 0x762   :  { %v4425_v26 = vadd.f32 %v449_v25, %v441_v23 }
 0x763   :  { %3854 = vtanh.f32 %v4423_v24  ;;  %v535_v5 = vrot.slane %v4423_v24, 6 }
 0x764   :  { %3856 = vtanh.f32 %v4425_v26  ;;  %v562_v4 = vrot.slane %v4425_v26, 2 }
 0x76d   :  { %v3855_v27 = vpop.eup %3854 }
 0x76e   :  { %v3857_v28 = vpop.eup %3856  ;;  %427 = vrot.lane.b32.xlu1 %v3855_v27, %s4209_s13 }
 0x76f   :  { %454 = vrot.lane.b32.xlu0 %v3857_v28, %s4209_s13 }
 0x7e0   :  { %v428_v29 = vpop.permute.xlu1 %427 }
 0x7e1   :  { %v430_v30 = vmul.f32 %v3851_v9, %v428_v29  ;;  %v455_v31 = vpop.permute.xlu0 %454 }
 0x7e2   :  { %v4431_v32 = vmul.f32 %v3853_v11, %v455_v31 }
 0x7e3   :  { %459 = vrot.lane.b32.xlu0 %v430_v30, %s4210_s14 }
 0x7e4   :  { %v463_v33 = vrot.slane %v4431_v32, 6 }
 0x7e6   :  { %464 = vrot.lane.b32.xlu1 %v463_v33, %s4209_s13 }
 0x855   :  { %v460_v34 = vpop.permute.xlu0 %459 }
 0x856   :  { %469 = vst.msk [vmem:[#allocation2] sm:$0x30] %vm468_vm5, %v460_v34 }
 0x858   :  { %v465_v36 = vpop.permute.xlu1 %464 }
 0x859   :  { %v467_v35 = vsel %vm175_vm1, %v460_v34, %v465_v36 }
 0x85a   :  { %v475_v37 = vpack.c.bf16 %v467_v35, %v467_v35 }
 0x85c   :  { %v477_v44 = vrot.slane %v475_v37, 2 }
 0x85e   :  { %3548 = vmatmul.mubr.msk.bf16.vlgmr.msra.gmra.mrb[4].mxu1 %vm225_vm3, %v477_v44 }
 0x85f   :  { %724 = vmatpush1.bf16.msra.mxu1 %v4310_v40  ;;  %755 = vmatprep.mubr.bf16.mxu1 %v4208_v1 }
 0x860   :  { %725 = vmatprep.subr.bf16.mxu1 %v4316_v41 }
 0x863   :  { %726 = vmatpush1.bf16.msra.mxu1 %v4323_v42 }
 0x864   :  { %727 = vmatprep.subr.bf16.mxu1 %v4328_v43 }
 0x867   :  { %728 = vmatpush1.bf16.msra.mxu1 %v4336_v45 }
 0x868   :  { %729 = vmatprep.subr.bf16.mxu1 %v4355_v49 }
 0x86b   :  { %730 = vmatpush1.bf16.msra.mxu1 %v4357_v50 }
 0x86c   :  { %971 = vmatprep.subr.bf16.mxu1 %v4305_v39 }
 0x931   :  { %v515_v46 = vpop.f32.mrb[4].mxu1 }
 0x932   :  { %v523_v47 = vrot.slane %v515_v46, 2  ;;  %v517_v48 = vpop.f32.mrb[5].mxu1 }
 0x933   :  { %v526_v51 = vadd.f32 %v517_v48, %v4284_v17  ;;  %v519_v53 = vpop.f32.mrb[6].mxu1 }
 0x934   :  { %v525_v54 = vadd.f32 %v523_v47, %v4286_v18  ;;  %v520_v55 = vpop.f32.mrb[7].mxu1 }
 0x935   :  { %3858 = vtanh.f32 %v526_v51  ;;  %v3550_v58 = vmul.f32 -1.442695, %v526_v51 }
 0x936   :  { %3860 = vtanh.f32 %v525_v54  ;;  %v3549_v59 = vmul.f32 -1.442695, %v525_v54 }
 0x937   :  { %3862 = vpow2.f32 %v3550_v58 }
 0x938   :  { %3864 = vpow2.f32 %v3549_v59 }
 0x93f   :  { %v3859_v56 = vpop.eup %3858 }
 0x940   :  { %v3861_v57 = vpop.eup %3860  ;;  %566 = vrot.lane.b32.xlu0 %v3859_v56, %s4209_s13 }
 0x941   :  { %539 = vrot.lane.b32.xlu1 %v3861_v57, %s4209_s13  ;;  %v3863_v39 = vpop.eup %3862 }
 0x942   :  { %v3865_v60 = vpop.eup %3864  ;;  %v557_v61 = vadd.f32 1.0, %v3863_v39 }
 0x943   :  { %v530_v17 = vadd.f32 1.0, %v3865_v60 }
 0x944   :  { %3866 = vrcp.f32 %v557_v61 }
 0x945   :  { %3868 = vrcp.f32 %v530_v17 }
 0x94e   :  { %v3867_v18 = vpop.eup %3866 }
 0x94f   :  { %v3869_v63 = vpop.eup %3868  ;;  %v564_v7 = vmul.f32 %v3867_v18, %v562_v4 }
 0x950   :  { %v537_v10 = vmul.f32 %v3869_v63, %v535_v5 }
 0x9b2   :  { %v567_v62 = vpop.permute.xlu0 %566 }
 0x9b3   :  { %v569_v0 = vmul.f32 %v3867_v18, %v567_v62  ;;  %v540_v2 = vpop.permute.xlu1 %539 }
 0x9b4   :  { %v542_v3 = vmul.f32 %v3869_v63, %v540_v2 }
 0x9b5   :  { %571 = vrot.lane.b32.xlu0 %v569_v0, %s4210_s14 }
 0x9b6   :  { %544 = vrot.lane.b32.xlu1 %v542_v3, %s4210_s14 }
 0xa27   :  { %v572_v9 = vpop.permute.xlu0 %571 }
 0xa28   :  { %v4456_v11 = vadd.f32 %v572_v9, %v564_v7  ;;  %v545_v12 = vpop.permute.xlu1 %544 }
 0xa29   :  { %v4458_v14 = vadd.f32 %v545_v12, %v537_v10 }
 0xa2a   :  { %3870 = vtanh.f32 %v4456_v11 }
 0xa2b   :  { %3872 = vtanh.f32 %v4458_v14  ;;  %v658_v61 = vrot.slane %v4458_v14, 6 }
 0xa34   :  { %v3871_v16 = vpop.eup %3870 }
 0xa35   :  { %v3873_v19 = vpop.eup %3872  ;;  %577 = vrot.lane.b32.xlu0 %v3871_v16, %s4209_s13 }
 0xa36   :  { %550 = vrot.lane.b32.xlu1 %v3873_v19, %s4209_s13 }
 0xaa7   :  { %v578_v20 = vpop.permute.xlu0 %577 }
 0xaa8   :  { %v4464_v21 = vmul.f32 %v3867_v18, %v578_v20  ;;  %v551_v22 = vpop.permute.xlu1 %550  ;;  %v685_v18 = vrot.slane %v4456_v11, 2 }
 0xaa9   :  { %v553_v23 = vmul.f32 %v3869_v63, %v551_v22 }
 0xaaa   :  { %v586_v24 = vrot.slane %v4464_v21, 2 }
 0xaab   :  { %582 = vrot.lane.b32.xlu0 %v553_v23, %s4210_s14 }
 0xaac   :  { %587 = vrot.lane.b32.xlu1 %v586_v24, %s4209_s13 }
 0xb1d   :  { %v583_v25 = vpop.permute.xlu0 %582 }
 0xb1e   :  { %592 = vst.msk [vmem:[#allocation2] sm:$0xc0] %vm591_vm6, %v583_v25  ;;  %v588_v26 = vpop.permute.xlu1 %587 }
 0xb1f   :  { %v590_v27 = vsel %vm175_vm1, %v583_v25, %v588_v26 }
 0xb20   :  { %v598_v28 = vpack.c.bf16 %v590_v27, %v590_v27 }
 0xb22   :  { %v600_v29 = vrot.slane %v598_v28, 3 }
 0xb24   :  { %3551 = vmatmul.mubr.msk.bf16.vlgmr.msra.gmra.mrb[8].mxu0 %vm225_vm3, %v600_v29 }
 0xb25   :  { %848 = vmatpush1.bf16.msra.mxu0 %v4310_v40  ;;  %879 = vmatprep.mubr.bf16.mxu0 %v4208_v1 }
 0xb26   :  { %849 = vmatprep.subr.bf16.mxu0 %v4316_v41 }
 0xb29   :  { %850 = vmatpush1.bf16.msra.mxu0 %v4323_v42 }
 0xb2a   :  { %851 = vmatprep.subr.bf16.mxu0 %v4328_v43 }
 0xb2d   :  { %852 = vmatpush1.bf16.msra.mxu0 %v4336_v45 }
 0xb2e   :  { %853 = vmatprep.subr.bf16.mxu0 %v4355_v49 }
 0xb31   :  { %854 = vmatpush1.bf16.msra.mxu0 %v4357_v50 }
 0xbf7   :  { %v638_v30 = vpop.f32.mrb[8].mxu0 }
 0xbf8   :  { %v645_v31 = vadd.f32 %v638_v30, %v4282_v15  ;;  %v640_v33 = vpop.f32.mrb[9].mxu0 }
 0xbf9   :  { %v647_v34 = vrot.slane %v640_v33, 2  ;;  %v642_v36 = vpop.f32.mrb[10].mxu0 }
 0xbfa   :  { %3874 = vtanh.f32 %v645_v31  ;;  %v643_v35 = vpop.f32.mrb[11].mxu0  ;;  %v3552_v47 = vmul.f32 -1.442695, %v645_v31 }
 0xbfb   :  { %v649_v37 = vadd.f32 %v647_v34, %v4280_v13 }
 0xbfd   :  { %3876 = vtanh.f32 %v649_v37  ;;  %v3553_v48 = vmul.f32 -1.442695, %v649_v37 }
 0xbfe   :  { %3878 = vpow2.f32 %v3552_v47 }
 0xbff   :  { %3880 = vpow2.f32 %v3553_v48 }
 0xc04   :  { %v3875_v44 = vpop.eup %3874 }
 0xc05   :  { %662 = vrot.lane.b32.xlu1 %v3875_v44, %s4209_s13 }
 0xc07   :  { %v3877_v46 = vpop.eup %3876 }
 0xc08   :  { %689 = vrot.lane.b32.xlu0 %v3877_v46, %s4209_s13  ;;  %v3879_v51 = vpop.eup %3878 }
 0xc09   :  { %v3881_v53 = vpop.eup %3880  ;;  %v653_v54 = vadd.f32 1.0, %v3879_v51 }
 0xc0a   :  { %v680_v55 = vadd.f32 1.0, %v3881_v53 }
 0xc0b   :  { %3882 = vrcp.f32 %v653_v54 }
 0xc0c   :  { %3884 = vrcp.f32 %v680_v55 }
 0xc15   :  { %v3883_v56 = vpop.eup %3882 }
 0xc16   :  { %v3885_v59 = vpop.eup %3884  ;;  %v660_v17 = vmul.f32 %v3883_v56, %v658_v61 }
 0xc17   :  { %v687_v0 = vmul.f32 %v3885_v59, %v685_v18 }
 0xc77   :  { %v663_v57 = vpop.permute.xlu1 %662 }
 0xc78   :  { %v665_v58 = vmul.f32 %v3883_v56, %v663_v57 }
 0xc7a   :  { %667 = vrot.lane.b32.xlu1 %v665_v58, %s4210_s14  ;;  %v690_v39 = vpop.permute.xlu0 %689 }
 0xc7b   :  { %v692_v60 = vmul.f32 %v3885_v59, %v690_v39 }
 0xc7d   :  { %694 = vrot.lane.b32.xlu0 %v692_v60, %s4210_s14 }
 0xcec   :  { %v668_v62 = vpop.permute.xlu1 %667 }
 0xced   :  { %v4488_v63 = vadd.f32 %v668_v62, %v660_v17 }
 0xcef   :  { %3886 = vtanh.f32 %v4488_v63  ;;  %v695_v2 = vpop.permute.xlu0 %694  ;;  %v780_v44 = vrot.slane %v4488_v63, 6 }
 0xcf0   :  { %v4491_v3 = vadd.f32 %v695_v2, %v687_v0 }
 0xcf2   :  { %3888 = vtanh.f32 %v4491_v3  ;;  %v807_v46 = vrot.slane %v4491_v3, 2 }
 0xcf9   :  { %v3887_v4 = vpop.eup %3886 }
 0xcfa   :  { %673 = vrot.lane.b32.xlu1 %v3887_v4, %s4209_s13 }
 0xcfc   :  { %v3889_v5 = vpop.eup %3888 }
 0xcfd   :  { %700 = vrot.lane.b32.xlu0 %v3889_v5, %s4209_s13 }
 0xd6c   :  { %v674_v7 = vpop.permute.xlu1 %673 }
 0xd6d   :  { %v676_v9 = vmul.f32 %v3883_v56, %v674_v7 }
 0xd6f   :  { %705 = vrot.lane.b32.xlu0 %v676_v9, %s4210_s14  ;;  %v701_v10 = vpop.permute.xlu0 %700 }
 0xd70   :  { %v4497_v11 = vmul.f32 %v3885_v59, %v701_v10 }
 0xd72   :  { %v709_v12 = vrot.slane %v4497_v11, 6 }
 0xd74   :  { %710 = vrot.lane.b32.xlu1 %v709_v12, %s4209_s13 }
 0xde1   :  { %v4501_v14 = vpop.permute.xlu0 %705 }
 0xde6   :  { %v711_v16 = vpop.permute.xlu1 %710 }
 0xde7   :  { %v713_v19 = vsel %vm175_vm1, %v4501_v14, %v711_v16 }
 0xde8   :  { %v719_v20 = vpack.c.bf16 %v713_v19, %v713_v19 }
 0xdea   :  { %3554 = vmatmul.mubr.msk.bf16.vlgmr.msra.gmra.mrb[8].mxu1 %vm225_vm3, %v719_v20 }
 0xdeb   :  { %972 = vmatpush1.bf16.msra.mxu1 %v4310_v40  ;;  %1003 = vmatprep.mubr.bf16.mxu1 %v4208_v1 }
 0xdec   :  { %973 = vmatprep.subr.bf16.mxu1 %v4316_v41 }
 0xdef   :  { %974 = vmatpush1.bf16.msra.mxu1 %v4323_v42 }
 0xdf0   :  { %975 = vmatprep.subr.bf16.mxu1 %v4328_v43 }
 0xdf3   :  { %976 = vmatpush1.bf16.msra.mxu1 %v4336_v45 }
 0xdf4   :  { %977 = vmatprep.subr.bf16.mxu1 %v4355_v49 }
 0xdf7   :  { %978 = vmatpush1.bf16.msra.mxu1 %v4357_v50 }
 0xebd   :  { %v757_v22 = vpop.f32.mrb[8].mxu1 }
 0xebe   :  { %v765_v23 = vrot.slane %v757_v22, 6  ;;  %v759_v24 = vpop.f32.mrb[9].mxu1 }
 0xebf   :  { %v769_v25 = vrot.slane %v759_v24, 4  ;;  %v761_v26 = vpop.f32.mrb[10].mxu1 }
 0xec0   :  { %v767_v40 = vadd.f32 %v765_v23, %v4282_v15  ;;  %v762_v27 = vpop.f32.mrb[11].mxu1 }
 0xec1   :  { %v771_v41 = vadd.f32 %v769_v25, %v4280_v13 }
 0xec2   :  { %3890 = vtanh.f32 %v767_v40  ;;  %v3555_v45 = vmul.f32 -1.442695, %v767_v40 }
 0xec3   :  { %3892 = vtanh.f32 %v771_v41  ;;  %v3556_v49 = vmul.f32 -1.442695, %v771_v41 }
 0xec4   :  { %3894 = vpow2.f32 %v3555_v45 }
 0xec5   :  { %3896 = vpow2.f32 %v3556_v49 }
 0xecc   :  { %v3891_v42 = vpop.eup %3890 }
 0xecd   :  { %v3893_v43 = vpop.eup %3892  ;;  %784 = vrot.lane.b32.xlu1 %v3891_v42, %s4209_s13 }
 0xece   :  { %811 = vrot.lane.b32.xlu0 %v3893_v43, %s4209_s13  ;;  %v3895_v50 = vpop.eup %3894 }
 0xecf   :  { %v3897_v28 = vpop.eup %3896  ;;  %v775_v29 = vadd.f32 1.0, %v3895_v50 }
 0xed0   :  { %v802_v30 = vadd.f32 1.0, %v3897_v28 }
 0xed1   :  { %3898 = vrcp.f32 %v775_v29 }
 0xed2   :  { %3900 = vrcp.f32 %v802_v30 }
 0xedb   :  { %v3899_v31 = vpop.eup %3898 }
 0xedc   :  { %v3901_v34 = vpop.eup %3900  ;;  %v782_v47 = vmul.f32 %v3899_v31, %v780_v44 }
 0xedd   :  { %v809_v51 = vmul.f32 %v3901_v34, %v807_v46 }
 0xf3f   :  { %v785_v33 = vpop.permute.xlu1 %784 }
 0xf40   :  { %v787_v36 = vmul.f32 %v3899_v31, %v785_v33  ;;  %v812_v35 = vpop.permute.xlu0 %811 }
 0xf41   :  { %v814_v37 = vmul.f32 %v3901_v34, %v812_v35 }
 0xf42   :  { %789 = vrot.lane.b32.xlu1 %v787_v36, %s4210_s14 }
 0xf43   :  { %816 = vrot.lane.b32.xlu0 %v814_v37, %s4210_s14  ;;  %v3770_v37 = vld [vmem:[%s5454_s1 + $0x14] ss:$8 sps:$4 sm:$0xff]  }
 0xf44   :  { %1230 = vmatprep.subr.bf16.mxu1 %v3770_v37 }
 0xfb4   :  { %v790_v48 = vpop.permute.xlu1 %789 }
 0xfb5   :  { %v792_v53 = vadd.f32 %v790_v48, %v782_v47  ;;  %v817_v54 = vpop.permute.xlu0 %816 }
 0xfb6   :  { %v819_v55 = vadd.f32 %v817_v54, %v809_v51 }
 0xfb7   :  { %3902 = vtanh.f32 %v792_v53  ;;  %v904_v49 = vrot.slane %v792_v53, 6 }
 0xfb8   :  { %3904 = vtanh.f32 %v819_v55  ;;  %v931_v50 = vrot.slane %v819_v55, 2 }
 0xfc1   :  { %v3903_v56 = vpop.eup %3902 }
 0xfc2   :  { %v3905_v57 = vpop.eup %3904  ;;  %795 = vrot.lane.b32.xlu1 %v3903_v56, %s4209_s13 }
 0xfc3   :  { %822 = vrot.lane.b32.xlu0 %v3905_v57, %s4209_s13  ;;  %v3768_v57 = vld [vmem:[%s5454_s1 + $0x10] ss:$8 sps:$4 sm:$0xff]  }
0x1034   :  { %v796_v58 = vpop.permute.xlu1 %795 }
0x1035   :  { %v798_v59 = vmul.f32 %v3899_v31, %v796_v58  ;;  %v823_v39 = vpop.permute.xlu0 %822 }
0x1036   :  { %v4524_v60 = vmul.f32 %v3901_v34, %v823_v39 }
0x1037   :  { %827 = vrot.lane.b32.xlu0 %v798_v59, %s4210_s14  ;;  %v4206_v59 = vld [vmem:[%s5455_s0] sm:$0xff]  }
0x1038   :  { %v831_v61 = vrot.slane %v4524_v60, 2 }
0x103a   :  { %832 = vrot.lane.b32.xlu1 %v831_v61, %s4209_s13 }
0x10a9   :  { %v4529_v17 = vpop.permute.xlu0 %827 }
0x10ac   :  { %v833_v18 = vpop.permute.xlu1 %832 }
0x10ad   :  { %v835_v62 = vsel %vm175_vm1, %v4529_v17, %v833_v18 }
0x10ae   :  { %v841_v63 = vpack.c.bf16 %v835_v62, %v835_v62 }
0x10b0   :  { %v843_v0 = vrot.slane %v841_v63, 1 }
0x10b2   :  { %3557 = vmatmul.mubr.msk.bf16.vlgmr.msra.gmra.mrb[12].mxu0 %vm225_vm3, %v843_v0  ;;  %v3571_v0 = vld [vmem:[%s5456_s2 + $0x2] sm:$0x3] }
0x1185   :  { %v881_v2 = vpop.f32.mrb[12].mxu0 }
0x1186   :  { %v889_v3 = vrot.slane %v881_v2, 4  ;;  %v883_v4 = vpop.f32.mrb[13].mxu0 }
0x1187   :  { %v893_v5 = vrot.slane %v883_v4, 6  ;;  %v885_v7 = vpop.f32.mrb[14].mxu0  ;;  %v1213_v4 = vrot.slane %v3571_v0, %v4276_v8 }
0x1188   :  { %v891_v9 = vadd.f32 %v889_v3, %v4282_v15  ;;  %v886_v10 = vpop.f32.mrb[15].mxu0  ;;  %v1217_v7 = vrot.slane %v3571_v0, %v4271_v6 }
0x1189   :  { %v895_v12 = vadd.f32 %v893_v5, %v4280_v13 }
0x118a   :  { %3906 = vtanh.f32 %v891_v9  ;;  %v3558_v20 = vmul.f32 -1.442695, %v891_v9 }
0x118b   :  { %3908 = vtanh.f32 %v895_v12  ;;  %v3559_v22 = vmul.f32 -1.442695, %v895_v12 }
0x118c   :  { %3910 = vpow2.f32 %v3558_v20 }
0x118d   :  { %3912 = vpow2.f32 %v3559_v22 }
0x1194   :  { %v3907_v16 = vpop.eup %3906 }
0x1195   :  { %v3909_v19 = vpop.eup %3908  ;;  %908 = vrot.lane.b32.xlu1 %v3907_v16, %s4209_s13 }
0x1196   :  { %935 = vrot.lane.b32.xlu0 %v3909_v19, %s4209_s13  ;;  %v3911_v23 = vpop.eup %3910 }
0x1197   :  { %v3913_v24 = vpop.eup %3912  ;;  %v899_v25 = vadd.f32 1.0, %v3911_v23 }
0x1198   :  { %v926_v26 = vadd.f32 1.0, %v3913_v24 }
0x1199   :  { %3914 = vrcp.f32 %v899_v25 }
0x119a   :  { %3916 = vrcp.f32 %v926_v26 }
0x11a3   :  { %v3915_v40 = vpop.eup %3914 }
0x11a4   :  { %v3917_v41 = vpop.eup %3916  ;;  %v906_v28 = vmul.f32 %v3915_v40, %v904_v49 }
0x11a5   :  { %v933_v30 = vmul.f32 %v3917_v41, %v931_v50 }
0x1207   :  { %v909_v27 = vpop.permute.xlu1 %908 }
0x1208   :  { %v911_v42 = vmul.f32 %v3915_v40, %v909_v27  ;;  %v936_v43 = vpop.permute.xlu0 %935 }
0x1209   :  { %v938_v45 = vmul.f32 %v3917_v41, %v936_v43 }
0x120a   :  { %913 = vrot.lane.b32.xlu1 %v911_v42, %s4210_s14 }
0x120b   :  { %940 = vrot.lane.b32.xlu0 %v938_v45, %s4210_s14 }
0x127c   :  { %v914_v29 = vpop.permute.xlu1 %913 }
0x127d   :  { %v4540_v31 = vadd.f32 %v914_v29, %v906_v28  ;;  %v941_v33 = vpop.permute.xlu0 %940 }
0x127e   :  { %v4542_v34 = vadd.f32 %v941_v33, %v933_v30 }
0x127f   :  { %3918 = vtanh.f32 %v4540_v31 }
0x1280   :  { %3920 = vtanh.f32 %v4542_v34 }
0x1289   :  { %v3919_v36 = vpop.eup %3918 }
0x128a   :  { %v3921_v35 = vpop.eup %3920  ;;  %919 = vrot.lane.b32.xlu1 %v3919_v36, %s4209_s13 }
0x128b   :  { %946 = vrot.lane.b32.xlu0 %v3921_v35, %s4209_s13 }
0x12fc   :  { %v920_v44 = vpop.permute.xlu1 %919 }
0x12fd   :  { %v922_v46 = vmul.f32 %v3915_v40, %v920_v44  ;;  %v947_v47 = vpop.permute.xlu0 %946 }
0x12fe   :  { %v4551_v48 = vmul.f32 %v3917_v41, %v947_v47 }
0x12ff   :  { %951 = vrot.lane.b32.xlu0 %v922_v46, %s4210_s14 }
0x1300   :  { %v955_v51 = vrot.slane %v4551_v48, 6 }
0x1302   :  { %956 = vrot.lane.b32.xlu1 %v955_v51, %s4209_s13 }
0x1371   :  { %v4556_v53 = vpop.permute.xlu0 %951 }
0x1374   :  { %v957_v54 = vpop.permute.xlu1 %956 }
0x1375   :  { %v959_v55 = vsel %vm175_vm1, %v4556_v53, %v957_v54 }
0x1376   :  { %v965_v56 = vpack.c.bf16 %v959_v55, %v959_v55 }
0x1378   :  { %v967_v58 = vrot.slane %v965_v56, 2 }
0x137a   :  { %3560 = vmatmul.mubr.msk.bf16.vlgmr.msra.gmra.mrb[12].mxu1 %vm225_vm3, %v967_v58  ;;  %v1025_v58 = vrot.slane %v4540_v31, 6 }
0x137b   :  { %1231 = vmatpush1.bf16.msra.mxu1 %v3768_v57  ;;  %1262 = vmatprep.mubr.bf16.mxu1 %v4208_v1  ;;  %v1052_v57 = vrot.slane %v4542_v34, 2 }
0x1382   :  { %3574 = vmatmul.mubr.msk.bf16.vlgmr.msra.gmra.mrb[16].mxu1 %vm61_vm0, %v4206_v59 }
0x1383   :  { %1547 = vmatprep.mubr.bf16.mxu1 %v4208_v1 }
0x144d   :  { %v1005_v39 = vpop.f32.mrb[12].mxu1 }
0x144e   :  { %v1013_v61 = vrot.slane %v1005_v39, 2  ;;  %v1007_v18 = vpop.f32.mrb[13].mxu1 }
0x144f   :  { %v1016_v62 = vadd.f32 %v1007_v18, %v4280_v13  ;;  %v1009_v63 = vpop.f32.mrb[14].mxu1 }
0x1450   :  { %v1015_v2 = vadd.f32 %v1013_v61, %v4282_v15  ;;  %v1010_v3 = vpop.f32.mrb[15].mxu1 }
0x1451   :  { %3922 = vtanh.f32 %v1016_v62  ;;  %v3562_v25 = vmul.f32 -1.442695, %v1016_v62 }
0x1452   :  { %3924 = vtanh.f32 %v1015_v2  ;;  %v3561_v26 = vmul.f32 -1.442695, %v1015_v2 }
0x1455   :  { %v1264_v5 = vpop.f32.mrb[16].mxu1 }
0x1456   :  { %v4577_v9 = vadd.f32 %v1264_v5, %v1213_v4  ;;  %v1266_v10 = vpop.f32.mrb[17].mxu1 }
0x1457   :  { %v4579_v12 = vadd.f32 %v1266_v10, %v1217_v7  ;;  %v1268_v13 = vpop.f32.mrb[18].mxu1 }
0x1458   :  { %3926 = vtanh.f32 %v4577_v9  ;;  %v4582_v16 = vadd.f32 %v1268_v13, %v1213_v4  ;;  %v1270_v19 = vpop.f32.mrb[19].mxu1  ;;  %v3583_v40 = vmul.f32 -1.442695, %v4577_v9 }
0x1459   :  { %v4584_v15 = vadd.f32 %v1270_v19, %v1217_v7  ;;  %v4211_v19 = vmov 0.0  }
0x145a   :  { %3712 = vmatprep.subr.bf16.mxu0 %v4211_v19  ;;  %3720 = vmatprep.mubr.msk.bf16.mxu0 %vm4212_vm7, %v4211_v19 }
0x145b   :  { %v3923_v20 = vpop.eup %3922  ;;  %3928 = vtanh.f32 %v4584_v15  ;;  %v3584_v27 = vmul.f32 -1.442695, %v4584_v15 }
0x145c   :  { %v3925_v22 = vpop.eup %3924  ;;  %1056 = vrot.lane.b32.xlu1 %v3923_v20, %s4209_s13  ;;  %3930 = vpow2.f32 %v3562_v25  ;;  %v3771_v20 = vld [vmem:[%s5458_s4] sm:$0xff]   ;;  %v4682_v25 = vld [vmem:[%s5457_s3 + $0x50] ss:$8 sps:$4 sm:$0xff]  }
0x145d   :  { %1029 = vrot.lane.b32.xlu0 %v3925_v22, %s4209_s13  ;;  %3932 = vpow2.f32 %v3561_v26  ;;  %v3772_v22 = vld [vmem:[%s5458_s4 + $0x8] sm:$0xff]   ;;  %3713 = vmatpush3.bf16.msra.mxu0 %v3771_v20 }
0x145e   :  { %3934 = vpow2.f32 %v3583_v40  ;;  %3714 = vmatprep.subr.bf16.mxu0 %v4211_v19  ;;  %v4688_v26 = vld [vmem:[%s5457_s3 + $0x64] ss:$8 sps:$4 sm:$0xff]  }
0x145f   :  { %3936 = vpow2.f32 %v3584_v27 }
0x1461   :  { %3715 = vmatpush3.bf16.msra.mxu0 %v3772_v22 }
0x1462   :  { %v3927_v23 = vpop.eup %3926  ;;  %3716 = vmatprep.subr.bf16.mxu0 %v4211_v19 }
0x1463   :  { %1293 = vrot.lane.b32.xlu1 %v3927_v23, %s4209_s13 }
0x1465   :  { %v3929_v24 = vpop.eup %3928 }
0x1466   :  { %1317 = vrot.lane.b32.xlu0 %v3929_v24, %s4209_s13  ;;  %v3931_v41 = vpop.eup %3930  ;;  %v4676_v24 = vld [vmem:[%s5457_s3 + $0x54] ss:$8 sps:$4 sm:$0xff]  }
0x1467   :  { %v3933_v42 = vpop.eup %3932  ;;  %v1047_v43 = vadd.f32 1.0, %v3931_v41  ;;  %v4695_v41 = vld [vmem:[%s5457_s3 + $0x60] ss:$8 sps:$4 sm:$0xff]  }
0x1468   :  { %v1020_v45 = vadd.f32 1.0, %v3933_v42  ;;  %v3935_v49 = vpop.eup %3934 }
0x1469   :  { %3938 = vrcp.f32 %v1047_v43  ;;  %v3937_v50 = vpop.eup %3936  ;;  %v1287_v28 = vadd.f32 1.0, %v3935_v49  ;;  %v4702_v43 = vld [vmem:[%s5457_s3 + $0x74] ss:$8 sps:$4 sm:$0xff]  }
0x146a   :  { %3940 = vrcp.f32 %v1020_v45  ;;  %v1311_v29 = vadd.f32 1.0, %v3937_v50  ;;  %v4712_v50 = vld [vmem:[%s5457_s3 + $0x70] ss:$8 sps:$4 sm:$0xff]  }
0x146b   :  { %3942 = vrcp.f32 %v1287_v28 }
0x146c   :  { %3944 = vrcp.f32 %v1311_v29 }
0x1473   :  { %v4593_v30 = vpop.eup %3938 }
0x1474   :  { %v4595_v36 = vpop.eup %3940  ;;  %v1054_v59 = vmul.f32 %v4593_v30, %v1052_v57 }
0x1475   :  { %v4601_v46 = vpop.eup %3942  ;;  %v1027_v61 = vmul.f32 %v4595_v36, %v1025_v58 }
0x1476   :  { %v4604_v54 = vpop.eup %3944  ;;  %v1291_v0 = vmul.f32 0.0, %v4601_v46 }
0x1477   :  { %v1315_v4 = vmul.f32 0.0, %v4604_v54 }
0x14ce   :  { %v1057_v33 = vpop.permute.xlu1 %1056 }
0x14cf   :  { %v1059_v35 = vmul.f32 %v4593_v30, %v1057_v33  ;;  %v1030_v37 = vpop.permute.xlu0 %1029 }
0x14d0   :  { %v1032_v44 = vmul.f32 %v4595_v36, %v1030_v37 }
0x14d1   :  { %1061 = vrot.lane.b32.xlu1 %v1059_v35, %s4210_s14 }
0x14d2   :  { %1034 = vrot.lane.b32.xlu0 %v1032_v44, %s4210_s14 }
0x14d5   :  { %v1294_v47 = vpop.permute.xlu1 %1293 }
0x14d6   :  { %v1296_v51 = vmul.f32 %v4601_v46, %v1294_v47 }
0x14d8   :  { %v1318_v55 = vpop.permute.xlu0 %1317  ;;  %1298 = vrot.lane.b32.xlu1 %v1296_v51, %s4210_s14 }
0x14d9   :  { %v1320_v56 = vmul.f32 %v4604_v54, %v1318_v55 }
0x14db   :  { %1322 = vrot.lane.b32.xlu0 %v1320_v56, %s4210_s14 }
0x1543   :  { %v1062_v39 = vpop.permute.xlu1 %1061 }
0x1544   :  { %v1064_v18 = vadd.f32 %v1062_v39, %v1054_v59  ;;  %v1035_v62 = vpop.permute.xlu0 %1034 }
0x1545   :  { %v1037_v63 = vadd.f32 %v1035_v62, %v1027_v61 }
0x1546   :  { %3946 = vtanh.f32 %v1064_v18 }
0x1547   :  { %3948 = vtanh.f32 %v1037_v63 }
0x154a   :  { %v1299_v2 = vpop.permute.xlu1 %1298 }
0x154b   :  { %v4614_v3 = vadd.f32 %v1299_v2, %v1291_v0 }
0x154d   :  { %3950 = vtanh.f32 %v4614_v3  ;;  %v1323_v31 = vpop.permute.xlu0 %1322 }
0x154e   :  { %v4618_v34 = vadd.f32 %v1323_v31, %v1315_v4 }
0x1550   :  { %v3947_v5 = vpop.eup %3946  ;;  %3952 = vtanh.f32 %v4618_v34 }
0x1551   :  { %v3949_v7 = vpop.eup %3948  ;;  %1067 = vrot.lane.b32.xlu1 %v3947_v5, %s4209_s13 }
0x1552   :  { %1040 = vrot.lane.b32.xlu0 %v3949_v7, %s4209_s13 }
0x1557   :  { %v3951_v10 = vpop.eup %3950 }
0x1558   :  { %1304 = vrot.lane.b32.xlu1 %v3951_v10, %s4209_s13 }
0x155a   :  { %v3953_v13 = vpop.eup %3952 }
0x155b   :  { %1328 = vrot.lane.b32.xlu0 %v3953_v13, %s4209_s13 }
0x155c   :  { %344 = vrot.lane.b32.xlu1 %v4398_v38, %s4209_s13  ;;  %v3774_v38 = vld [vmem:[%s5458_s4 + $0x18] sm:$0xff]  }
0x155f   :  { %179 = vrot.lane.b32.xlu0 %v4365_v52, %s4209_s13  ;;  %v3773_v52 = vld [vmem:[%s5458_s4 + $0x10] sm:$0xff]  }
0x1560   :  { %593 = vrot.lane.b32.xlu1 %v4464_v21, %s4209_s13  ;;  %3717 = vmatpush3.bf16.msra.mxu0 %v3773_v52  ;;  %v4665_v21 = vld [vmem:[%s5457_s3 + $0x40] ss:$8 sps:$4 sm:$0xff]  }
0x1561   :  { %3718 = vmatprep.subr.bf16.mxu0 %v4211_v19 }
0x1563   :  { %470 = vrot.lane.b32.xlu0 %v4431_v32, %s4209_s13  ;;  %v4658_v32 = vld [vmem:[%s5457_s3 + $0x44] ss:$8 sps:$4 sm:$0xff]  }
0x1564   :  { %837 = vrot.lane.b32.xlu1 %v4524_v60, %s4209_s13  ;;  %3719 = vmatpush3.bf16.msra.mxu0 %v3774_v38 }
0x1565   :  { %1391 = vmatprep.subr.bf16.mxu0 %v4658_v32  ;;  %1515 = vmatprep.subr.bf16.mxu1 %v4658_v32 }
0x1566   :  { %1516 = vmatpush1.bf16.msra.mxu1 %v4665_v21 }
0x1567   :  { %715 = vrot.lane.b32.xlu0 %v4497_v11, %s4209_s13  ;;  %1517 = vmatprep.subr.bf16.mxu1 %v4676_v24 }
0x156a   :  { %1518 = vmatpush1.bf16.msra.mxu1 %v4682_v25 }
0x156b   :  { %961 = vrot.lane.b32.xlu0 %v4551_v48, %s4209_s13  ;;  %1519 = vmatprep.subr.bf16.mxu1 %v4688_v26 }
0x156e   :  { %1520 = vmatpush1.bf16.msra.mxu1 %v4695_v41 }
0x156f   :  { %1521 = vmatprep.subr.bf16.mxu1 %v4702_v43 }
0x1572   :  { %1522 = vmatpush1.bf16.msra.mxu1 %v4712_v50 }
0x1573   :  { %1760 = vmatprep.subr.bf16.mxu1 %v4658_v32 }
0x15c3   :  { %v1068_v11 = vpop.permute.xlu1 %1067 }
0x15c4   :  { %v1070_v60 = vmul.f32 %v4593_v30, %v1068_v11  ;;  %v1041_v48 = vpop.permute.xlu0 %1040 }
0x15c5   :  { %v1043_v23 = vmul.f32 %v4595_v36, %v1041_v48 }
0x15c6   :  { %1077 = vrot.lane.b32.xlu0 %v1070_v60, %s4209_s13 }
0x15c7   :  { %1072 = vrot.lane.b32.xlu1 %v1043_v23, %s4210_s14 }
0x15ca   :  { %v1305_v40 = vpop.permute.xlu1 %1304 }
0x15cb   :  { %v1307_v27 = vmul.f32 %v4601_v46, %v1305_v40 }
0x15cd   :  { %v1329_v42 = vpop.permute.xlu0 %1328  ;;  %1333 = vrot.lane.b32.xlu1 %v1307_v27, %s4210_s14  ;;  %v1448_v27 = vrot.slane %v4614_v3, 6 }
0x15ce   :  { %v4706_v45 = vmul.f32 %v4604_v54, %v1329_v42  ;;  %v345_v49 = vpop.permute.xlu1 %344  ;;  %v1475_v42 = vrot.slane %v4618_v34, 2 }
0x15cf   :  { %348 = vst.msk [vmem:[#allocation2 + $0x8] sm:$0x30] %vm347_vm8, %v345_v49 }
0x15d0   :  { %v1337_v28 = vrot.slane %v4706_v45, 6  ;;  %960 = vst.msk [vmem:[#allocation2 + $0x8] sm:$0x30] %vm468_vm5, %v4556_v53 }
0x15d1   :  { %v180_v29 = vpop.permute.xlu0 %179 }
0x15d2   :  { %183 = vst.msk [vmem:[#allocation2 + $0x8] sm:$0xc0] %vm182_vm9, %v180_v29  ;;  %1338 = vrot.lane.b32.xlu0 %v1337_v28, %s4209_s13  ;;  %v594_v30 = vpop.permute.xlu1 %593 }
0x15d3   :  { %597 = vst.msk [vmem:[#allocation2 + $0x8] sm:$0x3] %vm596_vm10, %v594_v30 }
0x15d4   :  { %714 = vst.msk [vmem:[#allocation2 + $0x8] sm:$0x3] %vm177_vm2, %v4501_v14 }
0x15d5   :  { %v471_v33 = vpop.permute.xlu0 %470 }
0x15d6   :  { %474 = vst.msk [vmem:[#allocation2 + $0x8] sm:$0xc] %vm473_vm11, %v471_v33  ;;  %v838_v53 = vpop.permute.xlu1 %837 }
0x15d7   :  { %836 = vst.msk [vmem:[#allocation2 + $0x8] sm:$0xc] %vm342_vm4, %v4529_v17 }
0x15d8   :  { %840 = vst.msk [vmem:[#allocation2] sm:$0x30] %vm347_vm8, %v838_v53 }
0x15d9   :  { %v716_v36 = vpop.permute.xlu0 %715 }
0x15da   :  { %718 = vst.msk [vmem:[#allocation2] sm:$0xc0] %vm182_vm9, %v716_v36 }
0x15dd   :  { %v962_v35 = vpop.permute.xlu0 %961 }
0x15de   :  { %964 = vst.msk [vmem:[#allocation2] sm:$0xc] %vm473_vm11, %v962_v35 }
0x1638   :  { %v1078_v37 = vpop.permute.xlu0 %1077 }
0x1639   :  { %1080 = vst.msk [vmem:[#allocation2] sm:$0x3] %vm596_vm10, %v1078_v37  ;;  %v1073_v44 = vpop.permute.xlu1 %1072 }
0x163a   :  { %1075 = vst.msk [vmem:[#allocation2 + $0x8] sm:$0xc0] %vm591_vm6, %v1073_v44 }
0x163f   :  { %v1334_v14 = vpop.permute.xlu1 %1333 }
0x1640   :  { %v1081_v46 = vld [vmem:[#allocation2] sm:$0xff] }
0x1641   :  { %v1082_v47 = vld [vmem:[#allocation2 + $0x8] sm:$0xff]  ;;  %1342 = vst.msk [vmem:[#allocation2] sm:$0x3] %vm177_vm2, %v1334_v14 }
0x1642   :  { %v1083_v17 = vpack.c.bf16 %v1082_v47, %v1081_v46 }
0x1644   :  { %3721 = vmatmul.mubr.msk.bf16.vlgmr.msra.gmra.mrb[16].mxu0 %vm225_vm3, %v1083_v17  ;;  %v1339_v51 = vpop.permute.xlu0 %1338 }
0x1645   :  { %1392 = vmatpush1.bf16.msra.mxu0 %v4665_v21  ;;  %1423 = vmatprep.mubr.bf16.mxu0 %v4208_v1  ;;  %v1341_v54 = vsel %vm175_vm1, %v1334_v14, %v1339_v51 }
0x1646   :  { %1393 = vmatprep.subr.bf16.mxu0 %v4676_v24  ;;  %v1347_v55 = vpack.c.bf16 %v1341_v54, %v1341_v54 }
0x1649   :  { %1394 = vmatpush1.bf16.msra.mxu0 %v4682_v25 }
0x164a   :  { %1395 = vmatprep.subr.bf16.mxu0 %v4688_v26 }
0x164d   :  { %1396 = vmatpush1.bf16.msra.mxu0 %v4695_v41 }
0x164e   :  { %1397 = vmatprep.subr.bf16.mxu0 %v4702_v43 }
0x1651   :  { %1398 = vmatpush1.bf16.msra.mxu0 %v4712_v50 }
0x1652   :  { %1639 = vmatprep.subr.bf16.mxu0 %v4658_v32 }
0x1654   :  { %3593 = vmatmul.mubr.msk.bf16.vlgmr.msra.gmra.mrb[20].mxu0 %vm225_vm3, %v1347_v55 }
0x1655   :  { %1640 = vmatpush1.bf16.msra.mxu0 %v4665_v21  ;;  %1671 = vmatprep.mubr.bf16.mxu0 %v4208_v1 }
0x1656   :  { %1641 = vmatprep.subr.bf16.mxu0 %v4676_v24 }
0x1659   :  { %1642 = vmatpush1.bf16.msra.mxu0 %v4682_v25 }
0x165a   :  { %1643 = vmatprep.subr.bf16.mxu0 %v4688_v26 }
0x165d   :  { %1644 = vmatpush1.bf16.msra.mxu0 %v4695_v41 }
0x165e   :  { %1645 = vmatprep.subr.bf16.mxu0 %v4702_v43 }
0x1661   :  { %1646 = vmatpush1.bf16.msra.mxu0 %v4712_v50 }
0x1662   :  { %1879 = vmatprep.subr.bf16.mxu0 %v4658_v32 }
0x1717   :  { %v4755_v56 = vpop.f32.mrb[16].mxu0 }
0x1718   :  { %v3722_v57 = vpop.f32.mrb[17].mxu0 }
0x1719   :  { %v4757_v58 = vpop.f32.mrb[18].mxu0 }
0x171a   :  { %v3723_v59 = vpop.f32.mrb[19].mxu0 }
0x1727   :  { %v1425_v39 = vpop.f32.mrb[20].mxu0 }
0x1728   :  { %v1433_v61 = vrot.slane %v1425_v39, 6  ;;  %v1427_v18 = vpop.f32.mrb[21].mxu0 }
0x1729   :  { %v1437_v62 = vrot.slane %v1427_v18, 4  ;;  %v1429_v63 = vpop.f32.mrb[22].mxu0 }
0x172a   :  { %v1435_v0 = vadd.f32 %v1433_v61, %v4577_v9  ;;  %v1430_v2 = vpop.f32.mrb[23].mxu0 }
0x172b   :  { %v1439_v4 = vadd.f32 %v1437_v62, %v4584_v15 }
0x172c   :  { %3954 = vtanh.f32 %v1435_v0  ;;  %v3594_v7 = vmul.f32 -1.442695, %v1435_v0 }
0x172d   :  { %3956 = vtanh.f32 %v1439_v4  ;;  %v3595_v10 = vmul.f32 -1.442695, %v1439_v4 }
0x172e   :  { %3958 = vpow2.f32 %v3594_v7 }
0x172f   :  { %3960 = vpow2.f32 %v3595_v10 }
0x1736   :  { %v3955_v31 = vpop.eup %3954 }
0x1737   :  { %v3957_v5 = vpop.eup %3956  ;;  %1452 = vrot.lane.b32.xlu0 %v3955_v31, %s4209_s13 }
0x1738   :  { %1479 = vrot.lane.b32.xlu1 %v3957_v5, %s4209_s13  ;;  %v3959_v13 = vpop.eup %3958 }
0x1739   :  { %v3961_v20 = vpop.eup %3960  ;;  %v1443_v22 = vadd.f32 1.0, %v3959_v13 }
0x173a   :  { %v1470_v52 = vadd.f32 1.0, %v3961_v20 }
0x173b   :  { %3962 = vrcp.f32 %v1443_v22 }
0x173c   :  { %3964 = vrcp.f32 %v1470_v52 }
0x1745   :  { %v3963_v38 = vpop.eup %3962 }
0x1746   :  { %v3965_v60 = vpop.eup %3964  ;;  %v1450_v49 = vmul.f32 %v3963_v38, %v1448_v27 }
0x1747   :  { %v1477_v29 = vmul.f32 %v3965_v60, %v1475_v42 }
0x17a9   :  { %v1453_v11 = vpop.permute.xlu0 %1452 }
0x17aa   :  { %v1455_v48 = vmul.f32 %v3963_v38, %v1453_v11  ;;  %v1480_v23 = vpop.permute.xlu1 %1479 }
0x17ab   :  { %v1482_v40 = vmul.f32 %v3965_v60, %v1480_v23 }
0x17ac   :  { %1457 = vrot.lane.b32.xlu0 %v1455_v48, %s4210_s14 }
0x17ad   :  { %1484 = vrot.lane.b32.xlu1 %v1482_v40, %s4210_s14 }
0x181e   :  { %v1458_v28 = vpop.permute.xlu0 %1457 }
0x181f   :  { %v4767_v30 = vadd.f32 %v1458_v28, %v1450_v49  ;;  %v1485_v33 = vpop.permute.xlu1 %1484 }
0x1820   :  { %v4769_v53 = vadd.f32 %v1485_v33, %v1477_v29 }
0x1821   :  { %3966 = vtanh.f32 %v4767_v30  ;;  %v1572_v48 = vrot.slane %v4767_v30, 6 }
0x1822   :  { %3968 = vtanh.f32 %v4769_v53  ;;  %v1599_v23 = vrot.slane %v4769_v53, 2 }
0x182b   :  { %v3967_v36 = vpop.eup %3966 }
0x182c   :  { %v3969_v35 = vpop.eup %3968  ;;  %1463 = vrot.lane.b32.xlu0 %v3967_v36, %s4209_s13 }
0x182d   :  { %1490 = vrot.lane.b32.xlu1 %v3969_v35, %s4209_s13 }
0x189e   :  { %v1464_v3 = vpop.permute.xlu0 %1463 }
0x189f   :  { %v1466_v34 = vmul.f32 %v3963_v38, %v1464_v3  ;;  %v1491_v37 = vpop.permute.xlu1 %1490 }
0x18a0   :  { %v4775_v44 = vmul.f32 %v3965_v60, %v1491_v37 }
0x18a1   :  { %1495 = vrot.lane.b32.xlu1 %v1466_v34, %s4210_s14 }
0x18a2   :  { %v1499_v14 = vrot.slane %v4775_v44, 2 }
0x18a4   :  { %1500 = vrot.lane.b32.xlu0 %v1499_v14, %s4209_s13 }
0x1913   :  { %v1496_v46 = vpop.permute.xlu1 %1495 }
0x1914   :  { %1504 = vst.msk [vmem:[#allocation2] sm:$0xc] %vm342_vm4, %v1496_v46 }
0x1916   :  { %v1501_v47 = vpop.permute.xlu0 %1500 }
0x1917   :  { %v1503_v17 = vsel %vm175_vm1, %v1496_v46, %v1501_v47 }
0x1918   :  { %v1509_v51 = vpack.c.bf16 %v1503_v17, %v1503_v17 }
0x191a   :  { %v1511_v54 = vrot.slane %v1509_v51, 1 }
0x191c   :  { %3596 = vmatmul.mubr.msk.bf16.vlgmr.msra.gmra.mrb[20].mxu1 %vm225_vm3, %v1511_v54 }
0x191d   :  { %1761 = vmatpush1.bf16.msra.mxu1 %v4665_v21  ;;  %1792 = vmatprep.mubr.bf16.mxu1 %v4208_v1 }
0x191e   :  { %1762 = vmatprep.subr.bf16.mxu1 %v4676_v24 }
0x1921   :  { %1763 = vmatpush1.bf16.msra.mxu1 %v4682_v25 }
0x1922   :  { %1764 = vmatprep.subr.bf16.mxu1 %v4688_v26 }
0x1925   :  { %1765 = vmatpush1.bf16.msra.mxu1 %v4695_v41 }
0x1926   :  { %1766 = vmatprep.subr.bf16.mxu1 %v4702_v43 }
0x1929   :  { %1767 = vmatpush1.bf16.msra.mxu1 %v4712_v50 }
0x192a   :  { %2003 = vmatprep.subr.bf16.mxu1 %v4658_v32 }
0x19ef   :  { %v1549_v55 = vpop.f32.mrb[20].mxu1 }
0x19f0   :  { %v1557_v57 = vrot.slane %v1549_v55, 4  ;;  %v1551_v59 = vpop.f32.mrb[21].mxu1 }
0x19f1   :  { %v1561_v39 = vrot.slane %v1551_v59, 6  ;;  %v1553_v61 = vpop.f32.mrb[22].mxu1 }
0x19f2   :  { %v1559_v18 = vadd.f32 %v1557_v57, %v4577_v9  ;;  %v1554_v62 = vpop.f32.mrb[23].mxu1 }
0x19f3   :  { %v1563_v63 = vadd.f32 %v1561_v39, %v4584_v15 }
0x19f4   :  { %3970 = vtanh.f32 %v1559_v18  ;;  %v3597_v4 = vmul.f32 -1.442695, %v1559_v18 }
0x19f5   :  { %3972 = vtanh.f32 %v1563_v63  ;;  %v3598_v31 = vmul.f32 -1.442695, %v1563_v63 }
0x19f6   :  { %3974 = vpow2.f32 %v3597_v4 }
0x19f7   :  { %3976 = vpow2.f32 %v3598_v31 }
0x19fe   :  { %v3971_v0 = vpop.eup %3970 }
0x19ff   :  { %v3973_v2 = vpop.eup %3972  ;;  %1576 = vrot.lane.b32.xlu0 %v3971_v0, %s4209_s13 }
0x1a00   :  { %1603 = vrot.lane.b32.xlu1 %v3973_v2, %s4209_s13  ;;  %v3975_v5 = vpop.eup %3974 }
0x1a01   :  { %v3977_v7 = vpop.eup %3976  ;;  %v1567_v10 = vadd.f32 1.0, %v3975_v5 }
0x1a02   :  { %v1594_v13 = vadd.f32 1.0, %v3977_v7 }
0x1a03   :  { %3978 = vrcp.f32 %v1567_v10 }
0x1a04   :  { %3980 = vrcp.f32 %v1594_v13 }
0x1a0d   :  { %v3979_v20 = vpop.eup %3978 }
0x1a0e   :  { %v3981_v52 = vpop.eup %3980  ;;  %v1574_v40 = vmul.f32 %v3979_v20, %v1572_v48 }
0x1a0f   :  { %v1601_v42 = vmul.f32 %v3981_v52, %v1599_v23 }
0x1a71   :  { %v1577_v22 = vpop.permute.xlu0 %1576 }
0x1a72   :  { %v1579_v38 = vmul.f32 %v3979_v20, %v1577_v22  ;;  %v1604_v11 = vpop.permute.xlu1 %1603 }
0x1a73   :  { %v1606_v60 = vmul.f32 %v3981_v52, %v1604_v11 }
0x1a74   :  { %1581 = vrot.lane.b32.xlu0 %v1579_v38, %s4210_s14 }
0x1a75   :  { %1608 = vrot.lane.b32.xlu1 %v1606_v60, %s4210_s14 }
0x1ae6   :  { %v1582_v27 = vpop.permute.xlu0 %1581 }
0x1ae7   :  { %v4800_v49 = vadd.f32 %v1582_v27, %v1574_v40  ;;  %v1609_v28 = vpop.permute.xlu1 %1608 }
0x1ae8   :  { %v4802_v29 = vadd.f32 %v1609_v28, %v1601_v42 }
0x1ae9   :  { %3982 = vtanh.f32 %v4800_v49  ;;  %v1693_v22 = vrot.slane %v4800_v49, 6 }
0x1aea   :  { %3984 = vtanh.f32 %v4802_v29 }
0x1af3   :  { %v3983_v33 = vpop.eup %3982 }
0x1af4   :  { %v3985_v36 = vpop.eup %3984  ;;  %1587 = vrot.lane.b32.xlu0 %v3983_v33, %s4209_s13 }
0x1af5   :  { %1614 = vrot.lane.b32.xlu1 %v3985_v36, %s4209_s13 }
0x1b66   :  { %v1588_v30 = vpop.permute.xlu0 %1587 }
0x1b67   :  { %v1590_v53 = vmul.f32 %v3979_v20, %v1588_v30  ;;  %v1615_v35 = vpop.permute.xlu1 %1614  ;;  %v1720_v20 = vrot.slane %v4802_v29, 2 }
0x1b68   :  { %v4808_v3 = vmul.f32 %v3981_v52, %v1615_v35 }
0x1b69   :  { %1619 = vrot.lane.b32.xlu1 %v1590_v53, %s4210_s14 }
0x1b6a   :  { %v1623_v34 = vrot.slane %v4808_v3, 6 }
0x1b6c   :  { %1624 = vrot.lane.b32.xlu0 %v1623_v34, %s4209_s13 }
0x1bdb   :  { %v1620_v37 = vpop.permute.xlu1 %1619 }
0x1bdc   :  { %1628 = vst.msk [vmem:[#allocation2] sm:$0x30] %vm468_vm5, %v1620_v37 }
0x1bde   :  { %v1625_v14 = vpop.permute.xlu0 %1624 }
0x1bdf   :  { %v1627_v46 = vsel %vm175_vm1, %v1620_v37, %v1625_v14 }
0x1be0   :  { %v1633_v47 = vpack.c.bf16 %v1627_v46, %v1627_v46 }
0x1be2   :  { %v1635_v17 = vrot.slane %v1633_v47, 2 }
0x1be4   :  { %3599 = vmatmul.mubr.msk.bf16.vlgmr.msra.gmra.mrb[24].mxu0 %vm225_vm3, %v1635_v17 }
0x1be5   :  { %1880 = vmatpush1.bf16.msra.mxu0 %v4665_v21  ;;  %1911 = vmatprep.mubr.bf16.mxu0 %v4208_v1 }
0x1be6   :  { %1881 = vmatprep.subr.bf16.mxu0 %v4676_v24 }
0x1be9   :  { %1882 = vmatpush1.bf16.msra.mxu0 %v4682_v25 }
0x1bea   :  { %1883 = vmatprep.subr.bf16.mxu0 %v4688_v26 }
0x1bed   :  { %1884 = vmatpush1.bf16.msra.mxu0 %v4695_v41 }
0x1bee   :  { %1885 = vmatprep.subr.bf16.mxu0 %v4702_v43 }
0x1bf1   :  { %1886 = vmatpush1.bf16.msra.mxu0 %v4712_v50 }
0x1bf2   :  { %2127 = vmatprep.subr.bf16.mxu0 %v4658_v32 }
0x1cb7   :  { %v1673_v51 = vpop.f32.mrb[24].mxu0 }
0x1cb8   :  { %v1681_v54 = vrot.slane %v1673_v51, 2  ;;  %v1675_v55 = vpop.f32.mrb[25].mxu0 }
0x1cb9   :  { %v1684_v57 = vadd.f32 %v1675_v55, %v4584_v15  ;;  %v1677_v59 = vpop.f32.mrb[26].mxu0 }
0x1cba   :  { %v1683_v39 = vadd.f32 %v1681_v54, %v4577_v9  ;;  %v1678_v61 = vpop.f32.mrb[27].mxu0 }
0x1cbb   :  { %3986 = vtanh.f32 %v1684_v57  ;;  %v3601_v63 = vmul.f32 -1.442695, %v1684_v57 }
0x1cbc   :  { %3988 = vtanh.f32 %v1683_v39  ;;  %v3600_v0 = vmul.f32 -1.442695, %v1683_v39 }
0x1cbd   :  { %3990 = vpow2.f32 %v3601_v63 }
0x1cbe   :  { %3992 = vpow2.f32 %v3600_v0 }
0x1cc5   :  { %v3987_v18 = vpop.eup %3986 }
0x1cc6   :  { %v3989_v62 = vpop.eup %3988  ;;  %1724 = vrot.lane.b32.xlu1 %v3987_v18, %s4209_s13 }
0x1cc7   :  { %1697 = vrot.lane.b32.xlu0 %v3989_v62, %s4209_s13  ;;  %v3991_v32 = vpop.eup %3990 }
0x1cc8   :  { %v3993_v2 = vpop.eup %3992  ;;  %v1715_v4 = vadd.f32 1.0, %v3991_v32 }
0x1cc9   :  { %v1688_v15 = vadd.f32 1.0, %v3993_v2 }
0x1cca   :  { %3994 = vrcp.f32 %v1715_v4 }
0x1ccb   :  { %3996 = vrcp.f32 %v1688_v15 }
0x1cd4   :  { %v3995_v9 = vpop.eup %3994 }
0x1cd5   :  { %v3997_v5 = vpop.eup %3996  ;;  %v1722_v52 = vmul.f32 %v3995_v9, %v1720_v20 }
0x1cd6   :  { %v1695_v11 = vmul.f32 %v3997_v5, %v1693_v22 }
0x1d38   :  { %v1725_v31 = vpop.permute.xlu1 %1724 }
0x1d39   :  { %v1727_v7 = vmul.f32 %v3995_v9, %v1725_v31  ;;  %v1698_v10 = vpop.permute.xlu0 %1697 }
0x1d3a   :  { %v1700_v13 = vmul.f32 %v3997_v5, %v1698_v10 }
0x1d3b   :  { %1729 = vrot.lane.b32.xlu1 %v1727_v7, %s4210_s14 }
0x1d3c   :  { %1702 = vrot.lane.b32.xlu0 %v1700_v13, %s4210_s14 }
0x1dad   :  { %v1730_v38 = vpop.permute.xlu1 %1729 }
0x1dae   :  { %v4833_v60 = vadd.f32 %v1730_v38, %v1722_v52  ;;  %v1703_v48 = vpop.permute.xlu0 %1702 }
0x1daf   :  { %v4835_v23 = vadd.f32 %v1703_v48, %v1695_v11 }
0x1db0   :  { %3998 = vtanh.f32 %v4833_v60  ;;  %v1841_v7 = vrot.slane %v4833_v60, 2 }
0x1db1   :  { %4000 = vtanh.f32 %v4835_v23  ;;  %v1814_v31 = vrot.slane %v4835_v23, 6 }
0x1dba   :  { %v3999_v40 = vpop.eup %3998 }
0x1dbb   :  { %v4001_v27 = vpop.eup %4000  ;;  %1735 = vrot.lane.b32.xlu1 %v3999_v40, %s4209_s13 }
0x1dbc   :  { %1708 = vrot.lane.b32.xlu0 %v4001_v27, %s4209_s13 }
0x1e2d   :  { %v1736_v42 = vpop.permute.xlu1 %1735 }
0x1e2e   :  { %v4841_v49 = vmul.f32 %v3995_v9, %v1736_v42  ;;  %v1709_v28 = vpop.permute.xlu0 %1708 }
0x1e2f   :  { %v1711_v29 = vmul.f32 %v3997_v5, %v1709_v28 }
0x1e30   :  { %v1744_v33 = vrot.slane %v4841_v49, 2 }
0x1e31   :  { %1740 = vrot.lane.b32.xlu1 %v1711_v29, %s4210_s14 }
0x1e32   :  { %1745 = vrot.lane.b32.xlu0 %v1744_v33, %s4209_s13 }
0x1ea3   :  { %v1741_v36 = vpop.permute.xlu1 %1740 }
0x1ea4   :  { %1749 = vst.msk [vmem:[#allocation2] sm:$0xc0] %vm591_vm6, %v1741_v36  ;;  %v1746_v30 = vpop.permute.xlu0 %1745 }
0x1ea5   :  { %v1748_v53 = vsel %vm175_vm1, %v1741_v36, %v1746_v30 }
0x1ea6   :  { %v1754_v35 = vpack.c.bf16 %v1748_v53, %v1748_v53 }
0x1ea8   :  { %v1756_v34 = vrot.slane %v1754_v35, 3 }
0x1eaa   :  { %3602 = vmatmul.mubr.msk.bf16.vlgmr.msra.gmra.mrb[24].mxu1 %vm225_vm3, %v1756_v34 }
0x1eab   :  { %2004 = vmatpush1.bf16.msra.mxu1 %v4665_v21  ;;  %2035 = vmatprep.mubr.bf16.mxu1 %v4208_v1 }
0x1eac   :  { %2005 = vmatprep.subr.bf16.mxu1 %v4676_v24 }
0x1eaf   :  { %2006 = vmatpush1.bf16.msra.mxu1 %v4682_v25 }
0x1eb0   :  { %2007 = vmatprep.subr.bf16.mxu1 %v4688_v26 }
0x1eb3   :  { %2008 = vmatpush1.bf16.msra.mxu1 %v4695_v41 }
0x1eb4   :  { %2009 = vmatprep.subr.bf16.mxu1 %v4702_v43 }
0x1eb7   :  { %2010 = vmatpush1.bf16.msra.mxu1 %v4712_v50 }
0x1eb8   :  { %3724 = vmatprep.subr.bf16.mxu1 %v4211_v19 }
0x1f7d   :  { %v1794_v37 = vpop.f32.mrb[24].mxu1 }
0x1f7e   :  { %v1801_v14 = vadd.f32 %v1794_v37, %v4582_v16  ;;  %v1796_v46 = vpop.f32.mrb[25].mxu1 }
0x1f7f   :  { %v1803_v47 = vrot.slane %v1796_v46, 2  ;;  %v1798_v17 = vpop.f32.mrb[26].mxu1 }
0x1f80   :  { %4002 = vtanh.f32 %v1801_v14  ;;  %v1799_v51 = vpop.f32.mrb[27].mxu1  ;;  %v3603_v59 = vmul.f32 -1.442695, %v1801_v14 }
0x1f81   :  { %v1805_v54 = vadd.f32 %v1803_v47, %v4579_v12 }
0x1f83   :  { %4004 = vtanh.f32 %v1805_v54  ;;  %v3604_v39 = vmul.f32 -1.442695, %v1805_v54 }
0x1f84   :  { %4006 = vpow2.f32 %v3603_v59 }
0x1f85   :  { %4008 = vpow2.f32 %v3604_v39 }
0x1f8a   :  { %v4003_v55 = vpop.eup %4002 }
0x1f8b   :  { %1818 = vrot.lane.b32.xlu0 %v4003_v55, %s4209_s13 }
0x1f8d   :  { %v4005_v57 = vpop.eup %4004 }
0x1f8e   :  { %1845 = vrot.lane.b32.xlu1 %v4005_v57, %s4209_s13  ;;  %v4007_v61 = vpop.eup %4006 }
0x1f8f   :  { %v4009_v18 = vpop.eup %4008  ;;  %v1809_v62 = vadd.f32 1.0, %v4007_v61 }
0x1f90   :  { %v1836_v63 = vadd.f32 1.0, %v4009_v18 }
0x1f91   :  { %4010 = vrcp.f32 %v1809_v62 }
0x1f92   :  { %4012 = vrcp.f32 %v1836_v63 }
0x1f9b   :  { %v4011_v0 = vpop.eup %4010 }
0x1f9c   :  { %v4013_v4 = vpop.eup %4012  ;;  %v1816_v5 = vmul.f32 %v4011_v0, %v1814_v31 }
0x1f9d   :  { %v1843_v20 = vmul.f32 %v4013_v4, %v1841_v7 }
0x1ffd   :  { %v1819_v32 = vpop.permute.xlu0 %1818 }
0x1ffe   :  { %v1821_v2 = vmul.f32 %v4011_v0, %v1819_v32 }
0x2000   :  { %1823 = vrot.lane.b32.xlu0 %v1821_v2, %s4210_s14  ;;  %v1846_v15 = vpop.permute.xlu1 %1845 }
0x2001   :  { %v1848_v9 = vmul.f32 %v4013_v4, %v1846_v15 }
0x2003   :  { %1850 = vrot.lane.b32.xlu1 %v1848_v9, %s4210_s14 }
0x2072   :  { %v1824_v10 = vpop.permute.xlu0 %1823 }
0x2073   :  { %v4866_v13 = vadd.f32 %v1824_v10, %v1816_v5 }
0x2075   :  { %4014 = vtanh.f32 %v4866_v13  ;;  %v1851_v22 = vpop.permute.xlu1 %1850  ;;  %v1936_v39 = vrot.slane %v4866_v13, 6 }
0x2076   :  { %v4869_v52 = vadd.f32 %v1851_v22, %v1843_v20 }
0x2078   :  { %4016 = vtanh.f32 %v4869_v52  ;;  %v1963_v61 = vrot.slane %v4869_v52, 2 }
0x207f   :  { %v4015_v38 = vpop.eup %4014 }
0x2080   :  { %1829 = vrot.lane.b32.xlu0 %v4015_v38, %s4209_s13 }
0x2082   :  { %v4017_v11 = vpop.eup %4016 }
0x2083   :  { %1856 = vrot.lane.b32.xlu1 %v4017_v11, %s4209_s13 }
0x20f2   :  { %v1830_v48 = vpop.permute.xlu0 %1829 }
0x20f3   :  { %v1832_v23 = vmul.f32 %v4011_v0, %v1830_v48 }
0x20f5   :  { %1861 = vrot.lane.b32.xlu1 %v1832_v23, %s4210_s14  ;;  %v1857_v60 = vpop.permute.xlu1 %1856 }
0x20f6   :  { %v4875_v40 = vmul.f32 %v4013_v4, %v1857_v60 }
0x20f8   :  { %v1865_v27 = vrot.slane %v4875_v40, 6 }
0x20fa   :  { %1866 = vrot.lane.b32.xlu0 %v1865_v27, %s4209_s13 }
0x2167   :  { %v4879_v42 = vpop.permute.xlu1 %1861 }
0x216c   :  { %v1867_v28 = vpop.permute.xlu0 %1866 }
0x216d   :  { %v1869_v29 = vsel %vm175_vm1, %v4879_v42, %v1867_v28 }
0x216e   :  { %v1875_v33 = vpack.c.bf16 %v1869_v29, %v1869_v29 }
0x2170   :  { %3605 = vmatmul.mubr.msk.bf16.vlgmr.msra.gmra.mrb[28].mxu0 %vm225_vm3, %v1875_v33 }
0x2171   :  { %2128 = vmatpush1.bf16.msra.mxu0 %v4665_v21  ;;  %2159 = vmatprep.mubr.bf16.mxu0 %v4208_v1 }
0x2172   :  { %2129 = vmatprep.subr.bf16.mxu0 %v4676_v24 }
0x2175   :  { %2130 = vmatpush1.bf16.msra.mxu0 %v4682_v25 }
0x2176   :  { %2131 = vmatprep.subr.bf16.mxu0 %v4688_v26 }
0x2179   :  { %2132 = vmatpush1.bf16.msra.mxu0 %v4695_v41 }
0x217a   :  { %2133 = vmatprep.subr.bf16.mxu0 %v4702_v43 }
0x217d   :  { %2134 = vmatpush1.bf16.msra.mxu0 %v4712_v50 }
0x2243   :  { %v1913_v36 = vpop.f32.mrb[28].mxu0 }
0x2244   :  { %v1921_v30 = vrot.slane %v1913_v36, 6  ;;  %v1915_v53 = vpop.f32.mrb[29].mxu0 }
0x2245   :  { %v1925_v35 = vrot.slane %v1915_v53, 4  ;;  %v1917_v34 = vpop.f32.mrb[30].mxu0 }
0x2246   :  { %v1923_v21 = vadd.f32 %v1921_v30, %v4582_v16  ;;  %v1918_v37 = vpop.f32.mrb[31].mxu0 }
0x2247   :  { %v1927_v24 = vadd.f32 %v1925_v35, %v4579_v12 }
0x2248   :  { %4018 = vtanh.f32 %v1923_v21  ;;  %v3606_v41 = vmul.f32 -1.442695, %v1923_v21 }
0x2249   :  { %4020 = vtanh.f32 %v1927_v24  ;;  %v3607_v43 = vmul.f32 -1.442695, %v1927_v24 }
0x224a   :  { %4022 = vpow2.f32 %v3606_v41 }
0x224b   :  { %4024 = vpow2.f32 %v3607_v43 }
0x2252   :  { %v4019_v25 = vpop.eup %4018 }
0x2253   :  { %v4021_v26 = vpop.eup %4020  ;;  %1940 = vrot.lane.b32.xlu0 %v4019_v25, %s4209_s13 }
0x2254   :  { %1967 = vrot.lane.b32.xlu1 %v4021_v26, %s4209_s13  ;;  %v4023_v50 = vpop.eup %4022 }
0x2255   :  { %v4025_v14 = vpop.eup %4024  ;;  %v1931_v46 = vadd.f32 1.0, %v4023_v50 }
0x2256   :  { %v1958_v47 = vadd.f32 1.0, %v4025_v14 }
0x2257   :  { %4026 = vrcp.f32 %v1931_v46 }
0x2258   :  { %4028 = vrcp.f32 %v1958_v47 }
0x2261   :  { %v4027_v17 = vpop.eup %4026 }
0x2262   :  { %v4029_v54 = vpop.eup %4028  ;;  %v1938_v18 = vmul.f32 %v4027_v17, %v1936_v39 }
0x2263   :  { %v1965_v63 = vmul.f32 %v4029_v54, %v1963_v61 }
0x22c5   :  { %v1941_v51 = vpop.permute.xlu0 %1940 }
0x22c6   :  { %v1943_v55 = vmul.f32 %v4027_v17, %v1941_v51  ;;  %v1968_v57 = vpop.permute.xlu1 %1967 }
0x22c7   :  { %v1970_v59 = vmul.f32 %v4029_v54, %v1968_v57 }
0x22c8   :  { %1945 = vrot.lane.b32.xlu0 %v1943_v55, %s4210_s14 }
0x22c9   :  { %1972 = vrot.lane.b32.xlu1 %v1970_v59, %s4210_s14 }
0x233a   :  { %v1946_v62 = vpop.permute.xlu0 %1945 }
0x233b   :  { %v1948_v0 = vadd.f32 %v1946_v62, %v1938_v18  ;;  %v1973_v32 = vpop.permute.xlu1 %1972  ;;  %v3789_v18 = vld [vmem:[%s5454_s1 + $0x24] ss:$8 sps:$4 sm:$0xff]  }
0x233c   :  { %v1975_v2 = vadd.f32 %v1973_v32, %v1965_v63  ;;  %2389 = vmatprep.subr.bf16.mxu0 %v3789_v18 }
0x233d   :  { %4030 = vtanh.f32 %v1948_v0  ;;  %v2060_v46 = vrot.slane %v1948_v0, 6 }
0x233e   :  { %4032 = vtanh.f32 %v1975_v2  ;;  %v2087_v47 = vrot.slane %v1975_v2, 2 }
0x2347   :  { %v4031_v4 = vpop.eup %4030 }
0x2348   :  { %v4033_v15 = vpop.eup %4032  ;;  %1951 = vrot.lane.b32.xlu0 %v4031_v4, %s4209_s13 }
0x2349   :  { %1978 = vrot.lane.b32.xlu1 %v4033_v15, %s4209_s13 }
0x23ba   :  { %v1952_v9 = vpop.permute.xlu0 %1951 }
0x23bb   :  { %v1954_v31 = vmul.f32 %v4027_v17, %v1952_v9  ;;  %v1979_v5 = vpop.permute.xlu1 %1978 }
0x23bc   :  { %v4902_v7 = vmul.f32 %v4029_v54, %v1979_v5  ;;  %v3787_v5 = vld [vmem:[%s5454_s1 + $0x20] ss:$8 sps:$4 sm:$0xff]  }
0x23bd   :  { %1983 = vrot.lane.b32.xlu1 %v1954_v31, %s4210_s14 }
0x23be   :  { %v1987_v10 = vrot.slane %v4902_v7, 2 }
0x23c0   :  { %1988 = vrot.lane.b32.xlu0 %v1987_v10, %s4209_s13 }
0x242f   :  { %v4907_v13 = vpop.permute.xlu1 %1983 }
0x2432   :  { %v1989_v20 = vpop.permute.xlu0 %1988 }
0x2433   :  { %v1991_v22 = vsel %vm175_vm1, %v4907_v13, %v1989_v20  ;;  %v4207_v20 = vld [vmem:[%s5455_s0] sm:$0xff]  }
0x2434   :  { %v1997_v52 = vpack.c.bf16 %v1991_v22, %v1991_v22 }
0x2436   :  { %v1999_v38 = vrot.slane %v1997_v52, 1 }
0x2438   :  { %3608 = vmatmul.mubr.msk.bf16.vlgmr.msra.gmra.mrb[28].mxu1 %vm225_vm3, %v1999_v38 }
0x2439   :  { %3732 = vmatprep.mubr.msk.bf16.mxu1 %vm4212_vm7, %v4211_v19 }
0x250b   :  { %v2037_v11 = vpop.f32.mrb[28].mxu1 }
0x250c   :  { %v2045_v48 = vrot.slane %v2037_v11, 4  ;;  %v2039_v23 = vpop.f32.mrb[29].mxu1 }
0x250d   :  { %v2049_v60 = vrot.slane %v2039_v23, 6  ;;  %v2041_v27 = vpop.f32.mrb[30].mxu1  ;;  %v3635_v23 = vld [vmem:[%s5456_s2 + $0x4] sm:$0x3] }
0x250e   :  { %v2047_v28 = vadd.f32 %v2045_v48, %v4582_v16  ;;  %v2042_v29 = vpop.f32.mrb[31].mxu1 }
0x250f   :  { %v2051_v33 = vadd.f32 %v2049_v60, %v4579_v12 }
0x2510   :  { %4034 = vtanh.f32 %v2047_v28  ;;  %v3609_v53 = vmul.f32 -1.442695, %v2047_v28  ;;  %v2372_v28 = vrot.slane %v3635_v23, %v4276_v8 }
0x2511   :  { %4036 = vtanh.f32 %v2051_v33  ;;  %v3610_v35 = vmul.f32 -1.442695, %v2051_v33  ;;  %v2376_v33 = vrot.slane %v3635_v23, %v4271_v6 }
0x2512   :  { %4038 = vpow2.f32 %v3609_v53 }
0x2513   :  { %4040 = vpow2.f32 %v3610_v35 }
0x251a   :  { %v4035_v36 = vpop.eup %4034 }
0x251b   :  { %v4037_v30 = vpop.eup %4036  ;;  %2064 = vrot.lane.b32.xlu0 %v4035_v36, %s4209_s13 }
0x251c   :  { %2091 = vrot.lane.b32.xlu1 %v4037_v30, %s4209_s13  ;;  %v4039_v34 = vpop.eup %4038 }
0x251d   :  { %v4041_v21 = vpop.eup %4040  ;;  %v2055_v37 = vadd.f32 1.0, %v4039_v34 }
0x251e   :  { %v2082_v24 = vadd.f32 1.0, %v4041_v21 }
0x251f   :  { %4042 = vrcp.f32 %v2055_v37 }
0x2520   :  { %4044 = vrcp.f32 %v2082_v24 }
0x2529   :  { %v4043_v25 = vpop.eup %4042 }
0x252a   :  { %v4045_v41 = vpop.eup %4044  ;;  %v2062_v17 = vmul.f32 %v4043_v25, %v2060_v46 }
0x252b   :  { %v2089_v54 = vmul.f32 %v4045_v41, %v2087_v47 }
0x258d   :  { %v2065_v26 = vpop.permute.xlu0 %2064 }
0x258e   :  { %v2067_v43 = vmul.f32 %v4043_v25, %v2065_v26  ;;  %v2092_v50 = vpop.permute.xlu1 %2091 }
0x258f   :  { %v2094_v14 = vmul.f32 %v4045_v41, %v2092_v50 }
0x2590   :  { %2069 = vrot.lane.b32.xlu0 %v2067_v43, %s4210_s14 }
0x2591   :  { %2096 = vrot.lane.b32.xlu1 %v2094_v14, %s4210_s14 }
0x2602   :  { %v2070_v51 = vpop.permute.xlu0 %2069 }
0x2603   :  { %v4920_v55 = vadd.f32 %v2070_v51, %v2062_v17  ;;  %v2097_v57 = vpop.permute.xlu1 %2096 }
0x2604   :  { %v4922_v59 = vadd.f32 %v2097_v57, %v2089_v54 }
0x2605   :  { %4046 = vtanh.f32 %v4920_v55 }
0x2606   :  { %4048 = vtanh.f32 %v4922_v59 }
0x260f   :  { %v4047_v39 = vpop.eup %4046 }
0x2610   :  { %v4049_v61 = vpop.eup %4048  ;;  %2075 = vrot.lane.b32.xlu0 %v4047_v39, %s4209_s13 }
0x2611   :  { %2102 = vrot.lane.b32.xlu1 %v4049_v61, %s4209_s13 }
0x2682   :  { %v2076_v62 = vpop.permute.xlu0 %2075 }
0x2683   :  { %v2078_v63 = vmul.f32 %v4043_v25, %v2076_v62  ;;  %v2103_v0 = vpop.permute.xlu1 %2102 }
0x2684   :  { %v4931_v32 = vmul.f32 %v4045_v41, %v2103_v0 }
0x2685   :  { %2107 = vrot.lane.b32.xlu1 %v2078_v63, %s4210_s14 }
0x2686   :  { %v2111_v2 = vrot.slane %v4931_v32, 6 }
0x2688   :  { %2112 = vrot.lane.b32.xlu0 %v2111_v2, %s4209_s13 }
0x26f7   :  { %v4936_v4 = vpop.permute.xlu1 %2107 }
0x26fa   :  { %v2113_v15 = vpop.permute.xlu0 %2112 }
0x26fb   :  { %v2115_v9 = vsel %vm175_vm1, %v4936_v4, %v2113_v15 }
0x26fc   :  { %v2121_v31 = vpack.c.bf16 %v2115_v9, %v2115_v9 }
0x26fe   :  { %v2123_v10 = vrot.slane %v2121_v31, 2 }
0x2700   :  { %3611 = vmatmul.mubr.msk.bf16.vlgmr.msra.gmra.mrb[32].mxu0 %vm225_vm3, %v2123_v10  ;;  %v2208_v10 = vrot.slane %v4922_v59, 2 }
0x2701   :  { %2390 = vmatpush1.bf16.msra.mxu0 %v3787_v5  ;;  %2421 = vmatprep.mubr.bf16.mxu0 %v4208_v1 }
0x2708   :  { %3638 = vmatmul.mubr.msk.bf16.vlgmr.msra.gmra.mrb[36].mxu0 %vm61_vm0, %v4207_v20  ;;  %v2181_v20 = vrot.slane %v4920_v55, 6 }
0x2709   :  { %2706 = vmatprep.mubr.bf16.mxu0 %v4208_v1 }
0x27d3   :  { %v2161_v22 = vpop.f32.mrb[32].mxu0 }
0x27d4   :  { %v2169_v52 = vrot.slane %v2161_v22, 2  ;;  %v2163_v38 = vpop.f32.mrb[33].mxu0 }
0x27d5   :  { %v2172_v11 = vadd.f32 %v2163_v38, %v4579_v12  ;;  %v2165_v48 = vpop.f32.mrb[34].mxu0 }
0x27d6   :  { %v2171_v60 = vadd.f32 %v2169_v52, %v4582_v16  ;;  %v2166_v27 = vpop.f32.mrb[35].mxu0 }
0x27d7   :  { %4050 = vtanh.f32 %v2172_v11  ;;  %v3613_v24 = vmul.f32 -1.442695, %v2172_v11 }
0x27d8   :  { %4052 = vtanh.f32 %v2171_v60  ;;  %v3612_v25 = vmul.f32 -1.442695, %v2171_v60 }
0x27db   :  { %v2423_v29 = vpop.f32.mrb[36].mxu0 }
0x27dc   :  { %v4957_v36 = vadd.f32 %v2423_v29, %v2372_v28  ;;  %v2425_v30 = vpop.f32.mrb[37].mxu0 }
0x27dd   :  { %v4959_v53 = vadd.f32 %v2425_v30, %v2376_v33  ;;  %v2427_v12 = vpop.f32.mrb[38].mxu0 }
0x27de   :  { %4054 = vtanh.f32 %v4957_v36  ;;  %v4962_v35 = vadd.f32 %v2427_v12, %v2372_v28  ;;  %v2429_v34 = vpop.f32.mrb[39].mxu0  ;;  %v3647_v26 = vmul.f32 -1.442695, %v4957_v36 }
0x27df   :  { %v4964_v16 = vadd.f32 %v2429_v34, %v2376_v33 }
0x27e1   :  { %v4051_v21 = vpop.eup %4050  ;;  %4056 = vtanh.f32 %v4964_v16  ;;  %v3648_v41 = vmul.f32 -1.442695, %v4964_v16 }
0x27e2   :  { %v4053_v8 = vpop.eup %4052  ;;  %2212 = vrot.lane.b32.xlu0 %v4051_v21, %s4209_s13  ;;  %4058 = vpow2.f32 %v3613_v24  ;;  %v3790_v21 = vld [vmem:[%s5458_s4 + $0x20] sm:$0xff]   ;;  %v5059_v24 = vld [vmem:[%s5457_s3 + $0x90] ss:$8 sps:$4 sm:$0xff]  }
0x27e3   :  { %2185 = vrot.lane.b32.xlu1 %v4053_v8, %s4209_s13  ;;  %4060 = vpow2.f32 %v3612_v25  ;;  %3725 = vmatpush3.bf16.msra.mxu1 %v3790_v21  ;;  %v3791_v8 = vld [vmem:[%s5458_s4 + $0x28] sm:$0xff]  }
0x27e4   :  { %4062 = vpow2.f32 %v3647_v26  ;;  %3726 = vmatprep.subr.bf16.mxu1 %v4211_v19  ;;  %v5065_v25 = vld [vmem:[%s5457_s3 + $0xa4] ss:$8 sps:$4 sm:$0xff]  }
0x27e5   :  { %4064 = vpow2.f32 %v3648_v41 }
0x27e7   :  { %3727 = vmatpush3.bf16.msra.mxu1 %v3791_v8 }
0x27e8   :  { %v4055_v6 = vpop.eup %4054  ;;  %3728 = vmatprep.subr.bf16.mxu1 %v4211_v19 }
0x27e9   :  { %2452 = vrot.lane.b32.xlu0 %v4055_v6, %s4209_s13 }
0x27eb   :  { %v4057_v37 = vpop.eup %4056 }
0x27ec   :  { %2476 = vrot.lane.b32.xlu1 %v4057_v37, %s4209_s13  ;;  %v4059_v43 = vpop.eup %4058  ;;  %v5053_v37 = vld [vmem:[%s5457_s3 + $0x94] ss:$8 sps:$4 sm:$0xff]  }
0x27ed   :  { %v4061_v50 = vpop.eup %4060  ;;  %v2203_v14 = vadd.f32 1.0, %v4059_v43  ;;  %v5072_v43 = vld [vmem:[%s5457_s3 + $0xa0] ss:$8 sps:$4 sm:$0xff]  }
0x27ee   :  { %v2176_v46 = vadd.f32 1.0, %v4061_v50  ;;  %v4063_v47 = vpop.eup %4062 }
0x27ef   :  { %4066 = vrcp.f32 %v2203_v14  ;;  %v4065_v17 = vpop.eup %4064  ;;  %v2446_v51 = vadd.f32 1.0, %v4063_v47  ;;  %v5079_v14 = vld [vmem:[%s5457_s3 + $0xb4] ss:$8 sps:$4 sm:$0xff]  }
0x27f0   :  { %4068 = vrcp.f32 %v2176_v46  ;;  %v2470_v54 = vadd.f32 1.0, %v4065_v17  ;;  %v5089_v17 = vld [vmem:[%s5457_s3 + $0xb0] ss:$8 sps:$4 sm:$0xff]  }
0x27f1   :  { %4070 = vrcp.f32 %v2446_v51 }
0x27f2   :  { %4072 = vrcp.f32 %v2470_v54 }
0x27f9   :  { %v4973_v57 = vpop.eup %4066 }
0x27fa   :  { %v4975_v61 = vpop.eup %4068  ;;  %v2210_v22 = vmul.f32 %v4973_v57, %v2208_v10 }
0x27fb   :  { %v4981_v0 = vpop.eup %4070  ;;  %v2183_v38 = vmul.f32 %v4975_v61, %v2181_v20 }
0x27fc   :  { %v4984_v9 = vpop.eup %4072  ;;  %v2450_v60 = vmul.f32 0.0, %v4981_v0 }
0x27fd   :  { %v2474_v29 = vmul.f32 0.0, %v4984_v9 }
0x2854   :  { %v2213_v39 = vpop.permute.xlu0 %2212 }
0x2855   :  { %v2215_v18 = vmul.f32 %v4973_v57, %v2213_v39  ;;  %v2186_v62 = vpop.permute.xlu1 %2185 }
0x2856   :  { %v2188_v63 = vmul.f32 %v4975_v61, %v2186_v62 }
0x2857   :  { %2217 = vrot.lane.b32.xlu0 %v2215_v18, %s4210_s14 }
0x2858   :  { %2190 = vrot.lane.b32.xlu1 %v2188_v63, %s4210_s14 }
0x285b   :  { %v2453_v2 = vpop.permute.xlu0 %2452 }
0x285c   :  { %v2455_v15 = vmul.f32 %v4981_v0, %v2453_v2 }
0x285e   :  { %v2477_v31 = vpop.permute.xlu1 %2476  ;;  %2457 = vrot.lane.b32.xlu0 %v2455_v15, %s4210_s14 }
0x285f   :  { %v2479_v5 = vmul.f32 %v4984_v9, %v2477_v31 }
0x2861   :  { %2481 = vrot.lane.b32.xlu1 %v2479_v5, %s4210_s14 }
0x28c9   :  { %v2218_v52 = vpop.permute.xlu0 %2217 }
0x28ca   :  { %v2220_v11 = vadd.f32 %v2218_v52, %v2210_v22  ;;  %v2191_v48 = vpop.permute.xlu1 %2190 }
0x28cb   :  { %v2193_v23 = vadd.f32 %v2191_v48, %v2183_v38 }
0x28cc   :  { %4074 = vtanh.f32 %v2220_v11 }
0x28cd   :  { %4076 = vtanh.f32 %v2193_v23 }
0x28d0   :  { %v2458_v27 = vpop.permute.xlu0 %2457 }
0x28d1   :  { %v4994_v28 = vadd.f32 %v2458_v27, %v2450_v60 }
0x28d3   :  { %4078 = vtanh.f32 %v4994_v28  ;;  %v2482_v55 = vpop.permute.xlu1 %2481 }
0x28d4   :  { %v4998_v59 = vadd.f32 %v2482_v55, %v2474_v29 }
0x28d6   :  { %v4075_v33 = vpop.eup %4074  ;;  %4080 = vtanh.f32 %v4998_v59 }
0x28d7   :  { %v4077_v30 = vpop.eup %4076  ;;  %2223 = vrot.lane.b32.xlu0 %v4075_v33, %s4209_s13 }
0x28d8   :  { %2196 = vrot.lane.b32.xlu1 %v4077_v30, %s4209_s13 }
0x28dd   :  { %v4079_v12 = vpop.eup %4078 }
0x28de   :  { %2463 = vrot.lane.b32.xlu0 %v4079_v12, %s4209_s13 }
0x28e0   :  { %v4081_v34 = vpop.eup %4080 }
0x28e1   :  { %2487 = vrot.lane.b32.xlu1 %v4081_v34, %s4209_s13 }
0x28e2   :  { %1505 = vrot.lane.b32.xlu0 %v4775_v44, %s4209_s13  ;;  %v3793_v44 = vld [vmem:[%s5458_s4 + $0x38] sm:$0xff]  }
0x28e5   :  { %1343 = vrot.lane.b32.xlu1 %v4706_v45, %s4209_s13  ;;  %v3792_v45 = vld [vmem:[%s5458_s4 + $0x30] sm:$0xff]  }
0x28e6   :  { %1750 = vrot.lane.b32.xlu0 %v4841_v49, %s4209_s13  ;;  %3729 = vmatpush3.bf16.msra.mxu1 %v3792_v45  ;;  %v5042_v49 = vld [vmem:[%s5457_s3 + $0x80] ss:$8 sps:$4 sm:$0xff]  }
0x28e7   :  { %3730 = vmatprep.subr.bf16.mxu1 %v4211_v19 }
0x28e9   :  { %1629 = vrot.lane.b32.xlu1 %v4808_v3, %s4209_s13  ;;  %v5037_v3 = vld [vmem:[%s5457_s3 + $0x84] ss:$8 sps:$4 sm:$0xff]  }
0x28ea   :  { %1993 = vrot.lane.b32.xlu0 %v4902_v7, %s4209_s13  ;;  %3731 = vmatpush3.bf16.msra.mxu1 %v3793_v44 }
0x28eb   :  { %2550 = vmatprep.subr.bf16.mxu1 %v5037_v3  ;;  %2674 = vmatprep.subr.bf16.mxu0 %v5037_v3 }
0x28ec   :  { %2675 = vmatpush1.bf16.msra.mxu0 %v5042_v49 }
0x28ed   :  { %1871 = vrot.lane.b32.xlu1 %v4875_v40, %s4209_s13  ;;  %2676 = vmatprep.subr.bf16.mxu0 %v5053_v37 }
0x28f0   :  { %2677 = vmatpush1.bf16.msra.mxu0 %v5059_v24 }
0x28f1   :  { %2117 = vrot.lane.b32.xlu1 %v4931_v32, %s4209_s13  ;;  %2678 = vmatprep.subr.bf16.mxu0 %v5065_v25 }
0x28f4   :  { %2679 = vmatpush1.bf16.msra.mxu0 %v5072_v43 }
0x28f5   :  { %2680 = vmatprep.subr.bf16.mxu0 %v5079_v14 }
0x28f8   :  { %2681 = vmatpush1.bf16.msra.mxu0 %v5089_v17 }
0x28f9   :  { %2919 = vmatprep.subr.bf16.mxu0 %v5037_v3 }
0x2949   :  { %v2224_v40 = vpop.permute.xlu0 %2223 }
0x294a   :  { %v2226_v7 = vmul.f32 %v4973_v57, %v2224_v40  ;;  %v2197_v32 = vpop.permute.xlu1 %2196 }
0x294b   :  { %v2199_v6 = vmul.f32 %v4975_v61, %v2197_v32 }
0x294c   :  { %2233 = vrot.lane.b32.xlu1 %v2226_v7, %s4209_s13 }
0x294d   :  { %2228 = vrot.lane.b32.xlu0 %v2199_v6, %s4210_s14 }
0x2950   :  { %v2464_v26 = vpop.permute.xlu0 %2463 }
0x2951   :  { %v2466_v41 = vmul.f32 %v4981_v0, %v2464_v26 }
0x2953   :  { %v2488_v50 = vpop.permute.xlu1 %2487  ;;  %2492 = vrot.lane.b32.xlu0 %v2466_v41, %s4210_s14  ;;  %v2607_v41 = vrot.slane %v4994_v28, 6 }
0x2954   :  { %v5083_v46 = vmul.f32 %v4984_v9, %v2488_v50  ;;  %v1506_v47 = vpop.permute.xlu0 %1505  ;;  %v2634_v50 = vrot.slane %v4998_v59, 2 }
0x2955   :  { %1508 = vst.msk [vmem:[#allocation2 + $0x8] sm:$0x30] %vm347_vm8, %v1506_v47 }
0x2956   :  { %v2496_v51 = vrot.slane %v5083_v46, 6  ;;  %2116 = vst.msk [vmem:[#allocation2 + $0x8] sm:$0x30] %vm468_vm5, %v4936_v4 }
0x2957   :  { %v1344_v54 = vpop.permute.xlu1 %1343 }
0x2958   :  { %1346 = vst.msk [vmem:[#allocation2 + $0x8] sm:$0xc0] %vm182_vm9, %v1344_v54  ;;  %2497 = vrot.lane.b32.xlu1 %v2496_v51, %s4209_s13  ;;  %v1751_v57 = vpop.permute.xlu0 %1750 }
0x2959   :  { %1753 = vst.msk [vmem:[#allocation2 + $0x8] sm:$0x3] %vm596_vm10, %v1751_v57 }
0x295a   :  { %1870 = vst.msk [vmem:[#allocation2 + $0x8] sm:$0x3] %vm177_vm2, %v4879_v42 }
0x295b   :  { %v1630_v39 = vpop.permute.xlu1 %1629 }
0x295c   :  { %1632 = vst.msk [vmem:[#allocation2 + $0x8] sm:$0xc] %vm473_vm11, %v1630_v39  ;;  %v1994_v61 = vpop.permute.xlu0 %1993 }
0x295d   :  { %1992 = vst.msk [vmem:[#allocation2 + $0x8] sm:$0xc] %vm342_vm4, %v4907_v13 }
0x295e   :  { %1996 = vst.msk [vmem:[#allocation2] sm:$0x30] %vm347_vm8, %v1994_v61 }
0x295f   :  { %v1872_v4 = vpop.permute.xlu1 %1871 }
0x2960   :  { %1874 = vst.msk [vmem:[#allocation2] sm:$0xc0] %vm182_vm9, %v1872_v4 }
0x2963   :  { %v2118_v18 = vpop.permute.xlu1 %2117 }
0x2964   :  { %2120 = vst.msk [vmem:[#allocation2] sm:$0xc] %vm473_vm11, %v2118_v18 }
0x29be   :  { %v2234_v62 = vpop.permute.xlu1 %2233 }
0x29bf   :  { %2236 = vst.msk [vmem:[#allocation2] sm:$0x3] %vm596_vm10, %v2234_v62  ;;  %v2229_v63 = vpop.permute.xlu0 %2228 }
0x29c0   :  { %2231 = vst.msk [vmem:[#allocation2 + $0x8] sm:$0xc0] %vm591_vm6, %v2229_v63 }
0x29c5   :  { %v2493_v42 = vpop.permute.xlu0 %2492 }
0x29c6   :  { %v2237_v0 = vld [vmem:[#allocation2] sm:$0xff] }
0x29c7   :  { %2501 = vst.msk [vmem:[#allocation2] sm:$0x3] %vm177_vm2, %v2493_v42  ;;  %v2238_v2 = vld [vmem:[#allocation2 + $0x8] sm:$0xff] }
0x29c8   :  { %v2239_v13 = vpack.c.bf16 %v2238_v2, %v2237_v0 }
0x29ca   :  { %3733 = vmatmul.mubr.msk.bf16.vlgmr.msra.gmra.mrb[32].mxu1 %vm225_vm3, %v2239_v13  ;;  %v2498_v15 = vpop.permute.xlu1 %2497 }
0x29cb   :  { %2551 = vmatpush1.bf16.msra.mxu1 %v5042_v49  ;;  %2582 = vmatprep.mubr.bf16.mxu1 %v4208_v1  ;;  %v2500_v9 = vsel %vm175_vm1, %v2493_v42, %v2498_v15 }
0x29cc   :  { %2552 = vmatprep.subr.bf16.mxu1 %v5053_v37  ;;  %v2506_v31 = vpack.c.bf16 %v2500_v9, %v2500_v9 }
0x29cf   :  { %2553 = vmatpush1.bf16.msra.mxu1 %v5059_v24 }
0x29d0   :  { %2554 = vmatprep.subr.bf16.mxu1 %v5065_v25 }
0x29d3   :  { %2555 = vmatpush1.bf16.msra.mxu1 %v5072_v43 }
0x29d4   :  { %2556 = vmatprep.subr.bf16.mxu1 %v5079_v14 }
0x29d7   :  { %2557 = vmatpush1.bf16.msra.mxu1 %v5089_v17 }
0x29d8   :  { %2798 = vmatprep.subr.bf16.mxu1 %v5037_v3 }
0x29da   :  { %3657 = vmatmul.mubr.msk.bf16.vlgmr.msra.gmra.mrb[36].mxu1 %vm225_vm3, %v2506_v31 }
0x29db   :  { %2799 = vmatpush1.bf16.msra.mxu1 %v5042_v49  ;;  %2830 = vmatprep.mubr.bf16.mxu1 %v4208_v1 }
0x29dc   :  { %2800 = vmatprep.subr.bf16.mxu1 %v5053_v37 }
0x29df   :  { %2801 = vmatpush1.bf16.msra.mxu1 %v5059_v24 }
0x29e0   :  { %2802 = vmatprep.subr.bf16.mxu1 %v5065_v25 }
0x29e3   :  { %2803 = vmatpush1.bf16.msra.mxu1 %v5072_v43 }
0x29e4   :  { %2804 = vmatprep.subr.bf16.mxu1 %v5079_v14 }
0x29e7   :  { %2805 = vmatpush1.bf16.msra.mxu1 %v5089_v17 }
0x29e8   :  { %3038 = vmatprep.subr.bf16.mxu1 %v5037_v3 }
0x2a9d   :  { %v5132_v5 = vpop.f32.mrb[32].mxu1 }
0x2a9e   :  { %v3734_v10 = vpop.f32.mrb[33].mxu1 }
0x2a9f   :  { %v5134_v20 = vpop.f32.mrb[34].mxu1 }
0x2aa0   :  { %v3735_v22 = vpop.f32.mrb[35].mxu1 }
0x2aad   :  { %v2584_v52 = vpop.f32.mrb[36].mxu1 }
0x2aae   :  { %v2592_v38 = vrot.slane %v2584_v52, 6  ;;  %v2586_v11 = vpop.f32.mrb[37].mxu1 }
0x2aaf   :  { %v2596_v48 = vrot.slane %v2586_v11, 4  ;;  %v2588_v23 = vpop.f32.mrb[38].mxu1 }
0x2ab0   :  { %v2594_v60 = vadd.f32 %v2592_v38, %v4957_v36  ;;  %v2589_v27 = vpop.f32.mrb[39].mxu1 }
0x2ab1   :  { %v2598_v29 = vadd.f32 %v2596_v48, %v4964_v16 }
0x2ab2   :  { %4082 = vtanh.f32 %v2594_v60  ;;  %v3658_v30 = vmul.f32 -1.442695, %v2594_v60 }
0x2ab3   :  { %4084 = vtanh.f32 %v2598_v29  ;;  %v3659_v12 = vmul.f32 -1.442695, %v2598_v29 }
0x2ab4   :  { %4086 = vpow2.f32 %v3658_v30 }
0x2ab5   :  { %4088 = vpow2.f32 %v3659_v12 }
0x2abc   :  { %v4083_v55 = vpop.eup %4082 }
0x2abd   :  { %v4085_v33 = vpop.eup %4084  ;;  %2611 = vrot.lane.b32.xlu1 %v4083_v55, %s4209_s13 }
0x2abe   :  { %2638 = vrot.lane.b32.xlu0 %v4085_v33, %s4209_s13  ;;  %v4087_v34 = vpop.eup %4086 }
0x2abf   :  { %v4089_v21 = vpop.eup %4088  ;;  %v2602_v8 = vadd.f32 1.0, %v4087_v34 }
0x2ac0   :  { %v2629_v45 = vadd.f32 1.0, %v4089_v21 }
0x2ac1   :  { %4090 = vrcp.f32 %v2602_v8 }
0x2ac2   :  { %4092 = vrcp.f32 %v2629_v45 }
0x2acb   :  { %v4091_v44 = vpop.eup %4090 }
0x2acc   :  { %v4093_v7 = vpop.eup %4092  ;;  %v2609_v47 = vmul.f32 %v4091_v44, %v2607_v41 }
0x2acd   :  { %v2636_v54 = vmul.f32 %v4093_v7, %v2634_v50 }
0x2b2f   :  { %v2612_v40 = vpop.permute.xlu1 %2611 }
0x2b30   :  { %v2614_v32 = vmul.f32 %v4091_v44, %v2612_v40  ;;  %v2639_v6 = vpop.permute.xlu0 %2638 }
0x2b31   :  { %v2641_v26 = vmul.f32 %v4093_v7, %v2639_v6 }
0x2b32   :  { %2616 = vrot.lane.b32.xlu1 %v2614_v32, %s4210_s14 }
0x2b33   :  { %2643 = vrot.lane.b32.xlu0 %v2641_v26, %s4210_s14 }
0x2ba4   :  { %v2617_v51 = vpop.permute.xlu1 %2616 }
0x2ba5   :  { %v5144_v57 = vadd.f32 %v2617_v51, %v2609_v47  ;;  %v2644_v39 = vpop.permute.xlu0 %2643 }
0x2ba6   :  { %v5146_v61 = vadd.f32 %v2644_v39, %v2636_v54 }
0x2ba7   :  { %4094 = vtanh.f32 %v5144_v57  ;;  %v2731_v32 = vrot.slane %v5144_v57, 6 }
0x2ba8   :  { %4096 = vtanh.f32 %v5146_v61  ;;  %v2758_v6 = vrot.slane %v5146_v61, 2 }
0x2bb1   :  { %v4095_v4 = vpop.eup %4094 }
0x2bb2   :  { %v4097_v18 = vpop.eup %4096  ;;  %2622 = vrot.lane.b32.xlu1 %v4095_v4, %s4209_s13 }
0x2bb3   :  { %2649 = vrot.lane.b32.xlu0 %v4097_v18, %s4209_s13 }
0x2c24   :  { %v2623_v28 = vpop.permute.xlu1 %2622 }
0x2c25   :  { %v2625_v59 = vmul.f32 %v4091_v44, %v2623_v28  ;;  %v2650_v62 = vpop.permute.xlu0 %2649 }
0x2c26   :  { %v5152_v63 = vmul.f32 %v4093_v7, %v2650_v62 }
0x2c27   :  { %2654 = vrot.lane.b32.xlu0 %v2625_v59, %s4210_s14 }
0x2c28   :  { %v2658_v42 = vrot.slane %v5152_v63, 2 }
0x2c2a   :  { %2659 = vrot.lane.b32.xlu1 %v2658_v42, %s4209_s13 }
0x2c99   :  { %v2655_v0 = vpop.permute.xlu0 %2654 }
0x2c9a   :  { %2663 = vst.msk [vmem:[#allocation2] sm:$0xc] %vm342_vm4, %v2655_v0 }
0x2c9c   :  { %v2660_v2 = vpop.permute.xlu1 %2659 }
0x2c9d   :  { %v2662_v13 = vsel %vm175_vm1, %v2655_v0, %v2660_v2 }
0x2c9e   :  { %v2668_v15 = vpack.c.bf16 %v2662_v13, %v2662_v13 }
0x2ca0   :  { %v2670_v9 = vrot.slane %v2668_v15, 1 }
0x2ca2   :  { %3660 = vmatmul.mubr.msk.bf16.vlgmr.msra.gmra.mrb[40].mxu0 %vm225_vm3, %v2670_v9 }
0x2ca3   :  { %2920 = vmatpush1.bf16.msra.mxu0 %v5042_v49  ;;  %2951 = vmatprep.mubr.bf16.mxu0 %v4208_v1 }
0x2ca4   :  { %2921 = vmatprep.subr.bf16.mxu0 %v5053_v37 }
0x2ca7   :  { %2922 = vmatpush1.bf16.msra.mxu0 %v5059_v24 }
0x2ca8   :  { %2923 = vmatprep.subr.bf16.mxu0 %v5065_v25 }
0x2cab   :  { %2924 = vmatpush1.bf16.msra.mxu0 %v5072_v43 }
0x2cac   :  { %2925 = vmatprep.subr.bf16.mxu0 %v5079_v14 }
0x2caf   :  { %2926 = vmatpush1.bf16.msra.mxu0 %v5089_v17 }
0x2cb0   :  { %3162 = vmatprep.subr.bf16.mxu0 %v5037_v3 }
0x2d75   :  { %v2708_v31 = vpop.f32.mrb[40].mxu0 }
0x2d76   :  { %v2716_v10 = vrot.slane %v2708_v31, 4  ;;  %v2710_v22 = vpop.f32.mrb[41].mxu0 }
0x2d77   :  { %v2720_v52 = vrot.slane %v2710_v22, 6  ;;  %v2712_v38 = vpop.f32.mrb[42].mxu0 }
0x2d78   :  { %v2718_v11 = vadd.f32 %v2716_v10, %v4957_v36  ;;  %v2713_v48 = vpop.f32.mrb[43].mxu0 }
0x2d79   :  { %v2722_v23 = vadd.f32 %v2720_v52, %v4964_v16 }
0x2d7a   :  { %4098 = vtanh.f32 %v2718_v11  ;;  %v3661_v29 = vmul.f32 -1.442695, %v2718_v11 }
0x2d7b   :  { %4100 = vtanh.f32 %v2722_v23  ;;  %v3662_v55 = vmul.f32 -1.442695, %v2722_v23 }
0x2d7c   :  { %4102 = vpow2.f32 %v3661_v29 }
0x2d7d   :  { %4104 = vpow2.f32 %v3662_v55 }
0x2d84   :  { %v4099_v60 = vpop.eup %4098 }
0x2d85   :  { %v4101_v27 = vpop.eup %4100  ;;  %2735 = vrot.lane.b32.xlu1 %v4099_v60, %s4209_s13 }
0x2d86   :  { %2762 = vrot.lane.b32.xlu0 %v4101_v27, %s4209_s13  ;;  %v4103_v33 = vpop.eup %4102 }
0x2d87   :  { %v4105_v30 = vpop.eup %4104  ;;  %v2726_v12 = vadd.f32 1.0, %v4103_v33 }
0x2d88   :  { %v2753_v34 = vadd.f32 1.0, %v4105_v30 }
0x2d89   :  { %4106 = vrcp.f32 %v2726_v12 }
0x2d8a   :  { %4108 = vrcp.f32 %v2753_v34 }
0x2d93   :  { %v4107_v21 = vpop.eup %4106 }
0x2d94   :  { %v4109_v45 = vpop.eup %4108  ;;  %v2733_v26 = vmul.f32 %v4107_v21, %v2731_v32 }
0x2d95   :  { %v2760_v50 = vmul.f32 %v4109_v45, %v2758_v6 }
0x2df7   :  { %v2736_v8 = vpop.permute.xlu1 %2735 }
0x2df8   :  { %v2738_v44 = vmul.f32 %v4107_v21, %v2736_v8  ;;  %v2763_v40 = vpop.permute.xlu0 %2762 }
0x2df9   :  { %v2765_v7 = vmul.f32 %v4109_v45, %v2763_v40 }
0x2dfa   :  { %2740 = vrot.lane.b32.xlu1 %v2738_v44, %s4210_s14 }
0x2dfb   :  { %2767 = vrot.lane.b32.xlu0 %v2765_v7, %s4210_s14 }
0x2e6c   :  { %v2741_v41 = vpop.permute.xlu1 %2740 }
0x2e6d   :  { %v5177_v47 = vadd.f32 %v2741_v41, %v2733_v26  ;;  %v2768_v51 = vpop.permute.xlu0 %2767 }
0x2e6e   :  { %v5179_v54 = vadd.f32 %v2768_v51, %v2760_v50 }
0x2e6f   :  { %4110 = vtanh.f32 %v5177_v47  ;;  %v2852_v8 = vrot.slane %v5177_v47, 6 }
0x2e70   :  { %4112 = vtanh.f32 %v5179_v54 }
0x2e79   :  { %v4111_v39 = vpop.eup %4110 }
0x2e7a   :  { %v4113_v4 = vpop.eup %4112  ;;  %2746 = vrot.lane.b32.xlu1 %v4111_v39, %s4209_s13 }
0x2e7b   :  { %2773 = vrot.lane.b32.xlu0 %v4113_v4, %s4209_s13 }
0x2eec   :  { %v2747_v57 = vpop.permute.xlu1 %2746 }
0x2eed   :  { %v2749_v61 = vmul.f32 %v4107_v21, %v2747_v57  ;;  %v2774_v18 = vpop.permute.xlu0 %2773  ;;  %v2879_v21 = vrot.slane %v5179_v54, 2 }
0x2eee   :  { %v5185_v28 = vmul.f32 %v4109_v45, %v2774_v18 }
0x2eef   :  { %2778 = vrot.lane.b32.xlu0 %v2749_v61, %s4210_s14 }
0x2ef0   :  { %v2782_v59 = vrot.slane %v5185_v28, 6 }
0x2ef2   :  { %2783 = vrot.lane.b32.xlu1 %v2782_v59, %s4209_s13 }
0x2f61   :  { %v2779_v62 = vpop.permute.xlu0 %2778 }
0x2f62   :  { %2787 = vst.msk [vmem:[#allocation2] sm:$0x30] %vm468_vm5, %v2779_v62 }
0x2f64   :  { %v2784_v42 = vpop.permute.xlu1 %2783 }
0x2f65   :  { %v2786_v0 = vsel %vm175_vm1, %v2779_v62, %v2784_v42 }
0x2f66   :  { %v2792_v2 = vpack.c.bf16 %v2786_v0, %v2786_v0 }
0x2f68   :  { %v2794_v13 = vrot.slane %v2792_v2, 2 }
0x2f6a   :  { %3663 = vmatmul.mubr.msk.bf16.vlgmr.msra.gmra.mrb[40].mxu1 %vm225_vm3, %v2794_v13 }
0x2f6b   :  { %3039 = vmatpush1.bf16.msra.mxu1 %v5042_v49  ;;  %3070 = vmatprep.mubr.bf16.mxu1 %v4208_v1 }
0x2f6c   :  { %3040 = vmatprep.subr.bf16.mxu1 %v5053_v37 }
0x2f6f   :  { %3041 = vmatpush1.bf16.msra.mxu1 %v5059_v24 }
0x2f70   :  { %3042 = vmatprep.subr.bf16.mxu1 %v5065_v25 }
0x2f73   :  { %3043 = vmatpush1.bf16.msra.mxu1 %v5072_v43 }
0x2f74   :  { %3044 = vmatprep.subr.bf16.mxu1 %v5079_v14 }
0x2f77   :  { %3045 = vmatpush1.bf16.msra.mxu1 %v5089_v17 }
0x2f78   :  { %3286 = vmatprep.subr.bf16.mxu1 %v5037_v3 }
0x303d   :  { %v2832_v15 = vpop.f32.mrb[40].mxu1 }
0x303e   :  { %v2840_v9 = vrot.slane %v2832_v15, 2  ;;  %v2834_v31 = vpop.f32.mrb[41].mxu1 }
0x303f   :  { %v2843_v10 = vadd.f32 %v2834_v31, %v4964_v16  ;;  %v2836_v22 = vpop.f32.mrb[42].mxu1 }
0x3040   :  { %v2842_v52 = vadd.f32 %v2840_v9, %v4957_v36  ;;  %v2837_v38 = vpop.f32.mrb[43].mxu1 }
0x3041   :  { %4114 = vtanh.f32 %v2843_v10  ;;  %v3665_v23 = vmul.f32 -1.442695, %v2843_v10 }
0x3042   :  { %4116 = vtanh.f32 %v2842_v52  ;;  %v3664_v60 = vmul.f32 -1.442695, %v2842_v52 }
0x3043   :  { %4118 = vpow2.f32 %v3665_v23 }
0x3044   :  { %4120 = vpow2.f32 %v3664_v60 }
0x304b   :  { %v4115_v11 = vpop.eup %4114 }
0x304c   :  { %v4117_v48 = vpop.eup %4116  ;;  %2883 = vrot.lane.b32.xlu0 %v4115_v11, %s4209_s13 }
0x304d   :  { %2856 = vrot.lane.b32.xlu1 %v4117_v48, %s4209_s13  ;;  %v4119_v3 = vpop.eup %4118 }
0x304e   :  { %v4121_v27 = vpop.eup %4120  ;;  %v2874_v29 = vadd.f32 1.0, %v4119_v3 }
0x304f   :  { %v2847_v16 = vadd.f32 1.0, %v4121_v27 }
0x3050   :  { %4122 = vrcp.f32 %v2874_v29 }
0x3051   :  { %4124 = vrcp.f32 %v2847_v16 }
0x305a   :  { %v4123_v36 = vpop.eup %4122 }
0x305b   :  { %v4125_v33 = vpop.eup %4124  ;;  %v2881_v45 = vmul.f32 %v4123_v36, %v2879_v21 }
0x305c   :  { %v2854_v40 = vmul.f32 %v4125_v33, %v2852_v8 }
0x30be   :  { %v2884_v55 = vpop.permute.xlu0 %2883 }
0x30bf   :  { %v2886_v30 = vmul.f32 %v4123_v36, %v2884_v55  ;;  %v2857_v12 = vpop.permute.xlu1 %2856 }
0x30c0   :  { %v2859_v34 = vmul.f32 %v4125_v33, %v2857_v12 }
0x30c1   :  { %2888 = vrot.lane.b32.xlu0 %v2886_v30, %s4210_s14 }
0x30c2   :  { %2861 = vrot.lane.b32.xlu1 %v2859_v34, %s4210_s14 }
0x3133   :  { %v2889_v44 = vpop.permute.xlu0 %2888 }
0x3134   :  { %v5210_v7 = vadd.f32 %v2889_v44, %v2881_v45  ;;  %v2862_v32 = vpop.permute.xlu1 %2861 }
0x3135   :  { %v5212_v6 = vadd.f32 %v2862_v32, %v2854_v40 }
0x3136   :  { %4126 = vtanh.f32 %v5210_v7  ;;  %v3000_v30 = vrot.slane %v5210_v7, 2 }
0x3137   :  { %4128 = vtanh.f32 %v5212_v6  ;;  %v2973_v55 = vrot.slane %v5212_v6, 6 }
0x3140   :  { %v4127_v26 = vpop.eup %4126 }
0x3141   :  { %v4129_v41 = vpop.eup %4128  ;;  %2894 = vrot.lane.b32.xlu0 %v4127_v26, %s4209_s13 }
0x3142   :  { %2867 = vrot.lane.b32.xlu1 %v4129_v41, %s4209_s13 }
0x31b3   :  { %v2895_v50 = vpop.permute.xlu0 %2894 }
0x31b4   :  { %v5218_v47 = vmul.f32 %v4123_v36, %v2895_v50  ;;  %v2868_v51 = vpop.permute.xlu1 %2867 }
0x31b5   :  { %v2870_v54 = vmul.f32 %v4125_v33, %v2868_v51 }
0x31b6   :  { %v2903_v39 = vrot.slane %v5218_v47, 2 }
0x31b7   :  { %2899 = vrot.lane.b32.xlu0 %v2870_v54, %s4210_s14 }
0x31b8   :  { %2904 = vrot.lane.b32.xlu1 %v2903_v39, %s4209_s13 }
0x3229   :  { %v2900_v4 = vpop.permute.xlu0 %2899 }
0x322a   :  { %2908 = vst.msk [vmem:[#allocation2] sm:$0xc0] %vm591_vm6, %v2900_v4  ;;  %v2905_v57 = vpop.permute.xlu1 %2904 }
0x322b   :  { %v2907_v61 = vsel %vm175_vm1, %v2900_v4, %v2905_v57 }
0x322c   :  { %v2913_v18 = vpack.c.bf16 %v2907_v61, %v2907_v61 }
0x322e   :  { %v2915_v59 = vrot.slane %v2913_v18, 3 }
0x3230   :  { %3666 = vmatmul.mubr.msk.bf16.vlgmr.msra.gmra.mrb[44].mxu0 %vm225_vm3, %v2915_v59 }
0x3231   :  { %3163 = vmatpush1.bf16.msra.mxu0 %v5042_v49  ;;  %3194 = vmatprep.mubr.bf16.mxu0 %v4208_v1 }
0x3232   :  { %3164 = vmatprep.subr.bf16.mxu0 %v5053_v37 }
0x3235   :  { %3165 = vmatpush1.bf16.msra.mxu0 %v5059_v24 }
0x3236   :  { %3166 = vmatprep.subr.bf16.mxu0 %v5065_v25 }
0x3239   :  { %3167 = vmatpush1.bf16.msra.mxu0 %v5072_v43 }
0x323a   :  { %3168 = vmatprep.subr.bf16.mxu0 %v5079_v14 }
0x323d   :  { %3169 = vmatpush1.bf16.msra.mxu0 %v5089_v17 }
0x323e   :  { %3736 = vmatprep.subr.bf16.mxu0 %v4211_v19 }
0x3303   :  { %v2953_v62 = vpop.f32.mrb[44].mxu0 }
0x3304   :  { %v2960_v42 = vadd.f32 %v2953_v62, %v4962_v35  ;;  %v2955_v0 = vpop.f32.mrb[45].mxu0 }
0x3305   :  { %v2962_v2 = vrot.slane %v2955_v0, 2  ;;  %v2957_v13 = vpop.f32.mrb[46].mxu0 }
0x3306   :  { %4130 = vtanh.f32 %v2960_v42  ;;  %v2958_v15 = vpop.f32.mrb[47].mxu0  ;;  %v3667_v22 = vmul.f32 -1.442695, %v2960_v42 }
0x3307   :  { %v2964_v9 = vadd.f32 %v2962_v2, %v4959_v53 }
0x3309   :  { %4132 = vtanh.f32 %v2964_v9  ;;  %v3668_v52 = vmul.f32 -1.442695, %v2964_v9 }
0x330a   :  { %4134 = vpow2.f32 %v3667_v22 }
0x330b   :  { %4136 = vpow2.f32 %v3668_v52 }
0x3310   :  { %v4131_v31 = vpop.eup %4130 }
0x3311   :  { %2977 = vrot.lane.b32.xlu1 %v4131_v31, %s4209_s13 }
0x3313   :  { %v4133_v10 = vpop.eup %4132 }
0x3314   :  { %3004 = vrot.lane.b32.xlu0 %v4133_v10, %s4209_s13  ;;  %v4135_v38 = vpop.eup %4134 }
0x3315   :  { %v4137_v11 = vpop.eup %4136  ;;  %v2968_v48 = vadd.f32 1.0, %v4135_v38 }
0x3316   :  { %v2995_v23 = vadd.f32 1.0, %v4137_v11 }
0x3317   :  { %4138 = vrcp.f32 %v2968_v48 }
0x3318   :  { %4140 = vrcp.f32 %v2995_v23 }
0x3321   :  { %v4139_v60 = vpop.eup %4138 }
0x3322   :  { %v4141_v29 = vpop.eup %4140  ;;  %v2975_v33 = vmul.f32 %v4139_v60, %v2973_v55 }
0x3323   :  { %v3002_v21 = vmul.f32 %v4141_v29, %v3000_v30 }
0x3383   :  { %v2978_v3 = vpop.permute.xlu1 %2977 }
0x3384   :  { %v2980_v27 = vmul.f32 %v4139_v60, %v2978_v3 }
0x3386   :  { %2982 = vrot.lane.b32.xlu1 %v2980_v27, %s4210_s14  ;;  %v3005_v16 = vpop.permute.xlu0 %3004 }
0x3387   :  { %v3007_v36 = vmul.f32 %v4141_v29, %v3005_v16 }
0x3389   :  { %3009 = vrot.lane.b32.xlu0 %v3007_v36, %s4210_s14 }
0x33f8   :  { %v2983_v12 = vpop.permute.xlu1 %2982 }
0x33f9   :  { %v5243_v34 = vadd.f32 %v2983_v12, %v2975_v33 }
0x33fb   :  { %4142 = vtanh.f32 %v5243_v34  ;;  %v3010_v8 = vpop.permute.xlu0 %3009  ;;  %v3095_v22 = vrot.slane %v5243_v34, 6 }
0x33fc   :  { %v5246_v45 = vadd.f32 %v3010_v8, %v3002_v21 }
0x33fe   :  { %4144 = vtanh.f32 %v5246_v45  ;;  %v3122_v52 = vrot.slane %v5246_v45, 2 }
0x3405   :  { %v4143_v44 = vpop.eup %4142 }
0x3406   :  { %2988 = vrot.lane.b32.xlu1 %v4143_v44, %s4209_s13 }
0x3408   :  { %v4145_v40 = vpop.eup %4144 }
0x3409   :  { %3015 = vrot.lane.b32.xlu0 %v4145_v40, %s4209_s13 }
0x3478   :  { %v2989_v32 = vpop.permute.xlu1 %2988 }
0x3479   :  { %v2991_v6 = vmul.f32 %v4139_v60, %v2989_v32 }
0x347b   :  { %3020 = vrot.lane.b32.xlu0 %v2991_v6, %s4210_s14  ;;  %v3016_v7 = vpop.permute.xlu0 %3015 }
0x347c   :  { %v5252_v26 = vmul.f32 %v4141_v29, %v3016_v7 }
0x347e   :  { %v3024_v41 = vrot.slane %v5252_v26, 6 }
0x3480   :  { %3025 = vrot.lane.b32.xlu1 %v3024_v41, %s4209_s13 }
0x34ed   :  { %v5256_v50 = vpop.permute.xlu0 %3020 }
0x34f2   :  { %v3026_v51 = vpop.permute.xlu1 %3025 }
0x34f3   :  { %v3028_v54 = vsel %vm175_vm1, %v5256_v50, %v3026_v51 }
0x34f4   :  { %v3034_v39 = vpack.c.bf16 %v3028_v54, %v3028_v54 }
0x34f6   :  { %3669 = vmatmul.mubr.msk.bf16.vlgmr.msra.gmra.mrb[44].mxu1 %vm225_vm3, %v3034_v39 }
0x34f7   :  { %3287 = vmatpush1.bf16.msra.mxu1 %v5042_v49  ;;  %3318 = vmatprep.mubr.bf16.mxu1 %v4208_v1 }
0x34f8   :  { %3288 = vmatprep.subr.bf16.mxu1 %v5053_v37 }
0x34fb   :  { %3289 = vmatpush1.bf16.msra.mxu1 %v5059_v24 }
0x34fc   :  { %3290 = vmatprep.subr.bf16.mxu1 %v5065_v25 }
0x34ff   :  { %3291 = vmatpush1.bf16.msra.mxu1 %v5072_v43 }
0x3500   :  { %3292 = vmatprep.subr.bf16.mxu1 %v5079_v14 }
0x3503   :  { %3293 = vmatpush1.bf16.msra.mxu1 %v5089_v17 }
0x35c9   :  { %v3072_v4 = vpop.f32.mrb[44].mxu1 }
0x35ca   :  { %v3080_v57 = vrot.slane %v3072_v4, 6  ;;  %v3074_v61 = vpop.f32.mrb[45].mxu1 }
0x35cb   :  { %v3084_v18 = vrot.slane %v3074_v61, 4  ;;  %v3076_v59 = vpop.f32.mrb[46].mxu1 }
0x35cc   :  { %v3082_v49 = vadd.f32 %v3080_v57, %v4962_v35  ;;  %v3077_v1 = vpop.f32.mrb[47].mxu1 }
0x35cd   :  { %v3086_v37 = vadd.f32 %v3084_v18, %v4959_v53 }
0x35ce   :  { %4146 = vtanh.f32 %v3082_v49  ;;  %v3670_v43 = vmul.f32 -1.442695, %v3082_v49 }
0x35cf   :  { %4148 = vtanh.f32 %v3086_v37  ;;  %v3671_v14 = vmul.f32 -1.442695, %v3086_v37 }
0x35d0   :  { %4150 = vpow2.f32 %v3670_v43 }
0x35d1   :  { %4152 = vpow2.f32 %v3671_v14 }
0x35d8   :  { %v4147_v24 = vpop.eup %4146 }
0x35d9   :  { %v4149_v25 = vpop.eup %4148  ;;  %3099 = vrot.lane.b32.xlu1 %v4147_v24, %s4209_s13 }
0x35da   :  { %3126 = vrot.lane.b32.xlu0 %v4149_v25, %s4209_s13  ;;  %v4151_v17 = vpop.eup %4150 }
0x35db   :  { %v4153_v62 = vpop.eup %4152  ;;  %v3090_v42 = vadd.f32 1.0, %v4151_v17 }
0x35dc   :  { %v3117_v0 = vadd.f32 1.0, %v4153_v62 }
0x35dd   :  { %4154 = vrcp.f32 %v3090_v42 }
0x35de   :  { %4156 = vrcp.f32 %v3117_v0 }
0x35e7   :  { %v4155_v2 = vpop.eup %4154 }
0x35e8   :  { %v4157_v15 = vpop.eup %4156  ;;  %v3097_v38 = vmul.f32 %v4155_v2, %v3095_v22 }
0x35e9   :  { %v3124_v48 = vmul.f32 %v4157_v15, %v3122_v52 }
0x364b   :  { %v3100_v13 = vpop.permute.xlu1 %3099 }
0x364c   :  { %v3102_v9 = vmul.f32 %v4155_v2, %v3100_v13  ;;  %v3127_v31 = vpop.permute.xlu0 %3126 }
0x364d   :  { %v3129_v10 = vmul.f32 %v4157_v15, %v3127_v31 }
0x364e   :  { %3104 = vrot.lane.b32.xlu1 %v3102_v9, %s4210_s14 }
0x364f   :  { %3131 = vrot.lane.b32.xlu0 %v3129_v10, %s4210_s14 }
0x36c0   :  { %v3105_v11 = vpop.permute.xlu1 %3104 }
0x36c1   :  { %v3107_v23 = vadd.f32 %v3105_v11, %v3097_v38  ;;  %v3132_v60 = vpop.permute.xlu0 %3131 }
0x36c2   :  { %v3134_v3 = vadd.f32 %v3132_v60, %v3124_v48 }
0x36c3   :  { %4158 = vtanh.f32 %v3107_v23  ;;  %v3219_v62 = vrot.slane %v3107_v23, 6 }
0x36c4   :  { %4160 = vtanh.f32 %v3134_v3  ;;  %v3246_v42 = vrot.slane %v3134_v3, 2 }
0x36cd   :  { %v4159_v27 = vpop.eup %4158 }
0x36ce   :  { %v4161_v29 = vpop.eup %4160  ;;  %3110 = vrot.lane.b32.xlu1 %v4159_v27, %s4209_s13 }
0x36cf   :  { %3137 = vrot.lane.b32.xlu0 %v4161_v29, %s4209_s13 }
0x3740   :  { %v3111_v16 = vpop.permute.xlu1 %3110 }
0x3741   :  { %v3113_v36 = vmul.f32 %v4155_v2, %v3111_v16  ;;  %v3138_v55 = vpop.permute.xlu0 %3137 }
0x3742   :  { %v5279_v33 = vmul.f32 %v4157_v15, %v3138_v55 }
0x3743   :  { %3142 = vrot.lane.b32.xlu0 %v3113_v36, %s4210_s14 }
0x3744   :  { %v3146_v30 = vrot.slane %v5279_v33, 2 }
0x3746   :  { %3147 = vrot.lane.b32.xlu1 %v3146_v30, %s4209_s13 }
0x37b5   :  { %v5284_v12 = vpop.permute.xlu0 %3142 }
0x37b8   :  { %v3148_v34 = vpop.permute.xlu1 %3147 }
0x37b9   :  { %v3150_v21 = vsel %vm175_vm1, %v5284_v12, %v3148_v34 }
0x37ba   :  { %v3156_v8 = vpack.c.bf16 %v3150_v21, %v3150_v21 }
0x37bc   :  { %v3158_v45 = vrot.slane %v3156_v8, 1 }
0x37be   :  { %3672 = vmatmul.mubr.msk.bf16.vlgmr.msra.gmra.mrb[48].mxu0 %vm225_vm3, %v3158_v45 }
0x37bf   :  { %3744 = vmatprep.mubr.msk.bf16.mxu0 %vm4212_vm7, %v4211_v19 }
0x3891   :  { %v3196_v44 = vpop.f32.mrb[48].mxu0 }
0x3892   :  { %v3204_v40 = vrot.slane %v3196_v44, 4  ;;  %v3198_v32 = vpop.f32.mrb[49].mxu0 }
0x3893   :  { %v3208_v6 = vrot.slane %v3198_v32, 6  ;;  %v3200_v7 = vpop.f32.mrb[50].mxu0 }
0x3894   :  { %v3206_v41 = vadd.f32 %v3204_v40, %v4962_v35  ;;  %v3201_v51 = vpop.f32.mrb[51].mxu0 }
0x3895   :  { %v3210_v54 = vadd.f32 %v3208_v6, %v4959_v53 }
0x3896   :  { %4162 = vtanh.f32 %v3206_v41  ;;  %v3673_v57 = vmul.f32 -1.442695, %v3206_v41 }
0x3897   :  { %4164 = vtanh.f32 %v3210_v54  ;;  %v3674_v61 = vmul.f32 -1.442695, %v3210_v54 }
0x3898   :  { %4166 = vpow2.f32 %v3673_v57 }
0x3899   :  { %4168 = vpow2.f32 %v3674_v61 }
0x38a0   :  { %v4163_v39 = vpop.eup %4162 }
0x38a1   :  { %v4165_v4 = vpop.eup %4164  ;;  %3223 = vrot.lane.b32.xlu1 %v4163_v39, %s4209_s13 }
0x38a2   :  { %3250 = vrot.lane.b32.xlu0 %v4165_v4, %s4209_s13  ;;  %v4167_v18 = vpop.eup %4166 }
0x38a3   :  { %v4169_v59 = vpop.eup %4168  ;;  %v3214_v49 = vadd.f32 1.0, %v4167_v18 }
0x38a4   :  { %v3241_v1 = vadd.f32 1.0, %v4169_v59 }
0x38a5   :  { %4170 = vrcp.f32 %v3214_v49 }
0x38a6   :  { %4172 = vrcp.f32 %v3241_v1 }
0x38af   :  { %v4171_v37 = vpop.eup %4170 }
0x38b0   :  { %v4173_v25 = vpop.eup %4172  ;;  %v3221_v0 = vmul.f32 %v4171_v37, %v3219_v62 }
0x38b1   :  { %v3248_v13 = vmul.f32 %v4173_v25, %v3246_v42 }
0x3913   :  { %v3224_v24 = vpop.permute.xlu1 %3223 }
0x3914   :  { %v3226_v43 = vmul.f32 %v4171_v37, %v3224_v24  ;;  %v3251_v14 = vpop.permute.xlu0 %3250 }
0x3915   :  { %v3253_v17 = vmul.f32 %v4173_v25, %v3251_v14 }
0x3916   :  { %3228 = vrot.lane.b32.xlu1 %v3226_v43, %s4210_s14 }
0x3917   :  { %3255 = vrot.lane.b32.xlu0 %v3253_v17, %s4210_s14 }
0x3988   :  { %v3229_v2 = vpop.permute.xlu1 %3228 }
0x3989   :  { %v3231_v15 = vadd.f32 %v3229_v2, %v3221_v0  ;;  %v3256_v9 = vpop.permute.xlu0 %3255 }
0x398a   :  { %v3258_v31 = vadd.f32 %v3256_v9, %v3248_v13 }
0x398b   :  { %4174 = vtanh.f32 %v3231_v15  ;;  %v3340_v59 = vrot.slane %v3231_v15, 6 }
0x398c   :  { %4176 = vtanh.f32 %v3258_v31  ;;  %v3367_v18 = vrot.slane %v3258_v31, 2 }
0x3995   :  { %v4175_v10 = vpop.eup %4174 }
0x3996   :  { %v4177_v22 = vpop.eup %4176  ;;  %3234 = vrot.lane.b32.xlu1 %v4175_v10, %s4209_s13  ;;  %v3563_v10 = vld [vmem:[%s5459_s5] ss:$0 sm:$0xff] }
0x3997   :  { %3261 = vrot.lane.b32.xlu0 %v4177_v22, %s4209_s13  ;;  %v3623_v22 = vld [vmem:[%s5459_s5 + $0x1] ss:$0 sm:$0xff] }
0x3a08   :  { %v3235_v52 = vpop.permute.xlu1 %3234 }
0x3a09   :  { %v3237_v38 = vmul.f32 %v4171_v37, %v3235_v52  ;;  %v3262_v11 = vpop.permute.xlu0 %3261 }
0x3a0a   :  { %v3264_v48 = vmul.f32 %v4173_v25, %v3262_v11 }
0x3a0b   :  { %3266 = vrot.lane.b32.xlu0 %v3237_v38, %s4210_s14  ;;  %v1161_v38 = vadd.f32 %v3563_v10, %v4755_v56 }
0x3a0c   :  { %v3270_v23 = vrot.slane %v3264_v48, 6 }
0x3a0e   :  { %3271 = vrot.lane.b32.xlu1 %v3270_v23, %s4209_s13  ;;  %v1167_v23 = vsel %vm61_vm0, %v1161_v38, 0.0 }
0x3a7d   :  { %v5301_v60 = vpop.permute.xlu0 %3266 }
0x3a80   :  { %v3272_v3 = vpop.permute.xlu1 %3271 }
0x3a81   :  { %v3274_v27 = vsel %vm175_vm1, %v5301_v60, %v3272_v3 }
0x3a82   :  { %v3280_v29 = vpack.c.bf16 %v3274_v27, %v3274_v27 }
0x3a84   :  { %v3282_v16 = vrot.slane %v3280_v29, 2 }
0x3a86   :  { %3675 = vmatmul.mubr.msk.bf16.vlgmr.msra.gmra.mrb[48].mxu1 %vm225_vm3, %v3282_v16 }
0x3b59   :  { %v3320_v36 = vpop.f32.mrb[48].mxu1 }
0x3b5a   :  { %v3328_v55 = vrot.slane %v3320_v36, 2  ;;  %v3322_v30 = vpop.f32.mrb[49].mxu1 }
0x3b5b   :  { %v3331_v34 = vadd.f32 %v3322_v30, %v4959_v53  ;;  %v3324_v21 = vpop.f32.mrb[50].mxu1 }
0x3b5c   :  { %v3330_v8 = vadd.f32 %v3328_v55, %v4962_v35  ;;  %v3325_v45 = vpop.f32.mrb[51].mxu1 }
0x3b5d   :  { %4178 = vtanh.f32 %v3331_v34  ;;  %v3677_v32 = vmul.f32 -1.442695, %v3331_v34  ;;  %v3687_v34 = vld [vmem:[%s5459_s5 + $0x2] ss:$0 sm:$0xff] }
0x3b5e   :  { %4180 = vtanh.f32 %v3330_v8  ;;  %v3676_v6 = vmul.f32 -1.442695, %v3330_v8 }
0x3b5f   :  { %4182 = vpow2.f32 %v3677_v32 }
0x3b60   :  { %4184 = vpow2.f32 %v3676_v6 }
0x3b67   :  { %v4179_v44 = vpop.eup %4178 }
0x3b68   :  { %v4181_v40 = vpop.eup %4180  ;;  %3371 = vrot.lane.b32.xlu1 %v4179_v44, %s4209_s13 }
0x3b69   :  { %3344 = vrot.lane.b32.xlu0 %v4181_v40, %s4209_s13  ;;  %v4183_v7 = vpop.eup %4182 }
0x3b6a   :  { %v4185_v41 = vpop.eup %4184  ;;  %v3362_v51 = vadd.f32 1.0, %v4183_v7 }
0x3b6b   :  { %v3335_v53 = vadd.f32 1.0, %v4185_v41 }
0x3b6c   :  { %4186 = vrcp.f32 %v3362_v51 }
0x3b6d   :  { %4188 = vrcp.f32 %v3335_v53 }
0x3b76   :  { %v4187_v35 = vpop.eup %4186 }
0x3b77   :  { %v4189_v39 = vpop.eup %4188  ;;  %v3369_v49 = vmul.f32 %v4187_v35, %v3367_v18 }
0x3b78   :  { %v3342_v37 = vmul.f32 %v4189_v39, %v3340_v59 }
0x3bda   :  { %v3372_v54 = vpop.permute.xlu1 %3371 }
0x3bdb   :  { %v3374_v4 = vmul.f32 %v4187_v35, %v3372_v54  ;;  %v3345_v57 = vpop.permute.xlu0 %3344 }
0x3bdc   :  { %v3347_v61 = vmul.f32 %v4189_v39, %v3345_v57 }
0x3bdd   :  { %3376 = vrot.lane.b32.xlu1 %v3374_v4, %s4210_s14 }
0x3bde   :  { %3349 = vrot.lane.b32.xlu0 %v3347_v61, %s4210_s14 }
0x3c4f   :  { %v3377_v1 = vpop.permute.xlu1 %3376 }
0x3c50   :  { %v3379_v24 = vadd.f32 %v3377_v1, %v3369_v49  ;;  %v3350_v25 = vpop.permute.xlu0 %3349 }
0x3c51   :  { %v3352_v43 = vadd.f32 %v3350_v25, %v3342_v37 }
0x3c52   :  { %4190 = vtanh.f32 %v3379_v24 }
0x3c53   :  { %4192 = vtanh.f32 %v3352_v43 }
0x3c5c   :  { %v4191_v14 = vpop.eup %4190 }
0x3c5d   :  { %v4193_v17 = vpop.eup %4192  ;;  %3382 = vrot.lane.b32.xlu1 %v4191_v14, %s4209_s13 }
0x3c5e   :  { %3355 = vrot.lane.b32.xlu0 %v4193_v17, %s4209_s13 }
0x3c61   :  { %2664 = vrot.lane.b32.xlu1 %v5152_v63, %s4209_s13  ;;  %v3806_v63 = vld [vmem:[%s5458_s4 + $0x40] sm:$0xff]  }
0x3c62   :  { %2502 = vrot.lane.b32.xlu0 %v5083_v46, %s4209_s13  ;;  %3737 = vmatpush3.bf16.msra.mxu0 %v3806_v63  ;;  %v3807_v46 = vld [vmem:[%s5458_s4 + $0x48] sm:$0xff]  }
0x3c63   :  { %3738 = vmatprep.subr.bf16.mxu0 %v4211_v19 }
0x3c65   :  { %2909 = vrot.lane.b32.xlu1 %v5218_v47, %s4209_s13  ;;  %v3809_v47 = vld [vmem:[%s5458_s4 + $0x58] sm:$0xff]  }
0x3c66   :  { %2788 = vrot.lane.b32.xlu0 %v5185_v28, %s4209_s13  ;;  %3739 = vmatpush3.bf16.msra.mxu0 %v3807_v46  ;;  %v3808_v28 = vld [vmem:[%s5458_s4 + $0x50] sm:$0xff]  }
0x3c67   :  { %3740 = vmatprep.subr.bf16.mxu0 %v4211_v19 }
0x3c69   :  { %3152 = vrot.lane.b32.xlu1 %v5279_v33, %s4209_s13 }
0x3c6a   :  { %3030 = vrot.lane.b32.xlu0 %v5252_v26, %s4209_s13  ;;  %3741 = vmatpush3.bf16.msra.mxu0 %v3808_v28 }
0x3c6b   :  { %3742 = vmatprep.subr.bf16.mxu0 %v4211_v19 }
0x3c6e   :  { %3276 = vrot.lane.b32.xlu0 %v3264_v48, %s4209_s13  ;;  %3743 = vmatpush3.bf16.msra.mxu0 %v3809_v47  ;;  %v2322_v48 = vadd.f32 %v3623_v22, %v5134_v20 }
0x3ccf   :  { %v3383_v26 = vpop.permute.xlu1 %3382 }
0x3cd0   :  { %v3385_v33 = vmul.f32 %v4187_v35, %v3383_v26  ;;  %v3356_v62 = vpop.permute.xlu0 %3355 }
0x3cd1   :  { %v3358_v42 = vmul.f32 %v4189_v39, %v3356_v62 }
0x3cd2   :  { %3392 = vrot.lane.b32.xlu0 %v3385_v33, %s4209_s13 }
0x3cd3   :  { %3387 = vrot.lane.b32.xlu1 %v3358_v42, %s4210_s14  ;;  %v2665_v0 = vpop.permute.xlu1 %2664 }
0x3cd4   :  { %2667 = vst.msk [vmem:[#allocation2 + $0x8] sm:$0x30] %vm347_vm8, %v2665_v0  ;;  %v2503_v2 = vpop.permute.xlu0 %2502 }
0x3cd5   :  { %3275 = vst.msk [vmem:[#allocation2 + $0x8] sm:$0x30] %vm468_vm5, %v5301_v60 }
0x3cd6   :  { %2505 = vst.msk [vmem:[#allocation2 + $0x8] sm:$0xc0] %vm182_vm9, %v2503_v2 }
0x3cd7   :  { %v2910_v13 = vpop.permute.xlu1 %2909 }
0x3cd8   :  { %2912 = vst.msk [vmem:[#allocation2 + $0x8] sm:$0x3] %vm596_vm10, %v2910_v13  ;;  %v2789_v19 = vpop.permute.xlu0 %2788 }
0x3cd9   :  { %3029 = vst.msk [vmem:[#allocation2 + $0x8] sm:$0x3] %vm177_vm2, %v5256_v50  ;;  %v1164_v50 = vadd.f32 %v3563_v10, %v4757_v58  ;;  %v2328_v58 = vsel %vm61_vm0, %v2322_v48, 0.0 }
0x3cda   :  { %2791 = vst.msk [vmem:[#allocation2 + $0x8] sm:$0xc] %vm473_vm11, %v2789_v19 }
0x3cdb   :  { %3151 = vst.msk [vmem:[#allocation2 + $0x8] sm:$0xc] %vm342_vm4, %v5284_v12  ;;  %v3153_v15 = vpop.permute.xlu1 %3152  ;;  %v2319_v12 = vadd.f32 %v3623_v22, %v5132_v5  ;;  %v1170_v52 = vsel %vm61_vm0, %v1164_v50, 0.0 }
0x3cdc   :  { %3155 = vst.msk [vmem:[#allocation2] sm:$0x30] %vm347_vm8, %v3153_v15  ;;  %v3031_v9 = vpop.permute.xlu0 %3030 }
0x3cdd   :  { %3033 = vst.msk [vmem:[#allocation2] sm:$0xc0] %vm182_vm9, %v3031_v9  ;;  %v2325_v11 = vsel %vm61_vm0, %v2319_v12, 0.0 }
0x3ce0   :  { %v3277_v31 = vpop.permute.xlu0 %3276 }
0x3ce1   :  { %3279 = vst.msk [vmem:[#allocation2] sm:$0xc] %vm473_vm11, %v3277_v31 }
0x3cf1   :  { %1171 = vadd.xlane.f32.xlu0 %v1170_v52 }
0x3cf5   :  { %2326 = vadd.xlane.f32.xlu0 %v2325_v11 }
0x3cf7   :  { %1168 = vadd.xlane.f32.xlu1 %v1167_v23 }
0x3cfb   :  { %2329 = vadd.xlane.f32.xlu1 %v2328_v58 }
0x3d44   :  { %v3393_v60 = vpop.permute.xlu0 %3392 }
0x3d45   :  { %3395 = vst.msk [vmem:[#allocation2] sm:$0x3] %vm596_vm10, %v3393_v60  ;;  %v3388_v5 = vpop.permute.xlu1 %3387 }
0x3d46   :  { %3390 = vst.msk [vmem:[#allocation2 + $0x8] sm:$0xc0] %vm591_vm6, %v3388_v5 }
0x3d4c   :  { %v3396_v3 = vld [vmem:[#allocation2] sm:$0xff] }
0x3d4d   :  { %v3397_v27 = vld [vmem:[#allocation2 + $0x8] sm:$0xff] }
0x3d4e   :  { %v3398_v56 = vpack.c.bf16 %v3397_v27, %v3396_v3  ;;  %v1194_v3 = vld [vmem:[%s5460_s6] sm:$0xff] }
0x3d50   :  { %3745 = vmatmul.mubr.msk.bf16.vlgmr.msra.gmra.mrb[52].mxu0 %vm225_vm3, %v3398_v56 }
0x3d7e   :  { %v1172_v29 = vpop.xlane.xlu0 %1171 }
0x3d7f   :  { %v1175_v55 = vmul.f32 0.0625, %v1172_v29 }
0x3d81   :  { %v5379_v44 = vsub.f32 %v1164_v50, %v1175_v55 }
0x3d82   :  { %v2327_v36 = vpop.xlane.xlu0 %2326 }
0x3d83   :  { %v2331_v21 = vmul.f32 0.0625, %v2327_v36  ;;  %v1179_v57 = vmul.f32 %v5379_v44, %v5379_v44 }
0x3d84   :  { %v1169_v16 = vpop.xlane.xlu1 %1168 }
0x3d85   :  { %v1174_v20 = vmul.f32 0.0625, %v1169_v16  ;;  %v5381_v41 = vsub.f32 %v2319_v12, %v2331_v21  ;;  %v1183_v59 = vsel %vm61_vm0, %v1179_v57, 0.0  ;;  %v1195_v16 = vld [vmem:[%s5460_s6 + $0x8] sm:$0xff] }
0x3d87   :  { %v5377_v8 = vsub.f32 %v1161_v38, %v1174_v20  ;;  %v2335_v18 = vmul.f32 %v5381_v41, %v5381_v41  ;;  %v3629_v20 = vld [vmem:[%s5460_s6 + $0x10] sm:$0xff] }
0x3d88   :  { %v2330_v30 = vpop.xlane.xlu1 %2329 }
0x3d89   :  { %v2332_v40 = vmul.f32 0.0625, %v2330_v30  ;;  %v1178_v54 = vmul.f32 %v5377_v8, %v5377_v8  ;;  %v2337_v1 = vsel %vm61_vm0, %v2335_v18, 0.0  ;;  %v1200_v30 = vld [vmem:[%s5461_s7] sm:$0xff] }
0x3d8b   :  { %v5386_v39 = vsub.f32 %v2322_v48, %v2332_v40  ;;  %v1180_v61 = vsel %vm61_vm0, %v1178_v54, 0.0 }
0x3d8d   :  { %v2336_v49 = vmul.f32 %v5386_v39, %v5386_v39 }
0x3d8f   :  { %v2340_v37 = vsel %vm61_vm0, %v2336_v49, 0.0 }
0x3e23   :  { %v3477_v45 = vpop.f32.mrb[52].mxu0 }
0x3e24   :  { %v3478_v32 = vadd.f32 %v3687_v34, %v3477_v45  ;;  %v3746_v6 = vpop.f32.mrb[53].mxu0  ;;  %v1201_v45 = vld [vmem:[%s5461_s7 + $0x8] sm:$0xff] }
0x3e25   :  { %v3480_v7 = vpop.f32.mrb[54].mxu0 }
0x3e26   :  { %v3481_v51 = vadd.f32 %v3687_v34, %v3480_v7  ;;  %v3747_v53 = vpop.f32.mrb[55].mxu0  ;;  %v3484_v35 = vsel %vm61_vm0, %v3478_v32, 0.0  ;;  %v3630_v34 = vld [vmem:[%s5460_s6 + $0x18] sm:$0xff] }
0x3e27   :  { %3485 = vadd.xlane.f32.xlu0 %v3484_v35 }
0x3e28   :  { %v3487_v4 = vsel %vm61_vm0, %v3481_v51, 0.0 }
0x3e29   :  { %3488 = vadd.xlane.f32.xlu1 %v3487_v4  ;;  %v3694_v4 = vld [vmem:[%s5460_s6 + $0x28] sm:$0xff] }
0x3e2b   :  { %1181 = vadd.xlane.f32.xlu0 %v1180_v61 }
0x3e2d   :  { %1184 = vadd.xlane.f32.xlu1 %v1183_v59  ;;  %v3695_v59 = vld [vmem:[%s5461_s7 + $0x20] sm:$0xff] }
0x3e2f   :  { %2338 = vadd.xlane.f32.xlu0 %v2337_v1 }
0x3e31   :  { %2341 = vadd.xlane.f32.xlu1 %v2340_v37 }
0x3eb4   :  { %v3486_v24 = vpop.xlane.xlu0 %3485 }
0x3eb5   :  { %v3490_v25 = vmul.f32 0.0625, %v3486_v24  ;;  %v3696_v24 = vld [vmem:[%s5461_s7 + $0x28] sm:$0xff] }
0x3eb6   :  { %v3489_v43 = vpop.xlane.xlu1 %3488 }
0x3eb7   :  { %v3492_v14 = vsub.f32 %v3478_v32, %v3490_v25  ;;  %v3491_v17 = vmul.f32 0.0625, %v3489_v43 }
0x3eb8   :  { %v1182_v33 = vpop.xlane.xlu0 %1181 }
0x3eb9   :  { %v5399_v63 = vsub.f32 %v3481_v51, %v3491_v17  ;;  %v3494_v46 = vmul.f32 %v3492_v14, %v3492_v14  ;;  %v1186_v0 = vmul.f32 0.0625, %v1182_v33  ;;  %v3693_v51 = vld [vmem:[%s5460_s6 + $0x20] sm:$0xff] }
0x3eba   :  { %v1185_v62 = vpop.xlane.xlu1 %1184 }
0x3ebb   :  { %v3496_v28 = vsel %vm61_vm0, %v3494_v46, 0.0  ;;  %v3495_v47 = vmul.f32 %v5399_v63, %v5399_v63  ;;  %v1187_v2 = vmul.f32 0.0625, %v1185_v62  ;;  %v1188_v15 = vadd.f32 1e-05, %v1186_v0 }
0x3ebc   :  { %3497 = vadd.xlane.f32.xlu0 %v3496_v28  ;;  %v2339_v42 = vpop.xlane.xlu0 %2338 }
0x3ebd   :  { %v3499_v26 = vsel %vm61_vm0, %v3495_v47, 0.0  ;;  %v2343_v19 = vmul.f32 0.0625, %v2339_v42  ;;  %v1189_v31 = vadd.f32 1e-05, %v1187_v2  ;;  %4194 = vrsqrt.f32 %v1188_v15 }
0x3ebe   :  { %3500 = vadd.xlane.f32.xlu1 %v3499_v26  ;;  %v2342_v13 = vpop.xlane.xlu1 %2341 }
0x3ebf   :  { %v2344_v9 = vmul.f32 0.0625, %v2342_v13  ;;  %v2345_v10 = vadd.f32 1e-05, %v2343_v19  ;;  %4196 = vrsqrt.f32 %v1189_v31 }
0x3ec1   :  { %v2346_v50 = vadd.f32 1e-05, %v2344_v9  ;;  %4198 = vrsqrt.f32 %v2345_v10 }
0x3ec3   :  { %4200 = vrsqrt.f32 %v2346_v50 }
0x3ec7   :  { %v4195_v12 = vpop.eup %4194 }
0x3ec8   :  { %v1192_v60 = vmul.f32 %v4195_v12, %v5377_v8 }
0x3ec9   :  { %v4197_v38 = vpop.eup %4196 }
0x3eca   :  { %v1193_v56 = vmul.f32 %v4197_v38, %v5379_v44  ;;  %v1196_v36 = vmul.f32 %v1194_v3, %v1192_v60 }
0x3ecb   :  { %v4199_v48 = vpop.eup %4198 }
0x3ecc   :  { %v2349_v29 = vmul.f32 %v4199_v48, %v5381_v41  ;;  %v1197_v21 = vmul.f32 %v1195_v16, %v1193_v56  ;;  %v1202_v44 = vadd.f32 %v1200_v30, %v1196_v36  ;;  %v3631_v41 = vld [vmem:[%s5461_s7 + $0x10] sm:$0xff] }
0x3ecd   :  { %v4201_v5 = vpop.eup %4200 }
0x3ece   :  { %v2350_v55 = vmul.f32 %v4201_v5, %v5386_v39  ;;  %v2354_v8 = vmul.f32 %v3629_v20, %v2349_v29  ;;  %v1203_v32 = vadd.f32 %v1201_v45, %v1197_v21  ;;  %v3632_v39 = vld [vmem:[%s5461_s7 + $0x18] sm:$0xff] }
0x3ed0   :  { %v2355_v40 = vmul.f32 %v3630_v34, %v2350_v55  ;;  %v2356_v6 = vadd.f32 %v2354_v8, %v1202_v44 }
0x3ed2   :  { %v2357_v53 = vadd.f32 %v2355_v40, %v1203_v32  ;;  %v2361_v57 = vadd.f32 %v3631_v41, %v2356_v6 }
0x3ed4   :  { %v2362_v1 = vadd.f32 %v3632_v39, %v2357_v53 }
0x3f49   :  { %v3498_v22 = vpop.xlane.xlu0 %3497 }
0x3f4a   :  { %v3502_v52 = vmul.f32 0.0625, %v3498_v22 }
0x3f4b   :  { %v3501_v11 = vpop.xlane.xlu1 %3500 }
0x3f4c   :  { %v3504_v23 = vadd.f32 1e-05, %v3502_v52  ;;  %v3503_v58 = vmul.f32 0.0625, %v3501_v11 }
0x3f4e   :  { %4202 = vrsqrt.f32 %v3504_v23  ;;  %v3505_v27 = vadd.f32 1e-05, %v3503_v58 }
0x3f50   :  { %4204 = vrsqrt.f32 %v3505_v27 }
0x3f58   :  { %v4203_v7 = vpop.eup %4202 }
0x3f59   :  { %v3508_v35 = vmul.f32 %v4203_v7, %v3492_v14 }
0x3f5a   :  { %v4205_v54 = vpop.eup %4204 }
0x3f5b   :  { %v3513_v61 = vmul.f32 %v3693_v51, %v3508_v35  ;;  %v3509_v18 = vmul.f32 %v4205_v54, %v5399_v63 }
0x3f5d   :  { %v3515_v49 = vadd.f32 %v3513_v61, %v2361_v57  ;;  %v3514_v37 = vmul.f32 %v3694_v4, %v3509_v18 }
0x3f5f   :  { %v3520_v25 = vadd.f32 %v3695_v59, %v3515_v49  ;;  %v3516_v43 = vadd.f32 %v3514_v37, %v2362_v1 }
0x3f61   :  { %3522 = vst.msk [vmem:[%s5462_s8] sm:$0xff] %vm61_vm0, %v3520_v25  ;;  %v3521_v14 = vadd.f32 %v3696_v24, %v3516_v43 }
0x3f63   :  { %3523 = vst.msk [vmem:[%s5462_s8 + $0x8] sm:$0xff] %vm61_vm0, %v3521_v14 }

</bundles_post_ra>
